<compile_context>
chip_gen: v5e
topology: v5e:2x2
jax: 0.10.0
libtpu: 0.0.40
codegen_flags: <defaults>
</compile_context>

<pallas_src>
import functools
import math

import jax
import jax.numpy as jnp
from jax.experimental import pallas as pl
from jax.experimental.pallas import tpu as pltpu


def _round_up(x, m):
    return ((x + m - 1) // m) * m


# ----------------------------------------------------------------------------
# Gate-block padding: place gate g at rows/lanes [g*Hp, g*Hp+H); pad lanes stay 0
# through the whole recurrence (sigmoid(0)=0.5, tanh(0)=0 => h_pad stays 0).
# ----------------------------------------------------------------------------
def _pad_gate_weight(w, H, Hp):
    # w: (3H, H) PyTorch GRU weight -> (3Hp, Hp)
    w3 = w.reshape(3, H, H)
    out = jnp.zeros((3, Hp, Hp), w.dtype)
    out = out.at[:, :H, :H].set(w3)
    return out.reshape(3 * Hp, Hp)


def _pad_gate_bias(b, H, Hp):
    b3 = b.reshape(3, H)
    out = jnp.zeros((3, Hp), b.dtype)
    out = out.at[:, :H].set(b3)
    return out.reshape(3 * Hp)


# ----------------------------------------------------------------------------
# Fused 2-layer GRU kernel: grid over (batch tiles, time chunks), states in VMEM.
# ----------------------------------------------------------------------------
def _encoder_gru2_kernel(gi1_ref, whh1_ref, bhh1_ref,
                         wih2_ref, whh2_ref, bih2_ref, bhh2_ref,
                         y_ref, h1f_ref, h2f_ref,
                         h1_s, h2_s, y1_s, gi2_s,
                         *, hp, t_blk, seq_len, b_tile, needs_mask, unroll):
    """One chunk of t_blk timesteps for both GRU layers (time-major layout).

    gi1_ref : (t_blk, b_tile, 3Hp)  hoisted layer-1 input projection chunk
    whh*/wih2 : (Hp, 3Hp) bf16      resident transposed weights
    b*_ref  : (1, 3Hp) f32          biases
    y_ref   : (t_blk, b_tile, Hp)   layer-2 output chunk
    h1f/h2f : (b_tile, Hp)          final hidden states (written on last chunk)
    h1_s/h2_s : (b_tile, Hp)        recurrent states carried across chunks (VMEM)
    y1_s    : (t_blk, b_tile, Hp)   layer-1 outputs for this chunk (VMEM)
    gi2_s   : (t_blk, b_tile, 3Hp)  layer-2 input projection for this chunk (VMEM)
    """
    H = hp
    G3 = 3 * hp
    c = pl.program_id(1)
    n_chunks = pl.num_programs(1)

    @pl.when(c == 0)
    def _():
        h1_s[...] = jnp.zeros_like(h1_s)
        h2_s[...] = jnp.zeros_like(h2_s)
        # Safety net: never let an undefined output buffer be written back.
        h1f_ref[...] = jnp.zeros_like(h1f_ref)
        h2f_ref[...] = jnp.zeros_like(h2f_ref)

    # Hoisted once per chunk: resident bf16 weights, biases broadcast once
    # (JAX does not CSE broadcast_in_dim inside the step loop).
    whh1 = whh1_ref[...]
    wih2 = wih2_ref[...]
    whh2 = whh2_ref[...]
    bhh1_b = jnp.broadcast_to(bhh1_ref[...], (b_tile, G3))
    bih2_b = jnp.broadcast_to(bih2_ref[...], (b_tile, G3))
    bhh2_b = jnp.broadcast_to(bhh2_ref[...], (b_tile, G3))

    base = c * t_blk

    def sigmoid(x):
        # exact sigmoid via one EUP tanh (cheaper than exp + divide, v5e friendly)
        return 0.5 * (jnp.tanh(0.5 * x) + 1.0)

    def gru_cell(gi, h_prev, whh, bhh_b):
        # PyTorch nn.GRU gate order (r, z, n); only the recurrent matmul is here.
        gh = jnp.dot(h_prev.astype(jnp.bfloat16), whh,
                     preferred_element_type=jnp.float32) + bhh_b
        r = sigmoid(gi[:, 0:H] + gh[:, 0:H])
        z = sigmoid(gi[:, H:2 * H] + gh[:, H:2 * H])
        n = jnp.tanh(gi[:, 2 * H:G3] + r * gh[:, 2 * H:G3])
        return (1.0 - z) * n + z * h_prev

    def run_chunk(masked):
        # ---- Layer 1: recurrence only (input projection hoisted to the wrapper). ----
        def l1_body(t, h):
            gi = gi1_ref[t]                                  # (b_tile, 3Hp)
            h_new = gru_cell(gi, h, whh1, bhh1_b)
            if masked:
                h_new = jnp.where(base + t < seq_len, h_new, h)
            y1_s[t] = h_new                                  # bound live range
            return h_new

        h1 = jax.lax.fori_loop(0, t_blk, l1_body, h1_s[...], unroll=unroll)
        h1_s[...] = h1

        # ---- Layer-2 input projection for the whole chunk: one bf16 MXU matmul. ----
        y1_mat = y1_s[...].reshape(t_blk * b_tile, H).astype(jnp.bfloat16)
        gi2 = jnp.dot(y1_mat, wih2, preferred_element_type=jnp.float32)
        gi2_s[...] = gi2.reshape(t_blk, b_tile, G3) + bih2_b

        # ---- Layer 2: recurrence, per-step lane-dense store into the output block. ----
        def l2_body(t, h):
            gi = gi2_s[t]                                    # (b_tile, 3Hp)
            h_new = gru_cell(gi, h, whh2, bhh2_b)
            if masked:
                h_new = jnp.where(base + t < seq_len, h_new, h)
            y_ref[t] = h_new.astype(y_ref.dtype)
            return h_new

        h2 = jax.lax.fori_loop(0, t_blk, l2_body, h2_s[...], unroll=unroll)
        h2_s[...] = h2

    if needs_mask:
        # Only the final (partial) chunk pays for the tail-step mask.
        @pl.when(c < n_chunks - 1)
        def _():
            run_chunk(False)

        @pl.when(c == n_chunks - 1)
        def _():
            run_chunk(True)
    else:
        run_chunk(False)

    @pl.when(c == n_chunks - 1)
    def _():
        h1f_ref[...] = h1_s[...].astype(h1f_ref.dtype)
        h2f_ref[...] = h2_s[...].astype(h2f_ref.dtype)


# ----------------------------------------------------------------------------
# VMEM-aware chunk sizing.
# ----------------------------------------------------------------------------
def _pick_time_block(T, b_tile, hp, *, max_blk=64, budget_bytes=12 * 2**20):
    g3 = 3 * hp

    def chunk_bytes(tb):
        return (2 * tb * b_tile * g3 * 4      # gi1 input slab (double buffered)
                + 2 * tb * b_tile * hp * 4    # output slab (double buffered)
                + tb * b_tile * hp * 4        # y1 scratch
                + tb * b_tile * g3 * 4)       # gi2 scratch

    tb = min(T, max_blk)
    while tb > 1 and chunk_bytes(tb) > budget_bytes:
        tb = max(1, tb // 2)
    return tb


def _vmem_estimate(t_blk, b_tile, hp):
    g3 = 3 * hp
    blocks = 2 * t_blk * b_tile * g3 * 4 + 2 * t_blk * b_tile * hp * 4
    blocks += 2 * 2 * b_tile * hp * 4                       # h1f/h2f output blocks
    scratch = (t_blk * b_tile * hp * 4 + t_blk * b_tile * g3 * 4
               + 2 * b_tile * hp * 4)
    weights = 2 * (3 * hp * g3 * 2 + 3 * g3 * 4)            # bf16 weights + f32 biases
    return blocks + scratch + weights


# ----------------------------------------------------------------------------
# pallas_call wrapper.
# ----------------------------------------------------------------------------
def encoder_gru2_pallas(gi1_tm, whh1_t, bhh1, wih2_t, whh2_t, bih2, bhh2, *,
                        B_pad, b_tile, n_btiles, T, T_pad, t_blk, Hp, needs_mask):
    """gi1_tm: (T_pad, B_pad, 3Hp) f32 hoisted layer-1 projection (time-major).
    Weights are (Hp, 3Hp) bf16, biases (1, 3Hp) f32.
    Returns y (T_pad, B_pad, Hp), h1_final (B_pad, Hp), h2_final (B_pad, Hp)."""
    G3 = 3 * Hp
    n_chunks = T_pad // t_blk
    unroll = max(1, min(t_blk, 8))

    kernel = functools.partial(
        _encoder_gru2_kernel, hp=Hp, t_blk=t_blk, seq_len=T, b_tile=b_tile,
        needs_mask=needs_mask, unroll=unroll)

    vmem_limit = int(min(96 * 2**20, max(16 * 2**20,
                                         _vmem_estimate(t_blk, b_tile, Hp) + 4 * 2**20)))

    y, h1f, h2f = pl.pallas_call(
        kernel,
        out_shape=(
            jax.ShapeDtypeStruct((T_pad, B_pad, Hp), jnp.float32),
            jax.ShapeDtypeStruct((B_pad, Hp), jnp.float32),
            jax.ShapeDtypeStruct((B_pad, Hp), jnp.float32),
        ),
        grid=(n_btiles, n_chunks),
        in_specs=[
            pl.BlockSpec((t_blk, b_tile, G3), lambda b, c: (c, b, 0)),  # gi1 chunk
            pl.BlockSpec((Hp, G3), lambda b, c: (0, 0)),                # W_hh1^T (resident)
            pl.BlockSpec((1, G3), lambda b, c: (0, 0)),                 # b_hh1
            pl.BlockSpec((Hp, G3), lambda b, c: (0, 0)),                # W_ih2^T
            pl.BlockSpec((Hp, G3), lambda b, c: (0, 0)),                # W_hh2^T
            pl.BlockSpec((1, G3), lambda b, c: (0, 0)),                 # b_ih2
            pl.BlockSpec((1, G3), lambda b, c: (0, 0)),                 # b_hh2
        ],
        out_specs=(
            pl.BlockSpec((t_blk, b_tile, Hp), lambda b, c: (c, b, 0)),  # output chunk
            pl.BlockSpec((b_tile, Hp), lambda b, c: (b, 0)),            # final h, layer 1
            pl.BlockSpec((b_tile, Hp), lambda b, c: (b, 0)),            # final h, layer 2
        ),
        scratch_shapes=[
            pltpu.VMEM((b_tile, Hp), jnp.float32),           # h1 state
            pltpu.VMEM((b_tile, Hp), jnp.float32),           # h2 state
            pltpu.VMEM((t_blk, b_tile, Hp), jnp.float32),    # layer-1 outputs
            pltpu.VMEM((t_blk, b_tile, 3 * Hp), jnp.float32),  # layer-2 projection
        ],
        compiler_params=pltpu.CompilerParams(
            dimension_semantics=("parallel", "arbitrary"),   # batch tiles || , time sequential
            vmem_limit_bytes=vmem_limit),
    )(gi1_tm, whh1_t, bhh1, wih2_t, whh2_t, bih2, bhh2)
    return y, h1f, h2f


# ----------------------------------------------------------------------------
# EncoderRNN module equivalent (parameters created deterministically in-script).
# ----------------------------------------------------------------------------
class EncoderRNNPallas:
    def __init__(self, input_size, hidden_size, num_layers=2, dropout_p=0.1,
                 key=jax.random.PRNGKey(0)):
        assert num_layers == 2, "fused Pallas kernel implements the 2-layer default"
        self.hidden_size = hidden_size
        self.num_layers = num_layers
        self.dropout_p = dropout_p

        keys = jax.random.split(key, 1 + 4 * num_layers)
        # nn.Embedding default init: N(0, 1)
        self.embedding = jax.random.normal(
            keys[0], (input_size, hidden_size), dtype=jnp.float32)

        # nn.GRU default init: U(-1/sqrt(H), 1/sqrt(H)).
        k = 1.0 / math.sqrt(hidden_size)
        self.gru_params = []
        for layer in range(num_layers):
            kw = keys[1 + 4 * layer: 1 + 4 * (layer + 1)]
            w_ih = jax.random.uniform(kw[0], (3 * hidden_size, hidden_size),
                                      jnp.float32, -k, k)
            w_hh = jax.random.uniform(kw[1], (3 * hidden_size, hidden_size),
                                      jnp.float32, -k, k)
            b_ih = jax.random.uniform(kw[2], (3 * hidden_size,), jnp.float32, -k, k)
            b_hh = jax.random.uniform(kw[3], (3 * hidden_size,), jnp.float32, -k, k)
            self.gru_params.append((w_ih, w_hh, b_ih, b_hh))

    def __call__(self, input_ids):
        """input_ids: (B, T) int32 token ids -> (output (B,T,H), hidden (L,B,H))."""
        B, T = input_ids.shape
        H = self.hidden_size
        Hp = _round_up(H, 128)                         # full lane width per gate

        # Batch padding / tiling: two batch tiles when possible so the "parallel"
        # grid axis can use v7x's second TensorCore (neutral on v5e/v6e).
        B_pad = _round_up(B, 8)
        if B_pad >= 16:
            b_tile = _round_up(B_pad // 2, 8)
            B_pad = 2 * b_tile
            n_btiles = 2
        else:
            b_tile = B_pad
            n_btiles = 1

        t_blk = _pick_time_block(T, b_tile, Hp)
        T_pad = -(-T // t_blk) * t_blk
        needs_mask = (T_pad != T)

        w_ih1, w_hh1, b_ih1, b_hh1 = self.gru_params[0]
        w_ih2, w_hh2, b_ih2, b_hh2 = self.gru_params[1]

        # Gate-block padded (transposed) weights; MXU operands in bf16.
        wih1_t = _pad_gate_weight(w_ih1, H, Hp).T.astype(jnp.bfloat16)   # (Hp, 3Hp)
        whh1_t = _pad_gate_weight(w_hh1, H, Hp).T.astype(jnp.bfloat16)
        wih2_t = _pad_gate_weight(w_ih2, H, Hp).T.astype(jnp.bfloat16)
        whh2_t = _pad_gate_weight(w_hh2, H, Hp).T.astype(jnp.bfloat16)
        bih1_p = _pad_gate_bias(b_ih1, H, Hp)                            # (3Hp,)
        bhh1_p = _pad_gate_bias(b_hh1, H, Hp)
        bih2_p = _pad_gate_bias(b_ih2, H, Hp)
        bhh2_p = _pad_gate_bias(b_hh2, H, Hp)

        # Embedding lookup directly in time-major order (gather is XLA glue).
        # TODO(synk): nn.Dropout / inter-layer GRU dropout are stochastic training-time
        # ops; evaluated here in eval mode (identity), matching model.eval() semantics.
        emb_tm = jnp.take(self.embedding, input_ids.T, axis=0)           # (T, B, H)
        emb_tm = jnp.pad(emb_tm, ((0, 0), (0, 0), (0, Hp - H)))          # (T, B, Hp)

        # Hoisted layer-1 input projection: one (T*B, Hp) x (Hp, 3Hp) bf16 matmul.
        gi1 = jnp.dot(emb_tm.reshape(T * B, Hp).astype(jnp.bfloat16), wih1_t,
                      preferred_element_type=jnp.float32) + bih1_p       # (T*B, 3Hp)
        gi1 = gi1.reshape(T, B, 3 * Hp)
        gi1 = jnp.pad(gi1, ((0, T_pad - T), (0, B_pad - B), (0, 0)))     # zero tail/pad rows

        y_tm, h1f, h2f = encoder_gru2_pallas(
            gi1, whh1_t, bhh1_p.reshape(1, -1),
            wih2_t, whh2_t, bih2_p.reshape(1, -1), bhh2_p.reshape(1, -1),
            B_pad=B_pad, b_tile=b_tile, n_btiles=n_btiles,
            T=T, T_pad=T_pad, t_blk=t_blk, Hp=Hp, needs_mask=needs_mask)

        output = jnp.transpose(y_tm[:T, :B, :H], (1, 0, 2))              # (B, T, H)
        hidden = jnp.stack([h1f[:B, :H], h2f[:B, :H]], axis=0)           # (L, B, H)
        return output, hidden


# ----------------------------------------------------------------------------
# Pure-JAX reference (exact f32 math, lax.scan) to sanity-check the kernel.
# ----------------------------------------------------------------------------
def _gru_layer_ref(x_tbh, w_ih, w_hh, b_ih, b_hh):
    T, B, H = x_tbh.shape
    h0 = jnp.zeros((B, H), jnp.float32)

    def step(h, x_t):
        gi = x_t @ w_ih.T + b_ih
        gh = h @ w_hh.T + b_hh
        r = jax.nn.sigmoid(gi[:, :H] + gh[:, :H])
        z = jax.nn.sigmoid(gi[:, H:2 * H] + gh[:, H:2 * H])
        n = jnp.tanh(gi[:, 2 * H:] + r * gh[:, 2 * H:])
        h_new = (1.0 - z) * n + z * h
        return h_new, h_new

    h_fin, ys = jax.lax.scan(step, h0, x_tbh)
    return ys, h_fin


if __name__ == "__main__":
    INPUT_SIZE = 50    # vocab size
    HIDDEN = 32
    NUM_LAYERS = 2
    B, T = 2, 8

    model = EncoderRNNPallas(INPUT_SIZE, HIDDEN, num_layers=NUM_LAYERS,
                             dropout_p=0.1, key=jax.random.PRNGKey(0))

    ids = jax.random.randint(jax.random.PRNGKey(1), (B, T), 0, INPUT_SIZE,
                             dtype=jnp.int32)

    output, hidden = model(ids)
    output = jax.block_until_ready(output)
    hidden = jax.block_until_ready(hidden)

    assert output.shape == (B, T, HIDDEN)
    assert hidden.shape == (NUM_LAYERS, B, HIDDEN)

    # Cross-check against the pure-JAX f32 reference (kernel uses bf16 MXU operands
    # with f32 accumulation, so tolerances are loosened accordingly).
    x_ref = jnp.transpose(jnp.take(model.embedding, ids, axis=0), (1, 0, 2))
    finals_ref = []
    for (w_ih, w_hh, b_ih, b_hh) in model.gru_params:
        x_ref, h_ref = _gru_layer_ref(x_ref, w_ih, w_hh, b_ih, b_hh)
        finals_ref.append(h_ref)
    out_ref = jnp.transpose(x_ref, (1, 0, 2))
    hid_ref = jnp.stack(finals_ref, axis=0)

    assert jnp.allclose(output, out_ref, atol=2e-2, rtol=2e-2), \
        float(jnp.max(jnp.abs(output - out_ref)))
    assert jnp.allclose(hidden, hid_ref, atol=2e-2, rtol=2e-2), \
        float(jnp.max(jnp.abs(hidden - hid_ref)))

    print("KERNEL_OK")
</pallas_src>

<mosaic_0001>
module attributes {stable_mosaic.version = 11 : i64} {
  func.func @_encoder_gru2_kernel(%arg0: i32, %arg1: i32, %arg2: memref<8x8x384xf32, #tpu.memory_space<vmem>>, %arg3: memref<128x384xbf16, #tpu.memory_space<vmem>>, %arg4: memref<1x384xf32, #tpu.memory_space<vmem>>, %arg5: memref<128x384xbf16, #tpu.memory_space<vmem>>, %arg6: memref<128x384xbf16, #tpu.memory_space<vmem>>, %arg7: memref<1x384xf32, #tpu.memory_space<vmem>>, %arg8: memref<1x384xf32, #tpu.memory_space<vmem>>, %arg9: memref<8x8x128xf32, #tpu.memory_space<vmem>>, %arg10: memref<8x128xf32, #tpu.memory_space<vmem>>, %arg11: memref<8x128xf32, #tpu.memory_space<vmem>>, %arg12: memref<8x128xf32, #tpu.memory_space<vmem>>, %arg13: memref<8x128xf32, #tpu.memory_space<vmem>>, %arg14: memref<8x8x128xf32, #tpu.memory_space<vmem>>, %arg15: memref<8x8x384xf32, #tpu.memory_space<vmem>>) attributes {dimension_semantics = [#tpu.dimension_semantics<parallel>, #tpu.dimension_semantics<arbitrary>], iteration_bounds = array<i64: 1, 1>, scalar_prefetch = 0 : i64, scratch_operands = 4 : i64, tpu.core_type = #tpu.core_type<tc>, window_params = [{transform_indices = @transform_0, window_bounds = array<i64: 8, 8, 384>}, {pipeline_mode = #tpu.pipeline_mode<synchronous>, transform_indices = @transform_1, window_bounds = array<i64: 128, 384>}, {pipeline_mode = #tpu.pipeline_mode<synchronous>, transform_indices = @transform_2, window_bounds = array<i64: 1, 384>}, {pipeline_mode = #tpu.pipeline_mode<synchronous>, transform_indices = @transform_3, window_bounds = array<i64: 128, 384>}, {pipeline_mode = #tpu.pipeline_mode<synchronous>, transform_indices = @transform_4, window_bounds = array<i64: 128, 384>}, {pipeline_mode = #tpu.pipeline_mode<synchronous>, transform_indices = @transform_5, window_bounds = array<i64: 1, 384>}, {pipeline_mode = #tpu.pipeline_mode<synchronous>, transform_indices = @transform_6, window_bounds = array<i64: 1, 384>}, {transform_indices = @transform_7, window_bounds = array<i64: 8, 8, 128>}, {transform_indices = @transform_8, window_bounds = array<i64: 8, 128>}, {transform_indices = @transform_9, window_bounds = array<i64: 8, 128>}]} {
    %c0_i32 = arith.constant 0 : i32
    %0 = arith.cmpi eq, %arg1, %c0_i32 : i32
    %1 = arith.extui %0 : i1 to i32
    %c0_i32_0 = arith.constant 0 : i32
    %2 = arith.cmpi ne, %1, %c0_i32_0 : i32
    scf.if %2 {
      %cst_230 = arith.constant 0.000000e+00 : f32
      %671 = vector.broadcast %cst_230 : f32 to vector<8x128xf32>
      %c0_231 = arith.constant 0 : index
      %c0_232 = arith.constant 0 : index
      %672 = vector.load %arg12[%c0_231, %c0_232] : memref<8x128xf32, #tpu.memory_space<vmem>>, vector<8x128xf32>
      tpu.vector_store %arg12[%c0_231, %c0_232], %671 {strides = array<i32>} : memref<8x128xf32, #tpu.memory_space<vmem>>, vector<8x128xf32>,
      %cst_233 = arith.constant 0.000000e+00 : f32
      %673 = vector.broadcast %cst_233 : f32 to vector<8x128xf32>
      %c0_234 = arith.constant 0 : index
      %c0_235 = arith.constant 0 : index
      %674 = vector.load %arg13[%c0_234, %c0_235] : memref<8x128xf32, #tpu.memory_space<vmem>>, vector<8x128xf32>
      tpu.vector_store %arg13[%c0_234, %c0_235], %673 {strides = array<i32>} : memref<8x128xf32, #tpu.memory_space<vmem>>, vector<8x128xf32>,
      %cst_236 = arith.constant 0.000000e+00 : f32
      %675 = vector.broadcast %cst_236 : f32 to vector<8x128xf32>
      %c0_237 = arith.constant 0 : index
      %c0_238 = arith.constant 0 : index
      %676 = vector.load %arg10[%c0_237, %c0_238] : memref<8x128xf32, #tpu.memory_space<vmem>>, vector<8x128xf32>
      tpu.vector_store %arg10[%c0_237, %c0_238], %675 {strides = array<i32>} : memref<8x128xf32, #tpu.memory_space<vmem>>, vector<8x128xf32>,
      %cst_239 = arith.constant 0.000000e+00 : f32
      %677 = vector.broadcast %cst_239 : f32 to vector<8x128xf32>
      %c0_240 = arith.constant 0 : index
      %c0_241 = arith.constant 0 : index
      %678 = vector.load %arg11[%c0_240, %c0_241] : memref<8x128xf32, #tpu.memory_space<vmem>>, vector<8x128xf32>
      tpu.vector_store %arg11[%c0_240, %c0_241], %677 {strides = array<i32>} : memref<8x128xf32, #tpu.memory_space<vmem>>, vector<8x128xf32>,
    } else {
    }
    %c0 = arith.constant 0 : index
    %c0_1 = arith.constant 0 : index
    %3 = vector.load %arg3[%c0, %c0_1] : memref<128x384xbf16, #tpu.memory_space<vmem>>, vector<128x384xbf16>
    %c0_2 = arith.constant 0 : index
    %c0_3 = arith.constant 0 : index
    %4 = vector.load %arg5[%c0_2, %c0_3] : memref<128x384xbf16, #tpu.memory_space<vmem>>, vector<128x384xbf16>
    %c0_4 = arith.constant 0 : index
    %c0_5 = arith.constant 0 : index
    %5 = vector.load %arg6[%c0_4, %c0_5] : memref<128x384xbf16, #tpu.memory_space<vmem>>, vector<128x384xbf16>
    %c0_6 = arith.constant 0 : index
    %c0_7 = arith.constant 0 : index
    %6 = vector.load %arg4[%c0_6, %c0_7] : memref<1x384xf32, #tpu.memory_space<vmem>>, vector<1x384xf32>
    %7 = vector.shape_cast %6 : vector<1x384xf32> to vector<1x384xf32>
    %8 = vector.broadcast %7 : vector<1x384xf32> to vector<8x384xf32>
    %c0_8 = arith.constant 0 : index
    %c0_9 = arith.constant 0 : index
    %9 = vector.load %arg7[%c0_8, %c0_9] : memref<1x384xf32, #tpu.memory_space<vmem>>, vector<1x384xf32>
    %10 = vector.shape_cast %9 : vector<1x384xf32> to vector<1x384xf32>
    %11 = vector.broadcast %10 : vector<1x384xf32> to vector<8x384xf32>
    %c0_10 = arith.constant 0 : index
    %c0_11 = arith.constant 0 : index
    %12 = vector.load %arg8[%c0_10, %c0_11] : memref<1x384xf32, #tpu.memory_space<vmem>>, vector<1x384xf32>
    %13 = vector.shape_cast %12 : vector<1x384xf32> to vector<1x384xf32>
    %14 = vector.broadcast %13 : vector<1x384xf32> to vector<8x384xf32>
    %c0_12 = arith.constant 0 : index
    %c0_13 = arith.constant 0 : index
    %15 = vector.load %arg12[%c0_12, %c0_13] : memref<8x128xf32, #tpu.memory_space<vmem>>, vector<8x128xf32>
    %c0_i32_14 = arith.constant 0 : i32
    %16 = arith.index_cast %c0_i32_14 : i32 to index
    %c0_15 = arith.constant 0 : index
    %c0_16 = arith.constant 0 : index
    %17 = vector.load %arg2[%16, %c0_15, %c0_16] : memref<8x8x384xf32, #tpu.memory_space<vmem>>, vector<1x8x384xf32>
    %18 = vector.shape_cast %17 : vector<1x8x384xf32> to vector<8x384xf32>
    %19 = arith.truncf %15 : vector<8x128xf32> to vector<8x128xbf16>
    %cst = arith.constant dense<0.000000e+00> : vector<8x384xf32>
    %20 = tpu.matmul %19, %3, %cst {dimension_numbers = #tpu.dot_dimension_numbers<[1], [0], [0], [1], [0, 0, 1, 1], [], []>} : vector<8x128xbf16>, vector<128x384xbf16>, vector<8x384xf32> -> vector<8x384xf32>
    %21 = arith.addf %20, %8 : vector<8x384xf32>
    %22 = vector.extract_strided_slice %18 {offsets = [0, 0], sizes = [8, 128], strides = [1, 1]} : vector<8x384xf32> to vector<8x128xf32>
    %23 = vector.extract_strided_slice %21 {offsets = [0, 0], sizes = [8, 128], strides = [1, 1]} : vector<8x384xf32> to vector<8x128xf32>
    %24 = arith.addf %22, %23 : vector<8x128xf32>
    %cst_17 = arith.constant 5.000000e-01 : f32
    %25 = vector.broadcast %cst_17 : f32 to vector<8x128xf32>
    %26 = arith.mulf %25, %24 : vector<8x128xf32>
    %27 = math.tanh %26 : vector<8x128xf32>
    %cst_18 = arith.constant 1.000000e+00 : f32
    %28 = vector.broadcast %cst_18 : f32 to vector<8x128xf32>
    %29 = arith.addf %27, %28 : vector<8x128xf32>
    %cst_19 = arith.constant 5.000000e-01 : f32
    %30 = vector.broadcast %cst_19 : f32 to vector<8x128xf32>
    %31 = arith.mulf %30, %29 : vector<8x128xf32>
    %32 = vector.extract_strided_slice %18 {offsets = [0, 128], sizes = [8, 128], strides = [1, 1]} : vector<8x384xf32> to vector<8x128xf32>
    %33 = vector.extract_strided_slice %21 {offsets = [0, 128], sizes = [8, 128], strides = [1, 1]} : vector<8x384xf32> to vector<8x128xf32>
    %34 = arith.addf %32, %33 : vector<8x128xf32>
    %cst_20 = arith.constant 5.000000e-01 : f32
    %35 = vector.broadcast %cst_20 : f32 to vector<8x128xf32>
    %36 = arith.mulf %35, %34 : vector<8x128xf32>
    %37 = math.tanh %36 : vector<8x128xf32>
    %cst_21 = arith.constant 1.000000e+00 : f32
    %38 = vector.broadcast %cst_21 : f32 to vector<8x128xf32>
    %39 = arith.addf %37, %38 : vector<8x128xf32>
    %cst_22 = arith.constant 5.000000e-01 : f32
    %40 = vector.broadcast %cst_22 : f32 to vector<8x128xf32>
    %41 = arith.mulf %40, %39 : vector<8x128xf32>
    %42 = vector.extract_strided_slice %18 {offsets = [0, 256], sizes = [8, 128], strides = [1, 1]} : vector<8x384xf32> to vector<8x128xf32>
    %43 = vector.extract_strided_slice %21 {offsets = [0, 256], sizes = [8, 128], strides = [1, 1]} : vector<8x384xf32> to vector<8x128xf32>
    %44 = arith.mulf %31, %43 : vector<8x128xf32>
    %45 = arith.addf %42, %44 : vector<8x128xf32>
    %46 = math.tanh %45 : vector<8x128xf32>
    %cst_23 = arith.constant 1.000000e+00 : f32
    %47 = vector.broadcast %cst_23 : f32 to vector<8x128xf32>
    %48 = arith.subf %47, %41 : vector<8x128xf32>
    %49 = arith.mulf %48, %46 : vector<8x128xf32>
    %50 = arith.mulf %41, %15 : vector<8x128xf32>
    %51 = arith.addf %49, %50 : vector<8x128xf32>
    %52 = arith.index_cast %c0_i32_14 : i32 to index
    %c0_24 = arith.constant 0 : index
    %c0_25 = arith.constant 0 : index
    %53 = vector.load %arg14[%52, %c0_24, %c0_25] : memref<8x8x128xf32, #tpu.memory_space<vmem>>, vector<1x8x128xf32>
    %54 = vector.shape_cast %53 : vector<1x8x128xf32> to vector<8x128xf32>
    %55 = vector.shape_cast %51 : vector<8x128xf32> to vector<1x8x128xf32>
    tpu.vector_store %arg14[%52, %c0_24, %c0_25], %55 {strides = array<i32>} : memref<8x8x128xf32, #tpu.memory_space<vmem>>, vector<1x8x128xf32>,
    %c1_i32 = arith.constant 1 : i32
    %56 = arith.index_cast %c1_i32 : i32 to index
    %c0_26 = arith.constant 0 : index
    %c0_27 = arith.constant 0 : index
    %57 = vector.load %arg2[%56, %c0_26, %c0_27] : memref<8x8x384xf32, #tpu.memory_space<vmem>>, vector<1x8x384xf32>
    %58 = vector.shape_cast %57 : vector<1x8x384xf32> to vector<8x384xf32>
    %59 = arith.truncf %51 : vector<8x128xf32> to vector<8x128xbf16>
    %cst_28 = arith.constant dense<0.000000e+00> : vector<8x384xf32>
    %60 = tpu.matmul %59, %3, %cst_28 {dimension_numbers = #tpu.dot_dimension_numbers<[1], [0], [0], [1], [0, 0, 1, 1], [], []>} : vector<8x128xbf16>, vector<128x384xbf16>, vector<8x384xf32> -> vector<8x384xf32>
    %61 = arith.addf %60, %8 : vector<8x384xf32>
    %62 = vector.extract_strided_slice %58 {offsets = [0, 0], sizes = [8, 128], strides = [1, 1]} : vector<8x384xf32> to vector<8x128xf32>
    %63 = vector.extract_strided_slice %61 {offsets = [0, 0], sizes = [8, 128], strides = [1, 1]} : vector<8x384xf32> to vector<8x128xf32>
    %64 = arith.addf %62, %63 : vector<8x128xf32>
    %cst_29 = arith.constant 5.000000e-01 : f32
    %65 = vector.broadcast %cst_29 : f32 to vector<8x128xf32>
    %66 = arith.mulf %65, %64 : vector<8x128xf32>
    %67 = math.tanh %66 : vector<8x128xf32>
    %cst_30 = arith.constant 1.000000e+00 : f32
    %68 = vector.broadcast %cst_30 : f32 to vector<8x128xf32>
    %69 = arith.addf %67, %68 : vector<8x128xf32>
    %cst_31 = arith.constant 5.000000e-01 : f32
    %70 = vector.broadcast %cst_31 : f32 to vector<8x128xf32>
    %71 = arith.mulf %70, %69 : vector<8x128xf32>
    %72 = vector.extract_strided_slice %58 {offsets = [0, 128], sizes = [8, 128], strides = [1, 1]} : vector<8x384xf32> to vector<8x128xf32>
    %73 = vector.extract_strided_slice %61 {offsets = [0, 128], sizes = [8, 128], strides = [1, 1]} : vector<8x384xf32> to vector<8x128xf32>
    %74 = arith.addf %72, %73 : vector<8x128xf32>
    %cst_32 = arith.constant 5.000000e-01 : f32
    %75 = vector.broadcast %cst_32 : f32 to vector<8x128xf32>
    %76 = arith.mulf %75, %74 : vector<8x128xf32>
    %77 = math.tanh %76 : vector<8x128xf32>
    %cst_33 = arith.constant 1.000000e+00 : f32
    %78 = vector.broadcast %cst_33 : f32 to vector<8x128xf32>
    %79 = arith.addf %77, %78 : vector<8x128xf32>
    %cst_34 = arith.constant 5.000000e-01 : f32
    %80 = vector.broadcast %cst_34 : f32 to vector<8x128xf32>
    %81 = arith.mulf %80, %79 : vector<8x128xf32>
    %82 = vector.extract_strided_slice %58 {offsets = [0, 256], sizes = [8, 128], strides = [1, 1]} : vector<8x384xf32> to vector<8x128xf32>
    %83 = vector.extract_strided_slice %61 {offsets = [0, 256], sizes = [8, 128], strides = [1, 1]} : vector<8x384xf32> to vector<8x128xf32>
    %84 = arith.mulf %71, %83 : vector<8x128xf32>
    %85 = arith.addf %82, %84 : vector<8x128xf32>
    %86 = math.tanh %85 : vector<8x128xf32>
    %cst_35 = arith.constant 1.000000e+00 : f32
    %87 = vector.broadcast %cst_35 : f32 to vector<8x128xf32>
    %88 = arith.subf %87, %81 : vector<8x128xf32>
    %89 = arith.mulf %88, %86 : vector<8x128xf32>
    %90 = arith.mulf %81, %51 : vector<8x128xf32>
    %91 = arith.addf %89, %90 : vector<8x128xf32>
    %92 = arith.index_cast %c1_i32 : i32 to index
    %c0_36 = arith.constant 0 : index
    %c0_37 = arith.constant 0 : index
    %93 = vector.load %arg14[%92, %c0_36, %c0_37] : memref<8x8x128xf32, #tpu.memory_space<vmem>>, vector<1x8x128xf32>
    %94 = vector.shape_cast %93 : vector<1x8x128xf32> to vector<8x128xf32>
    %95 = vector.shape_cast %91 : vector<8x128xf32> to vector<1x8x128xf32>
    tpu.vector_store %arg14[%92, %c0_36, %c0_37], %95 {strides = array<i32>} : memref<8x8x128xf32, #tpu.memory_space<vmem>>, vector<1x8x128xf32>,
    %c2_i32 = arith.constant 2 : i32
    %96 = arith.index_cast %c2_i32 : i32 to index
    %c0_38 = arith.constant 0 : index
    %c0_39 = arith.constant 0 : index
    %97 = vector.load %arg2[%96, %c0_38, %c0_39] : memref<8x8x384xf32, #tpu.memory_space<vmem>>, vector<1x8x384xf32>
    %98 = vector.shape_cast %97 : vector<1x8x384xf32> to vector<8x384xf32>
    %99 = arith.truncf %91 : vector<8x128xf32> to vector<8x128xbf16>
    %cst_40 = arith.constant dense<0.000000e+00> : vector<8x384xf32>
    %100 = tpu.matmul %99, %3, %cst_40 {dimension_numbers = #tpu.dot_dimension_numbers<[1], [0], [0], [1], [0, 0, 1, 1], [], []>} : vector<8x128xbf16>, vector<128x384xbf16>, vector<8x384xf32> -> vector<8x384xf32>
    %101 = arith.addf %100, %8 : vector<8x384xf32>
    %102 = vector.extract_strided_slice %98 {offsets = [0, 0], sizes = [8, 128], strides = [1, 1]} : vector<8x384xf32> to vector<8x128xf32>
    %103 = vector.extract_strided_slice %101 {offsets = [0, 0], sizes = [8, 128], strides = [1, 1]} : vector<8x384xf32> to vector<8x128xf32>
    %104 = arith.addf %102, %103 : vector<8x128xf32>
    %cst_41 = arith.constant 5.000000e-01 : f32
    %105 = vector.broadcast %cst_41 : f32 to vector<8x128xf32>
    %106 = arith.mulf %105, %104 : vector<8x128xf32>
    %107 = math.tanh %106 : vector<8x128xf32>
    %cst_42 = arith.constant 1.000000e+00 : f32
    %108 = vector.broadcast %cst_42 : f32 to vector<8x128xf32>
    %109 = arith.addf %107, %108 : vector<8x128xf32>
    %cst_43 = arith.constant 5.000000e-01 : f32
    %110 = vector.broadcast %cst_43 : f32 to vector<8x128xf32>
    %111 = arith.mulf %110, %109 : vector<8x128xf32>
    %112 = vector.extract_strided_slice %98 {offsets = [0, 128], sizes = [8, 128], strides = [1, 1]} : vector<8x384xf32> to vector<8x128xf32>
    %113 = vector.extract_strided_slice %101 {offsets = [0, 128], sizes = [8, 128], strides = [1, 1]} : vector<8x384xf32> to vector<8x128xf32>
    %114 = arith.addf %112, %113 : vector<8x128xf32>
    %cst_44 = arith.constant 5.000000e-01 : f32
    %115 = vector.broadcast %cst_44 : f32 to vector<8x128xf32>
    %116 = arith.mulf %115, %114 : vector<8x128xf32>
    %117 = math.tanh %116 : vector<8x128xf32>
    %cst_45 = arith.constant 1.000000e+00 : f32
    %118 = vector.broadcast %cst_45 : f32 to vector<8x128xf32>
    %119 = arith.addf %117, %118 : vector<8x128xf32>
    %cst_46 = arith.constant 5.000000e-01 : f32
    %120 = vector.broadcast %cst_46 : f32 to vector<8x128xf32>
    %121 = arith.mulf %120, %119 : vector<8x128xf32>
    %122 = vector.extract_strided_slice %98 {offsets = [0, 256], sizes = [8, 128], strides = [1, 1]} : vector<8x384xf32> to vector<8x128xf32>
    %123 = vector.extract_strided_slice %101 {offsets = [0, 256], sizes = [8, 128], strides = [1, 1]} : vector<8x384xf32> to vector<8x128xf32>
    %124 = arith.mulf %111, %123 : vector<8x128xf32>
    %125 = arith.addf %122, %124 : vector<8x128xf32>
    %126 = math.tanh %125 : vector<8x128xf32>
    %cst_47 = arith.constant 1.000000e+00 : f32
    %127 = vector.broadcast %cst_47 : f32 to vector<8x128xf32>
    %128 = arith.subf %127, %121 : vector<8x128xf32>
    %129 = arith.mulf %128, %126 : vector<8x128xf32>
    %130 = arith.mulf %121, %91 : vector<8x128xf32>
    %131 = arith.addf %129, %130 : vector<8x128xf32>
    %132 = arith.index_cast %c2_i32 : i32 to index
    %c0_48 = arith.constant 0 : index
    %c0_49 = arith.constant 0 : index
    %133 = vector.load %arg14[%132, %c0_48, %c0_49] : memref<8x8x128xf32, #tpu.memory_space<vmem>>, vector<1x8x128xf32>
    %134 = vector.shape_cast %133 : vector<1x8x128xf32> to vector<8x128xf32>
    %135 = vector.shape_cast %131 : vector<8x128xf32> to vector<1x8x128xf32>
    tpu.vector_store %arg14[%132, %c0_48, %c0_49], %135 {strides = array<i32>} : memref<8x8x128xf32, #tpu.memory_space<vmem>>, vector<1x8x128xf32>,
    %c3_i32 = arith.constant 3 : i32
    %136 = arith.index_cast %c3_i32 : i32 to index
    %c0_50 = arith.constant 0 : index
    %c0_51 = arith.constant 0 : index
    %137 = vector.load %arg2[%136, %c0_50, %c0_51] : memref<8x8x384xf32, #tpu.memory_space<vmem>>, vector<1x8x384xf32>
    %138 = vector.shape_cast %137 : vector<1x8x384xf32> to vector<8x384xf32>
    %139 = arith.truncf %131 : vector<8x128xf32> to vector<8x128xbf16>
    %cst_52 = arith.constant dense<0.000000e+00> : vector<8x384xf32>
    %140 = tpu.matmul %139, %3, %cst_52 {dimension_numbers = #tpu.dot_dimension_numbers<[1], [0], [0], [1], [0, 0, 1, 1], [], []>} : vector<8x128xbf16>, vector<128x384xbf16>, vector<8x384xf32> -> vector<8x384xf32>
    %141 = arith.addf %140, %8 : vector<8x384xf32>
    %142 = vector.extract_strided_slice %138 {offsets = [0, 0], sizes = [8, 128], strides = [1, 1]} : vector<8x384xf32> to vector<8x128xf32>
    %143 = vector.extract_strided_slice %141 {offsets = [0, 0], sizes = [8, 128], strides = [1, 1]} : vector<8x384xf32> to vector<8x128xf32>
    %144 = arith.addf %142, %143 : vector<8x128xf32>
    %cst_53 = arith.constant 5.000000e-01 : f32
    %145 = vector.broadcast %cst_53 : f32 to vector<8x128xf32>
    %146 = arith.mulf %145, %144 : vector<8x128xf32>
    %147 = math.tanh %146 : vector<8x128xf32>
    %cst_54 = arith.constant 1.000000e+00 : f32
    %148 = vector.broadcast %cst_54 : f32 to vector<8x128xf32>
    %149 = arith.addf %147, %148 : vector<8x128xf32>
    %cst_55 = arith.constant 5.000000e-01 : f32
    %150 = vector.broadcast %cst_55 : f32 to vector<8x128xf32>
    %151 = arith.mulf %150, %149 : vector<8x128xf32>
    %152 = vector.extract_strided_slice %138 {offsets = [0, 128], sizes = [8, 128], strides = [1, 1]} : vector<8x384xf32> to vector<8x128xf32>
    %153 = vector.extract_strided_slice %141 {offsets = [0, 128], sizes = [8, 128], strides = [1, 1]} : vector<8x384xf32> to vector<8x128xf32>
    %154 = arith.addf %152, %153 : vector<8x128xf32>
    %cst_56 = arith.constant 5.000000e-01 : f32
    %155 = vector.broadcast %cst_56 : f32 to vector<8x128xf32>
    %156 = arith.mulf %155, %154 : vector<8x128xf32>
    %157 = math.tanh %156 : vector<8x128xf32>
    %cst_57 = arith.constant 1.000000e+00 : f32
    %158 = vector.broadcast %cst_57 : f32 to vector<8x128xf32>
    %159 = arith.addf %157, %158 : vector<8x128xf32>
    %cst_58 = arith.constant 5.000000e-01 : f32
    %160 = vector.broadcast %cst_58 : f32 to vector<8x128xf32>
    %161 = arith.mulf %160, %159 : vector<8x128xf32>
    %162 = vector.extract_strided_slice %138 {offsets = [0, 256], sizes = [8, 128], strides = [1, 1]} : vector<8x384xf32> to vector<8x128xf32>
    %163 = vector.extract_strided_slice %141 {offsets = [0, 256], sizes = [8, 128], strides = [1, 1]} : vector<8x384xf32> to vector<8x128xf32>
    %164 = arith.mulf %151, %163 : vector<8x128xf32>
    %165 = arith.addf %162, %164 : vector<8x128xf32>
    %166 = math.tanh %165 : vector<8x128xf32>
    %cst_59 = arith.constant 1.000000e+00 : f32
    %167 = vector.broadcast %cst_59 : f32 to vector<8x128xf32>
    %168 = arith.subf %167, %161 : vector<8x128xf32>
    %169 = arith.mulf %168, %166 : vector<8x128xf32>
    %170 = arith.mulf %161, %131 : vector<8x128xf32>
    %171 = arith.addf %169, %170 : vector<8x128xf32>
    %172 = arith.index_cast %c3_i32 : i32 to index
    %c0_60 = arith.constant 0 : index
    %c0_61 = arith.constant 0 : index
    %173 = vector.load %arg14[%172, %c0_60, %c0_61] : memref<8x8x128xf32, #tpu.memory_space<vmem>>, vector<1x8x128xf32>
    %174 = vector.shape_cast %173 : vector<1x8x128xf32> to vector<8x128xf32>
    %175 = vector.shape_cast %171 : vector<8x128xf32> to vector<1x8x128xf32>
    tpu.vector_store %arg14[%172, %c0_60, %c0_61], %175 {strides = array<i32>} : memref<8x8x128xf32, #tpu.memory_space<vmem>>, vector<1x8x128xf32>,
    %c4_i32 = arith.constant 4 : i32
    %176 = arith.index_cast %c4_i32 : i32 to index
    %c0_62 = arith.constant 0 : index
    %c0_63 = arith.constant 0 : index
    %177 = vector.load %arg2[%176, %c0_62, %c0_63] : memref<8x8x384xf32, #tpu.memory_space<vmem>>, vector<1x8x384xf32>
    %178 = vector.shape_cast %177 : vector<1x8x384xf32> to vector<8x384xf32>
    %179 = arith.truncf %171 : vector<8x128xf32> to vector<8x128xbf16>
    %cst_64 = arith.constant dense<0.000000e+00> : vector<8x384xf32>
    %180 = tpu.matmul %179, %3, %cst_64 {dimension_numbers = #tpu.dot_dimension_numbers<[1], [0], [0], [1], [0, 0, 1, 1], [], []>} : vector<8x128xbf16>, vector<128x384xbf16>, vector<8x384xf32> -> vector<8x384xf32>
    %181 = arith.addf %180, %8 : vector<8x384xf32>
    %182 = vector.extract_strided_slice %178 {offsets = [0, 0], sizes = [8, 128], strides = [1, 1]} : vector<8x384xf32> to vector<8x128xf32>
    %183 = vector.extract_strided_slice %181 {offsets = [0, 0], sizes = [8, 128], strides = [1, 1]} : vector<8x384xf32> to vector<8x128xf32>
    %184 = arith.addf %182, %183 : vector<8x128xf32>
    %cst_65 = arith.constant 5.000000e-01 : f32
    %185 = vector.broadcast %cst_65 : f32 to vector<8x128xf32>
    %186 = arith.mulf %185, %184 : vector<8x128xf32>
    %187 = math.tanh %186 : vector<8x128xf32>
    %cst_66 = arith.constant 1.000000e+00 : f32
    %188 = vector.broadcast %cst_66 : f32 to vector<8x128xf32>
    %189 = arith.addf %187, %188 : vector<8x128xf32>
    %cst_67 = arith.constant 5.000000e-01 : f32
    %190 = vector.broadcast %cst_67 : f32 to vector<8x128xf32>
    %191 = arith.mulf %190, %189 : vector<8x128xf32>
    %192 = vector.extract_strided_slice %178 {offsets = [0, 128], sizes = [8, 128], strides = [1, 1]} : vector<8x384xf32> to vector<8x128xf32>
    %193 = vector.extract_strided_slice %181 {offsets = [0, 128], sizes = [8, 128], strides = [1, 1]} : vector<8x384xf32> to vector<8x128xf32>
    %194 = arith.addf %192, %193 : vector<8x128xf32>
    %cst_68 = arith.constant 5.000000e-01 : f32
    %195 = vector.broadcast %cst_68 : f32 to vector<8x128xf32>
    %196 = arith.mulf %195, %194 : vector<8x128xf32>
    %197 = math.tanh %196 : vector<8x128xf32>
    %cst_69 = arith.constant 1.000000e+00 : f32
    %198 = vector.broadcast %cst_69 : f32 to vector<8x128xf32>
    %199 = arith.addf %197, %198 : vector<8x128xf32>
    %cst_70 = arith.constant 5.000000e-01 : f32
    %200 = vector.broadcast %cst_70 : f32 to vector<8x128xf32>
    %201 = arith.mulf %200, %199 : vector<8x128xf32>
    %202 = vector.extract_strided_slice %178 {offsets = [0, 256], sizes = [8, 128], strides = [1, 1]} : vector<8x384xf32> to vector<8x128xf32>
    %203 = vector.extract_strided_slice %181 {offsets = [0, 256], sizes = [8, 128], strides = [1, 1]} : vector<8x384xf32> to vector<8x128xf32>
    %204 = arith.mulf %191, %203 : vector<8x128xf32>
    %205 = arith.addf %202, %204 : vector<8x128xf32>
    %206 = math.tanh %205 : vector<8x128xf32>
    %cst_71 = arith.constant 1.000000e+00 : f32
    %207 = vector.broadcast %cst_71 : f32 to vector<8x128xf32>
    %208 = arith.subf %207, %201 : vector<8x128xf32>
    %209 = arith.mulf %208, %206 : vector<8x128xf32>
    %210 = arith.mulf %201, %171 : vector<8x128xf32>
    %211 = arith.addf %209, %210 : vector<8x128xf32>
    %212 = arith.index_cast %c4_i32 : i32 to index
    %c0_72 = arith.constant 0 : index
    %c0_73 = arith.constant 0 : index
    %213 = vector.load %arg14[%212, %c0_72, %c0_73] : memref<8x8x128xf32, #tpu.memory_space<vmem>>, vector<1x8x128xf32>
    %214 = vector.shape_cast %213 : vector<1x8x128xf32> to vector<8x128xf32>
    %215 = vector.shape_cast %211 : vector<8x128xf32> to vector<1x8x128xf32>
    tpu.vector_store %arg14[%212, %c0_72, %c0_73], %215 {strides = array<i32>} : memref<8x8x128xf32, #tpu.memory_space<vmem>>, vector<1x8x128xf32>,
    %c5_i32 = arith.constant 5 : i32
    %216 = arith.index_cast %c5_i32 : i32 to index
    %c0_74 = arith.constant 0 : index
    %c0_75 = arith.constant 0 : index
    %217 = vector.load %arg2[%216, %c0_74, %c0_75] : memref<8x8x384xf32, #tpu.memory_space<vmem>>, vector<1x8x384xf32>
    %218 = vector.shape_cast %217 : vector<1x8x384xf32> to vector<8x384xf32>
    %219 = arith.truncf %211 : vector<8x128xf32> to vector<8x128xbf16>
    %cst_76 = arith.constant dense<0.000000e+00> : vector<8x384xf32>
    %220 = tpu.matmul %219, %3, %cst_76 {dimension_numbers = #tpu.dot_dimension_numbers<[1], [0], [0], [1], [0, 0, 1, 1], [], []>} : vector<8x128xbf16>, vector<128x384xbf16>, vector<8x384xf32> -> vector<8x384xf32>
    %221 = arith.addf %220, %8 : vector<8x384xf32>
    %222 = vector.extract_strided_slice %218 {offsets = [0, 0], sizes = [8, 128], strides = [1, 1]} : vector<8x384xf32> to vector<8x128xf32>
    %223 = vector.extract_strided_slice %221 {offsets = [0, 0], sizes = [8, 128], strides = [1, 1]} : vector<8x384xf32> to vector<8x128xf32>
    %224 = arith.addf %222, %223 : vector<8x128xf32>
    %cst_77 = arith.constant 5.000000e-01 : f32
    %225 = vector.broadcast %cst_77 : f32 to vector<8x128xf32>
    %226 = arith.mulf %225, %224 : vector<8x128xf32>
    %227 = math.tanh %226 : vector<8x128xf32>
    %cst_78 = arith.constant 1.000000e+00 : f32
    %228 = vector.broadcast %cst_78 : f32 to vector<8x128xf32>
    %229 = arith.addf %227, %228 : vector<8x128xf32>
    %cst_79 = arith.constant 5.000000e-01 : f32
    %230 = vector.broadcast %cst_79 : f32 to vector<8x128xf32>
    %231 = arith.mulf %230, %229 : vector<8x128xf32>
    %232 = vector.extract_strided_slice %218 {offsets = [0, 128], sizes = [8, 128], strides = [1, 1]} : vector<8x384xf32> to vector<8x128xf32>
    %233 = vector.extract_strided_slice %221 {offsets = [0, 128], sizes = [8, 128], strides = [1, 1]} : vector<8x384xf32> to vector<8x128xf32>
    %234 = arith.addf %232, %233 : vector<8x128xf32>
    %cst_80 = arith.constant 5.000000e-01 : f32
    %235 = vector.broadcast %cst_80 : f32 to vector<8x128xf32>
    %236 = arith.mulf %235, %234 : vector<8x128xf32>
    %237 = math.tanh %236 : vector<8x128xf32>
    %cst_81 = arith.constant 1.000000e+00 : f32
    %238 = vector.broadcast %cst_81 : f32 to vector<8x128xf32>
    %239 = arith.addf %237, %238 : vector<8x128xf32>
    %cst_82 = arith.constant 5.000000e-01 : f32
    %240 = vector.broadcast %cst_82 : f32 to vector<8x128xf32>
    %241 = arith.mulf %240, %239 : vector<8x128xf32>
    %242 = vector.extract_strided_slice %218 {offsets = [0, 256], sizes = [8, 128], strides = [1, 1]} : vector<8x384xf32> to vector<8x128xf32>
    %243 = vector.extract_strided_slice %221 {offsets = [0, 256], sizes = [8, 128], strides = [1, 1]} : vector<8x384xf32> to vector<8x128xf32>
    %244 = arith.mulf %231, %243 : vector<8x128xf32>
    %245 = arith.addf %242, %244 : vector<8x128xf32>
    %246 = math.tanh %245 : vector<8x128xf32>
    %cst_83 = arith.constant 1.000000e+00 : f32
    %247 = vector.broadcast %cst_83 : f32 to vector<8x128xf32>
    %248 = arith.subf %247, %241 : vector<8x128xf32>
    %249 = arith.mulf %248, %246 : vector<8x128xf32>
    %250 = arith.mulf %241, %211 : vector<8x128xf32>
    %251 = arith.addf %249, %250 : vector<8x128xf32>
    %252 = arith.index_cast %c5_i32 : i32 to index
    %c0_84 = arith.constant 0 : index
    %c0_85 = arith.constant 0 : index
    %253 = vector.load %arg14[%252, %c0_84, %c0_85] : memref<8x8x128xf32, #tpu.memory_space<vmem>>, vector<1x8x128xf32>
    %254 = vector.shape_cast %253 : vector<1x8x128xf32> to vector<8x128xf32>
    %255 = vector.shape_cast %251 : vector<8x128xf32> to vector<1x8x128xf32>
    tpu.vector_store %arg14[%252, %c0_84, %c0_85], %255 {strides = array<i32>} : memref<8x8x128xf32, #tpu.memory_space<vmem>>, vector<1x8x128xf32>,
    %c6_i32 = arith.constant 6 : i32
    %256 = arith.index_cast %c6_i32 : i32 to index
    %c0_86 = arith.constant 0 : index
    %c0_87 = arith.constant 0 : index
    %257 = vector.load %arg2[%256, %c0_86, %c0_87] : memref<8x8x384xf32, #tpu.memory_space<vmem>>, vector<1x8x384xf32>
    %258 = vector.shape_cast %257 : vector<1x8x384xf32> to vector<8x384xf32>
    %259 = arith.truncf %251 : vector<8x128xf32> to vector<8x128xbf16>
    %cst_88 = arith.constant dense<0.000000e+00> : vector<8x384xf32>
    %260 = tpu.matmul %259, %3, %cst_88 {dimension_numbers = #tpu.dot_dimension_numbers<[1], [0], [0], [1], [0, 0, 1, 1], [], []>} : vector<8x128xbf16>, vector<128x384xbf16>, vector<8x384xf32> -> vector<8x384xf32>
    %261 = arith.addf %260, %8 : vector<8x384xf32>
    %262 = vector.extract_strided_slice %258 {offsets = [0, 0], sizes = [8, 128], strides = [1, 1]} : vector<8x384xf32> to vector<8x128xf32>
    %263 = vector.extract_strided_slice %261 {offsets = [0, 0], sizes = [8, 128], strides = [1, 1]} : vector<8x384xf32> to vector<8x128xf32>
    %264 = arith.addf %262, %263 : vector<8x128xf32>
    %cst_89 = arith.constant 5.000000e-01 : f32
    %265 = vector.broadcast %cst_89 : f32 to vector<8x128xf32>
    %266 = arith.mulf %265, %264 : vector<8x128xf32>
    %267 = math.tanh %266 : vector<8x128xf32>
    %cst_90 = arith.constant 1.000000e+00 : f32
    %268 = vector.broadcast %cst_90 : f32 to vector<8x128xf32>
    %269 = arith.addf %267, %268 : vector<8x128xf32>
    %cst_91 = arith.constant 5.000000e-01 : f32
    %270 = vector.broadcast %cst_91 : f32 to vector<8x128xf32>
    %271 = arith.mulf %270, %269 : vector<8x128xf32>
    %272 = vector.extract_strided_slice %258 {offsets = [0, 128], sizes = [8, 128], strides = [1, 1]} : vector<8x384xf32> to vector<8x128xf32>
    %273 = vector.extract_strided_slice %261 {offsets = [0, 128], sizes = [8, 128], strides = [1, 1]} : vector<8x384xf32> to vector<8x128xf32>
    %274 = arith.addf %272, %273 : vector<8x128xf32>
    %cst_92 = arith.constant 5.000000e-01 : f32
    %275 = vector.broadcast %cst_92 : f32 to vector<8x128xf32>
    %276 = arith.mulf %275, %274 : vector<8x128xf32>
    %277 = math.tanh %276 : vector<8x128xf32>
    %cst_93 = arith.constant 1.000000e+00 : f32
    %278 = vector.broadcast %cst_93 : f32 to vector<8x128xf32>
    %279 = arith.addf %277, %278 : vector<8x128xf32>
    %cst_94 = arith.constant 5.000000e-01 : f32
    %280 = vector.broadcast %cst_94 : f32 to vector<8x128xf32>
    %281 = arith.mulf %280, %279 : vector<8x128xf32>
    %282 = vector.extract_strided_slice %258 {offsets = [0, 256], sizes = [8, 128], strides = [1, 1]} : vector<8x384xf32> to vector<8x128xf32>
    %283 = vector.extract_strided_slice %261 {offsets = [0, 256], sizes = [8, 128], strides = [1, 1]} : vector<8x384xf32> to vector<8x128xf32>
    %284 = arith.mulf %271, %283 : vector<8x128xf32>
    %285 = arith.addf %282, %284 : vector<8x128xf32>
    %286 = math.tanh %285 : vector<8x128xf32>
    %cst_95 = arith.constant 1.000000e+00 : f32
    %287 = vector.broadcast %cst_95 : f32 to vector<8x128xf32>
    %288 = arith.subf %287, %281 : vector<8x128xf32>
    %289 = arith.mulf %288, %286 : vector<8x128xf32>
    %290 = arith.mulf %281, %251 : vector<8x128xf32>
    %291 = arith.addf %289, %290 : vector<8x128xf32>
    %292 = arith.index_cast %c6_i32 : i32 to index
    %c0_96 = arith.constant 0 : index
    %c0_97 = arith.constant 0 : index
    %293 = vector.load %arg14[%292, %c0_96, %c0_97] : memref<8x8x128xf32, #tpu.memory_space<vmem>>, vector<1x8x128xf32>
    %294 = vector.shape_cast %293 : vector<1x8x128xf32> to vector<8x128xf32>
    %295 = vector.shape_cast %291 : vector<8x128xf32> to vector<1x8x128xf32>
    tpu.vector_store %arg14[%292, %c0_96, %c0_97], %295 {strides = array<i32>} : memref<8x8x128xf32, #tpu.memory_space<vmem>>, vector<1x8x128xf32>,
    %c7_i32 = arith.constant 7 : i32
    %296 = arith.index_cast %c7_i32 : i32 to index
    %c0_98 = arith.constant 0 : index
    %c0_99 = arith.constant 0 : index
    %297 = vector.load %arg2[%296, %c0_98, %c0_99] : memref<8x8x384xf32, #tpu.memory_space<vmem>>, vector<1x8x384xf32>
    %298 = vector.shape_cast %297 : vector<1x8x384xf32> to vector<8x384xf32>
    %299 = arith.truncf %291 : vector<8x128xf32> to vector<8x128xbf16>
    %cst_100 = arith.constant dense<0.000000e+00> : vector<8x384xf32>
    %300 = tpu.matmul %299, %3, %cst_100 {dimension_numbers = #tpu.dot_dimension_numbers<[1], [0], [0], [1], [0, 0, 1, 1], [], []>} : vector<8x128xbf16>, vector<128x384xbf16>, vector<8x384xf32> -> vector<8x384xf32>
    %301 = arith.addf %300, %8 : vector<8x384xf32>
    %302 = vector.extract_strided_slice %298 {offsets = [0, 0], sizes = [8, 128], strides = [1, 1]} : vector<8x384xf32> to vector<8x128xf32>
    %303 = vector.extract_strided_slice %301 {offsets = [0, 0], sizes = [8, 128], strides = [1, 1]} : vector<8x384xf32> to vector<8x128xf32>
    %304 = arith.addf %302, %303 : vector<8x128xf32>
    %cst_101 = arith.constant 5.000000e-01 : f32
    %305 = vector.broadcast %cst_101 : f32 to vector<8x128xf32>
    %306 = arith.mulf %305, %304 : vector<8x128xf32>
    %307 = math.tanh %306 : vector<8x128xf32>
    %cst_102 = arith.constant 1.000000e+00 : f32
    %308 = vector.broadcast %cst_102 : f32 to vector<8x128xf32>
    %309 = arith.addf %307, %308 : vector<8x128xf32>
    %cst_103 = arith.constant 5.000000e-01 : f32
    %310 = vector.broadcast %cst_103 : f32 to vector<8x128xf32>
    %311 = arith.mulf %310, %309 : vector<8x128xf32>
    %312 = vector.extract_strided_slice %298 {offsets = [0, 128], sizes = [8, 128], strides = [1, 1]} : vector<8x384xf32> to vector<8x128xf32>
    %313 = vector.extract_strided_slice %301 {offsets = [0, 128], sizes = [8, 128], strides = [1, 1]} : vector<8x384xf32> to vector<8x128xf32>
    %314 = arith.addf %312, %313 : vector<8x128xf32>
    %cst_104 = arith.constant 5.000000e-01 : f32
    %315 = vector.broadcast %cst_104 : f32 to vector<8x128xf32>
    %316 = arith.mulf %315, %314 : vector<8x128xf32>
    %317 = math.tanh %316 : vector<8x128xf32>
    %cst_105 = arith.constant 1.000000e+00 : f32
    %318 = vector.broadcast %cst_105 : f32 to vector<8x128xf32>
    %319 = arith.addf %317, %318 : vector<8x128xf32>
    %cst_106 = arith.constant 5.000000e-01 : f32
    %320 = vector.broadcast %cst_106 : f32 to vector<8x128xf32>
    %321 = arith.mulf %320, %319 : vector<8x128xf32>
    %322 = vector.extract_strided_slice %298 {offsets = [0, 256], sizes = [8, 128], strides = [1, 1]} : vector<8x384xf32> to vector<8x128xf32>
    %323 = vector.extract_strided_slice %301 {offsets = [0, 256], sizes = [8, 128], strides = [1, 1]} : vector<8x384xf32> to vector<8x128xf32>
    %324 = arith.mulf %311, %323 : vector<8x128xf32>
    %325 = arith.addf %322, %324 : vector<8x128xf32>
    %326 = math.tanh %325 : vector<8x128xf32>
    %cst_107 = arith.constant 1.000000e+00 : f32
    %327 = vector.broadcast %cst_107 : f32 to vector<8x128xf32>
    %328 = arith.subf %327, %321 : vector<8x128xf32>
    %329 = arith.mulf %328, %326 : vector<8x128xf32>
    %330 = arith.mulf %321, %291 : vector<8x128xf32>
    %331 = arith.addf %329, %330 : vector<8x128xf32>
    %332 = arith.index_cast %c7_i32 : i32 to index
    %c0_108 = arith.constant 0 : index
    %c0_109 = arith.constant 0 : index
    %333 = vector.load %arg14[%332, %c0_108, %c0_109] : memref<8x8x128xf32, #tpu.memory_space<vmem>>, vector<1x8x128xf32>
    %334 = vector.shape_cast %333 : vector<1x8x128xf32> to vector<8x128xf32>
    %335 = vector.shape_cast %331 : vector<8x128xf32> to vector<1x8x128xf32>
    tpu.vector_store %arg14[%332, %c0_108, %c0_109], %335 {strides = array<i32>} : memref<8x8x128xf32, #tpu.memory_space<vmem>>, vector<1x8x128xf32>,
    %c8_i32 = arith.constant 8 : i32
    %c0_110 = arith.constant 0 : index
    %c0_111 = arith.constant 0 : index
    %336 = vector.load %arg12[%c0_110, %c0_111] : memref<8x128xf32, #tpu.memory_space<vmem>>, vector<8x128xf32>
    tpu.vector_store %arg12[%c0_110, %c0_111], %331 {strides = array<i32>} : memref<8x128xf32, #tpu.memory_space<vmem>>, vector<8x128xf32>,
    %c0_112 = arith.constant 0 : index
    %c0_113 = arith.constant 0 : index
    %c0_114 = arith.constant 0 : index
    %337 = vector.load %arg14[%c0_112, %c0_113, %c0_114] : memref<8x8x128xf32, #tpu.memory_space<vmem>>, vector<8x8x128xf32>
    %338 = vector.shape_cast %337 : vector<8x8x128xf32> to vector<64x128xf32>
    %339 = arith.truncf %338 : vector<64x128xf32> to vector<64x128xbf16>
    %cst_115 = arith.constant dense<0.000000e+00> : vector<64x384xf32>
    %340 = tpu.matmul %339, %4, %cst_115 {dimension_numbers = #tpu.dot_dimension_numbers<[1], [0], [0], [1], [0, 0, 1, 1], [], []>} : vector<64x128xbf16>, vector<128x384xbf16>, vector<64x384xf32> -> vector<64x384xf32>
    %341 = vector.shape_cast %340 : vector<64x384xf32> to vector<8x8x384xf32>
    %342 = vector.shape_cast %11 : vector<8x384xf32> to vector<1x8x384xf32>
    %343 = vector.broadcast %342 : vector<1x8x384xf32> to vector<8x8x384xf32>
    %344 = arith.addf %341, %343 : vector<8x8x384xf32>
    %c0_116 = arith.constant 0 : index
    %c0_117 = arith.constant 0 : index
    %c0_118 = arith.constant 0 : index
    %345 = vector.load %arg15[%c0_116, %c0_117, %c0_118] : memref<8x8x384xf32, #tpu.memory_space<vmem>>, vector<8x8x384xf32>
    tpu.vector_store %arg15[%c0_116, %c0_117, %c0_118], %344 {strides = array<i32>} : memref<8x8x384xf32, #tpu.memory_space<vmem>>, vector<8x8x384xf32>,
    %c0_119 = arith.constant 0 : index
    %c0_120 = arith.constant 0 : index
    %346 = vector.load %arg13[%c0_119, %c0_120] : memref<8x128xf32, #tpu.memory_space<vmem>>, vector<8x128xf32>
    %c0_i32_121 = arith.constant 0 : i32
    %347 = arith.index_cast %c0_i32_121 : i32 to index
    %c0_122 = arith.constant 0 : index
    %c0_123 = arith.constant 0 : index
    %348 = vector.load %arg15[%347, %c0_122, %c0_123] : memref<8x8x384xf32, #tpu.memory_space<vmem>>, vector<1x8x384xf32>
    %349 = vector.shape_cast %348 : vector<1x8x384xf32> to vector<8x384xf32>
    %350 = arith.truncf %346 : vector<8x128xf32> to vector<8x128xbf16>
    %cst_124 = arith.constant dense<0.000000e+00> : vector<8x384xf32>
    %351 = tpu.matmul %350, %5, %cst_124 {dimension_numbers = #tpu.dot_dimension_numbers<[1], [0], [0], [1], [0, 0, 1, 1], [], []>} : vector<8x128xbf16>, vector<128x384xbf16>, vector<8x384xf32> -> vector<8x384xf32>
    %352 = arith.addf %351, %14 : vector<8x384xf32>
    %353 = vector.extract_strided_slice %349 {offsets = [0, 0], sizes = [8, 128], strides = [1, 1]} : vector<8x384xf32> to vector<8x128xf32>
    %354 = vector.extract_strided_slice %352 {offsets = [0, 0], sizes = [8, 128], strides = [1, 1]} : vector<8x384xf32> to vector<8x128xf32>
    %355 = arith.addf %353, %354 : vector<8x128xf32>
    %cst_125 = arith.constant 5.000000e-01 : f32
    %356 = vector.broadcast %cst_125 : f32 to vector<8x128xf32>
    %357 = arith.mulf %356, %355 : vector<8x128xf32>
    %358 = math.tanh %357 : vector<8x128xf32>
    %cst_126 = arith.constant 1.000000e+00 : f32
    %359 = vector.broadcast %cst_126 : f32 to vector<8x128xf32>
    %360 = arith.addf %358, %359 : vector<8x128xf32>
    %cst_127 = arith.constant 5.000000e-01 : f32
    %361 = vector.broadcast %cst_127 : f32 to vector<8x128xf32>
    %362 = arith.mulf %361, %360 : vector<8x128xf32>
    %363 = vector.extract_strided_slice %349 {offsets = [0, 128], sizes = [8, 128], strides = [1, 1]} : vector<8x384xf32> to vector<8x128xf32>
    %364 = vector.extract_strided_slice %352 {offsets = [0, 128], sizes = [8, 128], strides = [1, 1]} : vector<8x384xf32> to vector<8x128xf32>
    %365 = arith.addf %363, %364 : vector<8x128xf32>
    %cst_128 = arith.constant 5.000000e-01 : f32
    %366 = vector.broadcast %cst_128 : f32 to vector<8x128xf32>
    %367 = arith.mulf %366, %365 : vector<8x128xf32>
    %368 = math.tanh %367 : vector<8x128xf32>
    %cst_129 = arith.constant 1.000000e+00 : f32
    %369 = vector.broadcast %cst_129 : f32 to vector<8x128xf32>
    %370 = arith.addf %368, %369 : vector<8x128xf32>
    %cst_130 = arith.constant 5.000000e-01 : f32
    %371 = vector.broadcast %cst_130 : f32 to vector<8x128xf32>
    %372 = arith.mulf %371, %370 : vector<8x128xf32>
    %373 = vector.extract_strided_slice %349 {offsets = [0, 256], sizes = [8, 128], strides = [1, 1]} : vector<8x384xf32> to vector<8x128xf32>
    %374 = vector.extract_strided_slice %352 {offsets = [0, 256], sizes = [8, 128], strides = [1, 1]} : vector<8x384xf32> to vector<8x128xf32>
    %375 = arith.mulf %362, %374 : vector<8x128xf32>
    %376 = arith.addf %373, %375 : vector<8x128xf32>
    %377 = math.tanh %376 : vector<8x128xf32>
    %cst_131 = arith.constant 1.000000e+00 : f32
    %378 = vector.broadcast %cst_131 : f32 to vector<8x128xf32>
    %379 = arith.subf %378, %372 : vector<8x128xf32>
    %380 = arith.mulf %379, %377 : vector<8x128xf32>
    %381 = arith.mulf %372, %346 : vector<8x128xf32>
    %382 = arith.addf %380, %381 : vector<8x128xf32>
    %383 = arith.index_cast %c0_i32_121 : i32 to index
    %c0_132 = arith.constant 0 : index
    %c0_133 = arith.constant 0 : index
    %384 = vector.load %arg9[%383, %c0_132, %c0_133] : memref<8x8x128xf32, #tpu.memory_space<vmem>>, vector<1x8x128xf32>
    %385 = vector.shape_cast %384 : vector<1x8x128xf32> to vector<8x128xf32>
    %386 = vector.shape_cast %382 : vector<8x128xf32> to vector<1x8x128xf32>
    tpu.vector_store %arg9[%383, %c0_132, %c0_133], %386 {strides = array<i32>} : memref<8x8x128xf32, #tpu.memory_space<vmem>>, vector<1x8x128xf32>,
    %c1_i32_134 = arith.constant 1 : i32
    %387 = arith.index_cast %c1_i32_134 : i32 to index
    %c0_135 = arith.constant 0 : index
    %c0_136 = arith.constant 0 : index
    %388 = vector.load %arg15[%387, %c0_135, %c0_136] : memref<8x8x384xf32, #tpu.memory_space<vmem>>, vector<1x8x384xf32>
    %389 = vector.shape_cast %388 : vector<1x8x384xf32> to vector<8x384xf32>
    %390 = arith.truncf %382 : vector<8x128xf32> to vector<8x128xbf16>
    %cst_137 = arith.constant dense<0.000000e+00> : vector<8x384xf32>
    %391 = tpu.matmul %390, %5, %cst_137 {dimension_numbers = #tpu.dot_dimension_numbers<[1], [0], [0], [1], [0, 0, 1, 1], [], []>} : vector<8x128xbf16>, vector<128x384xbf16>, vector<8x384xf32> -> vector<8x384xf32>
    %392 = arith.addf %391, %14 : vector<8x384xf32>
    %393 = vector.extract_strided_slice %389 {offsets = [0, 0], sizes = [8, 128], strides = [1, 1]} : vector<8x384xf32> to vector<8x128xf32>
    %394 = vector.extract_strided_slice %392 {offsets = [0, 0], sizes = [8, 128], strides = [1, 1]} : vector<8x384xf32> to vector<8x128xf32>
    %395 = arith.addf %393, %394 : vector<8x128xf32>
    %cst_138 = arith.constant 5.000000e-01 : f32
    %396 = vector.broadcast %cst_138 : f32 to vector<8x128xf32>
    %397 = arith.mulf %396, %395 : vector<8x128xf32>
    %398 = math.tanh %397 : vector<8x128xf32>
    %cst_139 = arith.constant 1.000000e+00 : f32
    %399 = vector.broadcast %cst_139 : f32 to vector<8x128xf32>
    %400 = arith.addf %398, %399 : vector<8x128xf32>
    %cst_140 = arith.constant 5.000000e-01 : f32
    %401 = vector.broadcast %cst_140 : f32 to vector<8x128xf32>
    %402 = arith.mulf %401, %400 : vector<8x128xf32>
    %403 = vector.extract_strided_slice %389 {offsets = [0, 128], sizes = [8, 128], strides = [1, 1]} : vector<8x384xf32> to vector<8x128xf32>
    %404 = vector.extract_strided_slice %392 {offsets = [0, 128], sizes = [8, 128], strides = [1, 1]} : vector<8x384xf32> to vector<8x128xf32>
    %405 = arith.addf %403, %404 : vector<8x128xf32>
    %cst_141 = arith.constant 5.000000e-01 : f32
    %406 = vector.broadcast %cst_141 : f32 to vector<8x128xf32>
    %407 = arith.mulf %406, %405 : vector<8x128xf32>
    %408 = math.tanh %407 : vector<8x128xf32>
    %cst_142 = arith.constant 1.000000e+00 : f32
    %409 = vector.broadcast %cst_142 : f32 to vector<8x128xf32>
    %410 = arith.addf %408, %409 : vector<8x128xf32>
    %cst_143 = arith.constant 5.000000e-01 : f32
    %411 = vector.broadcast %cst_143 : f32 to vector<8x128xf32>
    %412 = arith.mulf %411, %410 : vector<8x128xf32>
    %413 = vector.extract_strided_slice %389 {offsets = [0, 256], sizes = [8, 128], strides = [1, 1]} : vector<8x384xf32> to vector<8x128xf32>
    %414 = vector.extract_strided_slice %392 {offsets = [0, 256], sizes = [8, 128], strides = [1, 1]} : vector<8x384xf32> to vector<8x128xf32>
    %415 = arith.mulf %402, %414 : vector<8x128xf32>
    %416 = arith.addf %413, %415 : vector<8x128xf32>
    %417 = math.tanh %416 : vector<8x128xf32>
    %cst_144 = arith.constant 1.000000e+00 : f32
    %418 = vector.broadcast %cst_144 : f32 to vector<8x128xf32>
    %419 = arith.subf %418, %412 : vector<8x128xf32>
    %420 = arith.mulf %419, %417 : vector<8x128xf32>
    %421 = arith.mulf %412, %382 : vector<8x128xf32>
    %422 = arith.addf %420, %421 : vector<8x128xf32>
    %423 = arith.index_cast %c1_i32_134 : i32 to index
    %c0_145 = arith.constant 0 : index
    %c0_146 = arith.constant 0 : index
    %424 = vector.load %arg9[%423, %c0_145, %c0_146] : memref<8x8x128xf32, #tpu.memory_space<vmem>>, vector<1x8x128xf32>
    %425 = vector.shape_cast %424 : vector<1x8x128xf32> to vector<8x128xf32>
    %426 = vector.shape_cast %422 : vector<8x128xf32> to vector<1x8x128xf32>
    tpu.vector_store %arg9[%423, %c0_145, %c0_146], %426 {strides = array<i32>} : memref<8x8x128xf32, #tpu.memory_space<vmem>>, vector<1x8x128xf32>,
    %c2_i32_147 = arith.constant 2 : i32
    %427 = arith.index_cast %c2_i32_147 : i32 to index
    %c0_148 = arith.constant 0 : index
    %c0_149 = arith.constant 0 : index
    %428 = vector.load %arg15[%427, %c0_148, %c0_149] : memref<8x8x384xf32, #tpu.memory_space<vmem>>, vector<1x8x384xf32>
    %429 = vector.shape_cast %428 : vector<1x8x384xf32> to vector<8x384xf32>
    %430 = arith.truncf %422 : vector<8x128xf32> to vector<8x128xbf16>
    %cst_150 = arith.constant dense<0.000000e+00> : vector<8x384xf32>
    %431 = tpu.matmul %430, %5, %cst_150 {dimension_numbers = #tpu.dot_dimension_numbers<[1], [0], [0], [1], [0, 0, 1, 1], [], []>} : vector<8x128xbf16>, vector<128x384xbf16>, vector<8x384xf32> -> vector<8x384xf32>
    %432 = arith.addf %431, %14 : vector<8x384xf32>
    %433 = vector.extract_strided_slice %429 {offsets = [0, 0], sizes = [8, 128], strides = [1, 1]} : vector<8x384xf32> to vector<8x128xf32>
    %434 = vector.extract_strided_slice %432 {offsets = [0, 0], sizes = [8, 128], strides = [1, 1]} : vector<8x384xf32> to vector<8x128xf32>
    %435 = arith.addf %433, %434 : vector<8x128xf32>
    %cst_151 = arith.constant 5.000000e-01 : f32
    %436 = vector.broadcast %cst_151 : f32 to vector<8x128xf32>
    %437 = arith.mulf %436, %435 : vector<8x128xf32>
    %438 = math.tanh %437 : vector<8x128xf32>
    %cst_152 = arith.constant 1.000000e+00 : f32
    %439 = vector.broadcast %cst_152 : f32 to vector<8x128xf32>
    %440 = arith.addf %438, %439 : vector<8x128xf32>
    %cst_153 = arith.constant 5.000000e-01 : f32
    %441 = vector.broadcast %cst_153 : f32 to vector<8x128xf32>
    %442 = arith.mulf %441, %440 : vector<8x128xf32>
    %443 = vector.extract_strided_slice %429 {offsets = [0, 128], sizes = [8, 128], strides = [1, 1]} : vector<8x384xf32> to vector<8x128xf32>
    %444 = vector.extract_strided_slice %432 {offsets = [0, 128], sizes = [8, 128], strides = [1, 1]} : vector<8x384xf32> to vector<8x128xf32>
    %445 = arith.addf %443, %444 : vector<8x128xf32>
    %cst_154 = arith.constant 5.000000e-01 : f32
    %446 = vector.broadcast %cst_154 : f32 to vector<8x128xf32>
    %447 = arith.mulf %446, %445 : vector<8x128xf32>
    %448 = math.tanh %447 : vector<8x128xf32>
    %cst_155 = arith.constant 1.000000e+00 : f32
    %449 = vector.broadcast %cst_155 : f32 to vector<8x128xf32>
    %450 = arith.addf %448, %449 : vector<8x128xf32>
    %cst_156 = arith.constant 5.000000e-01 : f32
    %451 = vector.broadcast %cst_156 : f32 to vector<8x128xf32>
    %452 = arith.mulf %451, %450 : vector<8x128xf32>
    %453 = vector.extract_strided_slice %429 {offsets = [0, 256], sizes = [8, 128], strides = [1, 1]} : vector<8x384xf32> to vector<8x128xf32>
    %454 = vector.extract_strided_slice %432 {offsets = [0, 256], sizes = [8, 128], strides = [1, 1]} : vector<8x384xf32> to vector<8x128xf32>
    %455 = arith.mulf %442, %454 : vector<8x128xf32>
    %456 = arith.addf %453, %455 : vector<8x128xf32>
    %457 = math.tanh %456 : vector<8x128xf32>
    %cst_157 = arith.constant 1.000000e+00 : f32
    %458 = vector.broadcast %cst_157 : f32 to vector<8x128xf32>
    %459 = arith.subf %458, %452 : vector<8x128xf32>
    %460 = arith.mulf %459, %457 : vector<8x128xf32>
    %461 = arith.mulf %452, %422 : vector<8x128xf32>
    %462 = arith.addf %460, %461 : vector<8x128xf32>
    %463 = arith.index_cast %c2_i32_147 : i32 to index
    %c0_158 = arith.constant 0 : index
    %c0_159 = arith.constant 0 : index
    %464 = vector.load %arg9[%463, %c0_158, %c0_159] : memref<8x8x128xf32, #tpu.memory_space<vmem>>, vector<1x8x128xf32>
    %465 = vector.shape_cast %464 : vector<1x8x128xf32> to vector<8x128xf32>
    %466 = vector.shape_cast %462 : vector<8x128xf32> to vector<1x8x128xf32>
    tpu.vector_store %arg9[%463, %c0_158, %c0_159], %466 {strides = array<i32>} : memref<8x8x128xf32, #tpu.memory_space<vmem>>, vector<1x8x128xf32>,
    %c3_i32_160 = arith.constant 3 : i32
    %467 = arith.index_cast %c3_i32_160 : i32 to index
    %c0_161 = arith.constant 0 : index
    %c0_162 = arith.constant 0 : index
    %468 = vector.load %arg15[%467, %c0_161, %c0_162] : memref<8x8x384xf32, #tpu.memory_space<vmem>>, vector<1x8x384xf32>
    %469 = vector.shape_cast %468 : vector<1x8x384xf32> to vector<8x384xf32>
    %470 = arith.truncf %462 : vector<8x128xf32> to vector<8x128xbf16>
    %cst_163 = arith.constant dense<0.000000e+00> : vector<8x384xf32>
    %471 = tpu.matmul %470, %5, %cst_163 {dimension_numbers = #tpu.dot_dimension_numbers<[1], [0], [0], [1], [0, 0, 1, 1], [], []>} : vector<8x128xbf16>, vector<128x384xbf16>, vector<8x384xf32> -> vector<8x384xf32>
    %472 = arith.addf %471, %14 : vector<8x384xf32>
    %473 = vector.extract_strided_slice %469 {offsets = [0, 0], sizes = [8, 128], strides = [1, 1]} : vector<8x384xf32> to vector<8x128xf32>
    %474 = vector.extract_strided_slice %472 {offsets = [0, 0], sizes = [8, 128], strides = [1, 1]} : vector<8x384xf32> to vector<8x128xf32>
    %475 = arith.addf %473, %474 : vector<8x128xf32>
    %cst_164 = arith.constant 5.000000e-01 : f32
    %476 = vector.broadcast %cst_164 : f32 to vector<8x128xf32>
    %477 = arith.mulf %476, %475 : vector<8x128xf32>
    %478 = math.tanh %477 : vector<8x128xf32>
    %cst_165 = arith.constant 1.000000e+00 : f32
    %479 = vector.broadcast %cst_165 : f32 to vector<8x128xf32>
    %480 = arith.addf %478, %479 : vector<8x128xf32>
    %cst_166 = arith.constant 5.000000e-01 : f32
    %481 = vector.broadcast %cst_166 : f32 to vector<8x128xf32>
    %482 = arith.mulf %481, %480 : vector<8x128xf32>
    %483 = vector.extract_strided_slice %469 {offsets = [0, 128], sizes = [8, 128], strides = [1, 1]} : vector<8x384xf32> to vector<8x128xf32>
    %484 = vector.extract_strided_slice %472 {offsets = [0, 128], sizes = [8, 128], strides = [1, 1]} : vector<8x384xf32> to vector<8x128xf32>
    %485 = arith.addf %483, %484 : vector<8x128xf32>
    %cst_167 = arith.constant 5.000000e-01 : f32
    %486 = vector.broadcast %cst_167 : f32 to vector<8x128xf32>
    %487 = arith.mulf %486, %485 : vector<8x128xf32>
    %488 = math.tanh %487 : vector<8x128xf32>
    %cst_168 = arith.constant 1.000000e+00 : f32
    %489 = vector.broadcast %cst_168 : f32 to vector<8x128xf32>
    %490 = arith.addf %488, %489 : vector<8x128xf32>
    %cst_169 = arith.constant 5.000000e-01 : f32
    %491 = vector.broadcast %cst_169 : f32 to vector<8x128xf32>
    %492 = arith.mulf %491, %490 : vector<8x128xf32>
    %493 = vector.extract_strided_slice %469 {offsets = [0, 256], sizes = [8, 128], strides = [1, 1]} : vector<8x384xf32> to vector<8x128xf32>
    %494 = vector.extract_strided_slice %472 {offsets = [0, 256], sizes = [8, 128], strides = [1, 1]} : vector<8x384xf32> to vector<8x128xf32>
    %495 = arith.mulf %482, %494 : vector<8x128xf32>
    %496 = arith.addf %493, %495 : vector<8x128xf32>
    %497 = math.tanh %496 : vector<8x128xf32>
    %cst_170 = arith.constant 1.000000e+00 : f32
    %498 = vector.broadcast %cst_170 : f32 to vector<8x128xf32>
    %499 = arith.subf %498, %492 : vector<8x128xf32>
    %500 = arith.mulf %499, %497 : vector<8x128xf32>
    %501 = arith.mulf %492, %462 : vector<8x128xf32>
    %502 = arith.addf %500, %501 : vector<8x128xf32>
    %503 = arith.index_cast %c3_i32_160 : i32 to index
    %c0_171 = arith.constant 0 : index
    %c0_172 = arith.constant 0 : index
    %504 = vector.load %arg9[%503, %c0_171, %c0_172] : memref<8x8x128xf32, #tpu.memory_space<vmem>>, vector<1x8x128xf32>
    %505 = vector.shape_cast %504 : vector<1x8x128xf32> to vector<8x128xf32>
    %506 = vector.shape_cast %502 : vector<8x128xf32> to vector<1x8x128xf32>
    tpu.vector_store %arg9[%503, %c0_171, %c0_172], %506 {strides = array<i32>} : memref<8x8x128xf32, #tpu.memory_space<vmem>>, vector<1x8x128xf32>,
    %c4_i32_173 = arith.constant 4 : i32
    %507 = arith.index_cast %c4_i32_173 : i32 to index
    %c0_174 = arith.constant 0 : index
    %c0_175 = arith.constant 0 : index
    %508 = vector.load %arg15[%507, %c0_174, %c0_175] : memref<8x8x384xf32, #tpu.memory_space<vmem>>, vector<1x8x384xf32>
    %509 = vector.shape_cast %508 : vector<1x8x384xf32> to vector<8x384xf32>
    %510 = arith.truncf %502 : vector<8x128xf32> to vector<8x128xbf16>
    %cst_176 = arith.constant dense<0.000000e+00> : vector<8x384xf32>
    %511 = tpu.matmul %510, %5, %cst_176 {dimension_numbers = #tpu.dot_dimension_numbers<[1], [0], [0], [1], [0, 0, 1, 1], [], []>} : vector<8x128xbf16>, vector<128x384xbf16>, vector<8x384xf32> -> vector<8x384xf32>
    %512 = arith.addf %511, %14 : vector<8x384xf32>
    %513 = vector.extract_strided_slice %509 {offsets = [0, 0], sizes = [8, 128], strides = [1, 1]} : vector<8x384xf32> to vector<8x128xf32>
    %514 = vector.extract_strided_slice %512 {offsets = [0, 0], sizes = [8, 128], strides = [1, 1]} : vector<8x384xf32> to vector<8x128xf32>
    %515 = arith.addf %513, %514 : vector<8x128xf32>
    %cst_177 = arith.constant 5.000000e-01 : f32
    %516 = vector.broadcast %cst_177 : f32 to vector<8x128xf32>
    %517 = arith.mulf %516, %515 : vector<8x128xf32>
    %518 = math.tanh %517 : vector<8x128xf32>
    %cst_178 = arith.constant 1.000000e+00 : f32
    %519 = vector.broadcast %cst_178 : f32 to vector<8x128xf32>
    %520 = arith.addf %518, %519 : vector<8x128xf32>
    %cst_179 = arith.constant 5.000000e-01 : f32
    %521 = vector.broadcast %cst_179 : f32 to vector<8x128xf32>
    %522 = arith.mulf %521, %520 : vector<8x128xf32>
    %523 = vector.extract_strided_slice %509 {offsets = [0, 128], sizes = [8, 128], strides = [1, 1]} : vector<8x384xf32> to vector<8x128xf32>
    %524 = vector.extract_strided_slice %512 {offsets = [0, 128], sizes = [8, 128], strides = [1, 1]} : vector<8x384xf32> to vector<8x128xf32>
    %525 = arith.addf %523, %524 : vector<8x128xf32>
    %cst_180 = arith.constant 5.000000e-01 : f32
    %526 = vector.broadcast %cst_180 : f32 to vector<8x128xf32>
    %527 = arith.mulf %526, %525 : vector<8x128xf32>
    %528 = math.tanh %527 : vector<8x128xf32>
    %cst_181 = arith.constant 1.000000e+00 : f32
    %529 = vector.broadcast %cst_181 : f32 to vector<8x128xf32>
    %530 = arith.addf %528, %529 : vector<8x128xf32>
    %cst_182 = arith.constant 5.000000e-01 : f32
    %531 = vector.broadcast %cst_182 : f32 to vector<8x128xf32>
    %532 = arith.mulf %531, %530 : vector<8x128xf32>
    %533 = vector.extract_strided_slice %509 {offsets = [0, 256], sizes = [8, 128], strides = [1, 1]} : vector<8x384xf32> to vector<8x128xf32>
    %534 = vector.extract_strided_slice %512 {offsets = [0, 256], sizes = [8, 128], strides = [1, 1]} : vector<8x384xf32> to vector<8x128xf32>
    %535 = arith.mulf %522, %534 : vector<8x128xf32>
    %536 = arith.addf %533, %535 : vector<8x128xf32>
    %537 = math.tanh %536 : vector<8x128xf32>
    %cst_183 = arith.constant 1.000000e+00 : f32
    %538 = vector.broadcast %cst_183 : f32 to vector<8x128xf32>
    %539 = arith.subf %538, %532 : vector<8x128xf32>
    %540 = arith.mulf %539, %537 : vector<8x128xf32>
    %541 = arith.mulf %532, %502 : vector<8x128xf32>
    %542 = arith.addf %540, %541 : vector<8x128xf32>
    %543 = arith.index_cast %c4_i32_173 : i32 to index
    %c0_184 = arith.constant 0 : index
    %c0_185 = arith.constant 0 : index
    %544 = vector.load %arg9[%543, %c0_184, %c0_185] : memref<8x8x128xf32, #tpu.memory_space<vmem>>, vector<1x8x128xf32>
    %545 = vector.shape_cast %544 : vector<1x8x128xf32> to vector<8x128xf32>
    %546 = vector.shape_cast %542 : vector<8x128xf32> to vector<1x8x128xf32>
    tpu.vector_store %arg9[%543, %c0_184, %c0_185], %546 {strides = array<i32>} : memref<8x8x128xf32, #tpu.memory_space<vmem>>, vector<1x8x128xf32>,
    %c5_i32_186 = arith.constant 5 : i32
    %547 = arith.index_cast %c5_i32_186 : i32 to index
    %c0_187 = arith.constant 0 : index
    %c0_188 = arith.constant 0 : index
    %548 = vector.load %arg15[%547, %c0_187, %c0_188] : memref<8x8x384xf32, #tpu.memory_space<vmem>>, vector<1x8x384xf32>
    %549 = vector.shape_cast %548 : vector<1x8x384xf32> to vector<8x384xf32>
    %550 = arith.truncf %542 : vector<8x128xf32> to vector<8x128xbf16>
    %cst_189 = arith.constant dense<0.000000e+00> : vector<8x384xf32>
    %551 = tpu.matmul %550, %5, %cst_189 {dimension_numbers = #tpu.dot_dimension_numbers<[1], [0], [0], [1], [0, 0, 1, 1], [], []>} : vector<8x128xbf16>, vector<128x384xbf16>, vector<8x384xf32> -> vector<8x384xf32>
    %552 = arith.addf %551, %14 : vector<8x384xf32>
    %553 = vector.extract_strided_slice %549 {offsets = [0, 0], sizes = [8, 128], strides = [1, 1]} : vector<8x384xf32> to vector<8x128xf32>
    %554 = vector.extract_strided_slice %552 {offsets = [0, 0], sizes = [8, 128], strides = [1, 1]} : vector<8x384xf32> to vector<8x128xf32>
    %555 = arith.addf %553, %554 : vector<8x128xf32>
    %cst_190 = arith.constant 5.000000e-01 : f32
    %556 = vector.broadcast %cst_190 : f32 to vector<8x128xf32>
    %557 = arith.mulf %556, %555 : vector<8x128xf32>
    %558 = math.tanh %557 : vector<8x128xf32>
    %cst_191 = arith.constant 1.000000e+00 : f32
    %559 = vector.broadcast %cst_191 : f32 to vector<8x128xf32>
    %560 = arith.addf %558, %559 : vector<8x128xf32>
    %cst_192 = arith.constant 5.000000e-01 : f32
    %561 = vector.broadcast %cst_192 : f32 to vector<8x128xf32>
    %562 = arith.mulf %561, %560 : vector<8x128xf32>
    %563 = vector.extract_strided_slice %549 {offsets = [0, 128], sizes = [8, 128], strides = [1, 1]} : vector<8x384xf32> to vector<8x128xf32>
    %564 = vector.extract_strided_slice %552 {offsets = [0, 128], sizes = [8, 128], strides = [1, 1]} : vector<8x384xf32> to vector<8x128xf32>
    %565 = arith.addf %563, %564 : vector<8x128xf32>
    %cst_193 = arith.constant 5.000000e-01 : f32
    %566 = vector.broadcast %cst_193 : f32 to vector<8x128xf32>
    %567 = arith.mulf %566, %565 : vector<8x128xf32>
    %568 = math.tanh %567 : vector<8x128xf32>
    %cst_194 = arith.constant 1.000000e+00 : f32
    %569 = vector.broadcast %cst_194 : f32 to vector<8x128xf32>
    %570 = arith.addf %568, %569 : vector<8x128xf32>
    %cst_195 = arith.constant 5.000000e-01 : f32
    %571 = vector.broadcast %cst_195 : f32 to vector<8x128xf32>
    %572 = arith.mulf %571, %570 : vector<8x128xf32>
    %573 = vector.extract_strided_slice %549 {offsets = [0, 256], sizes = [8, 128], strides = [1, 1]} : vector<8x384xf32> to vector<8x128xf32>
    %574 = vector.extract_strided_slice %552 {offsets = [0, 256], sizes = [8, 128], strides = [1, 1]} : vector<8x384xf32> to vector<8x128xf32>
    %575 = arith.mulf %562, %574 : vector<8x128xf32>
    %576 = arith.addf %573, %575 : vector<8x128xf32>
    %577 = math.tanh %576 : vector<8x128xf32>
    %cst_196 = arith.constant 1.000000e+00 : f32
    %578 = vector.broadcast %cst_196 : f32 to vector<8x128xf32>
    %579 = arith.subf %578, %572 : vector<8x128xf32>
    %580 = arith.mulf %579, %577 : vector<8x128xf32>
    %581 = arith.mulf %572, %542 : vector<8x128xf32>
    %582 = arith.addf %580, %581 : vector<8x128xf32>
    %583 = arith.index_cast %c5_i32_186 : i32 to index
    %c0_197 = arith.constant 0 : index
    %c0_198 = arith.constant 0 : index
    %584 = vector.load %arg9[%583, %c0_197, %c0_198] : memref<8x8x128xf32, #tpu.memory_space<vmem>>, vector<1x8x128xf32>
    %585 = vector.shape_cast %584 : vector<1x8x128xf32> to vector<8x128xf32>
    %586 = vector.shape_cast %582 : vector<8x128xf32> to vector<1x8x128xf32>
    tpu.vector_store %arg9[%583, %c0_197, %c0_198], %586 {strides = array<i32>} : memref<8x8x128xf32, #tpu.memory_space<vmem>>, vector<1x8x128xf32>,
    %c6_i32_199 = arith.constant 6 : i32
    %587 = arith.index_cast %c6_i32_199 : i32 to index
    %c0_200 = arith.constant 0 : index
    %c0_201 = arith.constant 0 : index
    %588 = vector.load %arg15[%587, %c0_200, %c0_201] : memref<8x8x384xf32, #tpu.memory_space<vmem>>, vector<1x8x384xf32>
    %589 = vector.shape_cast %588 : vector<1x8x384xf32> to vector<8x384xf32>
    %590 = arith.truncf %582 : vector<8x128xf32> to vector<8x128xbf16>
    %cst_202 = arith.constant dense<0.000000e+00> : vector<8x384xf32>
    %591 = tpu.matmul %590, %5, %cst_202 {dimension_numbers = #tpu.dot_dimension_numbers<[1], [0], [0], [1], [0, 0, 1, 1], [], []>} : vector<8x128xbf16>, vector<128x384xbf16>, vector<8x384xf32> -> vector<8x384xf32>
    %592 = arith.addf %591, %14 : vector<8x384xf32>
    %593 = vector.extract_strided_slice %589 {offsets = [0, 0], sizes = [8, 128], strides = [1, 1]} : vector<8x384xf32> to vector<8x128xf32>
    %594 = vector.extract_strided_slice %592 {offsets = [0, 0], sizes = [8, 128], strides = [1, 1]} : vector<8x384xf32> to vector<8x128xf32>
    %595 = arith.addf %593, %594 : vector<8x128xf32>
    %cst_203 = arith.constant 5.000000e-01 : f32
    %596 = vector.broadcast %cst_203 : f32 to vector<8x128xf32>
    %597 = arith.mulf %596, %595 : vector<8x128xf32>
    %598 = math.tanh %597 : vector<8x128xf32>
    %cst_204 = arith.constant 1.000000e+00 : f32
    %599 = vector.broadcast %cst_204 : f32 to vector<8x128xf32>
    %600 = arith.addf %598, %599 : vector<8x128xf32>
    %cst_205 = arith.constant 5.000000e-01 : f32
    %601 = vector.broadcast %cst_205 : f32 to vector<8x128xf32>
    %602 = arith.mulf %601, %600 : vector<8x128xf32>
    %603 = vector.extract_strided_slice %589 {offsets = [0, 128], sizes = [8, 128], strides = [1, 1]} : vector<8x384xf32> to vector<8x128xf32>
    %604 = vector.extract_strided_slice %592 {offsets = [0, 128], sizes = [8, 128], strides = [1, 1]} : vector<8x384xf32> to vector<8x128xf32>
    %605 = arith.addf %603, %604 : vector<8x128xf32>
    %cst_206 = arith.constant 5.000000e-01 : f32
    %606 = vector.broadcast %cst_206 : f32 to vector<8x128xf32>
    %607 = arith.mulf %606, %605 : vector<8x128xf32>
    %608 = math.tanh %607 : vector<8x128xf32>
    %cst_207 = arith.constant 1.000000e+00 : f32
    %609 = vector.broadcast %cst_207 : f32 to vector<8x128xf32>
    %610 = arith.addf %608, %609 : vector<8x128xf32>
    %cst_208 = arith.constant 5.000000e-01 : f32
    %611 = vector.broadcast %cst_208 : f32 to vector<8x128xf32>
    %612 = arith.mulf %611, %610 : vector<8x128xf32>
    %613 = vector.extract_strided_slice %589 {offsets = [0, 256], sizes = [8, 128], strides = [1, 1]} : vector<8x384xf32> to vector<8x128xf32>
    %614 = vector.extract_strided_slice %592 {offsets = [0, 256], sizes = [8, 128], strides = [1, 1]} : vector<8x384xf32> to vector<8x128xf32>
    %615 = arith.mulf %602, %614 : vector<8x128xf32>
    %616 = arith.addf %613, %615 : vector<8x128xf32>
    %617 = math.tanh %616 : vector<8x128xf32>
    %cst_209 = arith.constant 1.000000e+00 : f32
    %618 = vector.broadcast %cst_209 : f32 to vector<8x128xf32>
    %619 = arith.subf %618, %612 : vector<8x128xf32>
    %620 = arith.mulf %619, %617 : vector<8x128xf32>
    %621 = arith.mulf %612, %582 : vector<8x128xf32>
    %622 = arith.addf %620, %621 : vector<8x128xf32>
    %623 = arith.index_cast %c6_i32_199 : i32 to index
    %c0_210 = arith.constant 0 : index
    %c0_211 = arith.constant 0 : index
    %624 = vector.load %arg9[%623, %c0_210, %c0_211] : memref<8x8x128xf32, #tpu.memory_space<vmem>>, vector<1x8x128xf32>
    %625 = vector.shape_cast %624 : vector<1x8x128xf32> to vector<8x128xf32>
    %626 = vector.shape_cast %622 : vector<8x128xf32> to vector<1x8x128xf32>
    tpu.vector_store %arg9[%623, %c0_210, %c0_211], %626 {strides = array<i32>} : memref<8x8x128xf32, #tpu.memory_space<vmem>>, vector<1x8x128xf32>,
    %c7_i32_212 = arith.constant 7 : i32
    %627 = arith.index_cast %c7_i32_212 : i32 to index
    %c0_213 = arith.constant 0 : index
    %c0_214 = arith.constant 0 : index
    %628 = vector.load %arg15[%627, %c0_213, %c0_214] : memref<8x8x384xf32, #tpu.memory_space<vmem>>, vector<1x8x384xf32>
    %629 = vector.shape_cast %628 : vector<1x8x384xf32> to vector<8x384xf32>
    %630 = arith.truncf %622 : vector<8x128xf32> to vector<8x128xbf16>
    %cst_215 = arith.constant dense<0.000000e+00> : vector<8x384xf32>
    %631 = tpu.matmul %630, %5, %cst_215 {dimension_numbers = #tpu.dot_dimension_numbers<[1], [0], [0], [1], [0, 0, 1, 1], [], []>} : vector<8x128xbf16>, vector<128x384xbf16>, vector<8x384xf32> -> vector<8x384xf32>
    %632 = arith.addf %631, %14 : vector<8x384xf32>
    %633 = vector.extract_strided_slice %629 {offsets = [0, 0], sizes = [8, 128], strides = [1, 1]} : vector<8x384xf32> to vector<8x128xf32>
    %634 = vector.extract_strided_slice %632 {offsets = [0, 0], sizes = [8, 128], strides = [1, 1]} : vector<8x384xf32> to vector<8x128xf32>
    %635 = arith.addf %633, %634 : vector<8x128xf32>
    %cst_216 = arith.constant 5.000000e-01 : f32
    %636 = vector.broadcast %cst_216 : f32 to vector<8x128xf32>
    %637 = arith.mulf %636, %635 : vector<8x128xf32>
    %638 = math.tanh %637 : vector<8x128xf32>
    %cst_217 = arith.constant 1.000000e+00 : f32
    %639 = vector.broadcast %cst_217 : f32 to vector<8x128xf32>
    %640 = arith.addf %638, %639 : vector<8x128xf32>
    %cst_218 = arith.constant 5.000000e-01 : f32
    %641 = vector.broadcast %cst_218 : f32 to vector<8x128xf32>
    %642 = arith.mulf %641, %640 : vector<8x128xf32>
    %643 = vector.extract_strided_slice %629 {offsets = [0, 128], sizes = [8, 128], strides = [1, 1]} : vector<8x384xf32> to vector<8x128xf32>
    %644 = vector.extract_strided_slice %632 {offsets = [0, 128], sizes = [8, 128], strides = [1, 1]} : vector<8x384xf32> to vector<8x128xf32>
    %645 = arith.addf %643, %644 : vector<8x128xf32>
    %cst_219 = arith.constant 5.000000e-01 : f32
    %646 = vector.broadcast %cst_219 : f32 to vector<8x128xf32>
    %647 = arith.mulf %646, %645 : vector<8x128xf32>
    %648 = math.tanh %647 : vector<8x128xf32>
    %cst_220 = arith.constant 1.000000e+00 : f32
    %649 = vector.broadcast %cst_220 : f32 to vector<8x128xf32>
    %650 = arith.addf %648, %649 : vector<8x128xf32>
    %cst_221 = arith.constant 5.000000e-01 : f32
    %651 = vector.broadcast %cst_221 : f32 to vector<8x128xf32>
    %652 = arith.mulf %651, %650 : vector<8x128xf32>
    %653 = vector.extract_strided_slice %629 {offsets = [0, 256], sizes = [8, 128], strides = [1, 1]} : vector<8x384xf32> to vector<8x128xf32>
    %654 = vector.extract_strided_slice %632 {offsets = [0, 256], sizes = [8, 128], strides = [1, 1]} : vector<8x384xf32> to vector<8x128xf32>
    %655 = arith.mulf %642, %654 : vector<8x128xf32>
    %656 = arith.addf %653, %655 : vector<8x128xf32>
    %657 = math.tanh %656 : vector<8x128xf32>
    %cst_222 = arith.constant 1.000000e+00 : f32
    %658 = vector.broadcast %cst_222 : f32 to vector<8x128xf32>
    %659 = arith.subf %658, %652 : vector<8x128xf32>
    %660 = arith.mulf %659, %657 : vector<8x128xf32>
    %661 = arith.mulf %652, %622 : vector<8x128xf32>
    %662 = arith.addf %660, %661 : vector<8x128xf32>
    %663 = arith.index_cast %c7_i32_212 : i32 to index
    %c0_223 = arith.constant 0 : index
    %c0_224 = arith.constant 0 : index
    %664 = vector.load %arg9[%663, %c0_223, %c0_224] : memref<8x8x128xf32, #tpu.memory_space<vmem>>, vector<1x8x128xf32>
    %665 = vector.shape_cast %664 : vector<1x8x128xf32> to vector<8x128xf32>
    %666 = vector.shape_cast %662 : vector<8x128xf32> to vector<1x8x128xf32>
    tpu.vector_store %arg9[%663, %c0_223, %c0_224], %666 {strides = array<i32>} : memref<8x8x128xf32, #tpu.memory_space<vmem>>, vector<1x8x128xf32>,
    %c8_i32_225 = arith.constant 8 : i32
    %c0_226 = arith.constant 0 : index
    %c0_227 = arith.constant 0 : index
    %667 = vector.load %arg13[%c0_226, %c0_227] : memref<8x128xf32, #tpu.memory_space<vmem>>, vector<8x128xf32>
    tpu.vector_store %arg13[%c0_226, %c0_227], %662 {strides = array<i32>} : memref<8x128xf32, #tpu.memory_space<vmem>>, vector<8x128xf32>,
    %c0_i32_228 = arith.constant 0 : i32
    %668 = arith.cmpi eq, %arg1, %c0_i32_228 : i32
    %669 = arith.extui %668 : i1 to i32
    %c0_i32_229 = arith.constant 0 : i32
    %670 = arith.cmpi ne, %669, %c0_i32_229 : i32
    scf.if %670 {
      %c0_230 = arith.constant 0 : index
      %c0_231 = arith.constant 0 : index
      %671 = vector.load %arg12[%c0_230, %c0_231] : memref<8x128xf32, #tpu.memory_space<vmem>>, vector<8x128xf32>
      %c0_232 = arith.constant 0 : index
      %c0_233 = arith.constant 0 : index
      %672 = vector.load %arg10[%c0_232, %c0_233] : memref<8x128xf32, #tpu.memory_space<vmem>>, vector<8x128xf32>
      tpu.vector_store %arg10[%c0_232, %c0_233], %671 {strides = array<i32>} : memref<8x128xf32, #tpu.memory_space<vmem>>, vector<8x128xf32>,
      %c0_234 = arith.constant 0 : index
      %c0_235 = arith.constant 0 : index
      %673 = vector.load %arg13[%c0_234, %c0_235] : memref<8x128xf32, #tpu.memory_space<vmem>>, vector<8x128xf32>
      %c0_236 = arith.constant 0 : index
      %c0_237 = arith.constant 0 : index
      %674 = vector.load %arg11[%c0_236, %c0_237] : memref<8x128xf32, #tpu.memory_space<vmem>>, vector<8x128xf32>
      tpu.vector_store %arg11[%c0_236, %c0_237], %673 {strides = array<i32>} : memref<8x128xf32, #tpu.memory_space<vmem>>, vector<8x128xf32>,
    } else {
    }
    return
  }
  func.func @transform_0(%arg0: i32, %arg1: i32) -> (i32, i32, i32) {
    %c0_i32 = arith.constant 0 : i32
    %c0_i32_0 = arith.constant 0 : i32
    return %arg1, %arg0, %c0_i32 : i32, i32, i32
  }
  func.func @transform_1(%arg0: i32, %arg1: i32) -> (i32, i32) {
    %c0_i32 = arith.constant 0 : i32
    %c0_i32_0 = arith.constant 0 : i32
    %c0_i32_1 = arith.constant 0 : i32
    return %c0_i32, %c0_i32_0 : i32, i32
  }
  func.func @transform_2(%arg0: i32, %arg1: i32) -> (i32, i32) {
    %c0_i32 = arith.constant 0 : i32
    %c0_i32_0 = arith.constant 0 : i32
    %c0_i32_1 = arith.constant 0 : i32
    return %c0_i32, %c0_i32_0 : i32, i32
  }
  func.func @transform_3(%arg0: i32, %arg1: i32) -> (i32, i32) {
    %c0_i32 = arith.constant 0 : i32
    %c0_i32_0 = arith.constant 0 : i32
    %c0_i32_1 = arith.constant 0 : i32
    return %c0_i32, %c0_i32_0 : i32, i32
  }
  func.func @transform_4(%arg0: i32, %arg1: i32) -> (i32, i32) {
    %c0_i32 = arith.constant 0 : i32
    %c0_i32_0 = arith.constant 0 : i32
    %c0_i32_1 = arith.constant 0 : i32
    return %c0_i32, %c0_i32_0 : i32, i32
  }
  func.func @transform_5(%arg0: i32, %arg1: i32) -> (i32, i32) {
    %c0_i32 = arith.constant 0 : i32
    %c0_i32_0 = arith.constant 0 : i32
    %c0_i32_1 = arith.constant 0 : i32
    return %c0_i32, %c0_i32_0 : i32, i32
  }
  func.func @transform_6(%arg0: i32, %arg1: i32) -> (i32, i32) {
    %c0_i32 = arith.constant 0 : i32
    %c0_i32_0 = arith.constant 0 : i32
    %c0_i32_1 = arith.constant 0 : i32
    return %c0_i32, %c0_i32_0 : i32, i32
  }
  func.func @transform_7(%arg0: i32, %arg1: i32) -> (i32, i32, i32) {
    %c0_i32 = arith.constant 0 : i32
    %c0_i32_0 = arith.constant 0 : i32
    return %arg1, %arg0, %c0_i32 : i32, i32, i32
  }
  func.func @transform_8(%arg0: i32, %arg1: i32) -> (i32, i32) {
    %c0_i32 = arith.constant 0 : i32
    %c0_i32_0 = arith.constant 0 : i32
    return %arg0, %c0_i32 : i32, i32
  }
  func.func @transform_9(%arg0: i32, %arg1: i32) -> (i32, i32) {
    %c0_i32 = arith.constant 0 : i32
    %c0_i32_0 = arith.constant 0 : i32
    return %arg0, %c0_i32 : i32, i32
  }
}

</mosaic_0001>

<bundles_post_ra>
// kernel: tpu_custom_call.1
= control target key start
LH: loop header
LB: loop body
LE: loop exit
PB: predicated region body
PF: predicated region fallthrough
CT: control target
= control target key end

     0   :  { %15 = vsyncpa [#allocation7], 0  ;;  %s3353_s0 = inlined_call_operand.hbm [shape: f32[8,8,384], index: 0, kind: input, shape index: {}]   ;;  %s3354_s1 = inlined_call_operand.hbm [shape: bf16[128,384], index: 1, kind: input, shape index: {}]   ;;  %s3355_s2 = inlined_call_operand.hbm [shape: f32[1,384], index: 2, kind: input, shape index: {}]   ;;  %s3356_s3 = inlined_call_operand.hbm [shape: bf16[128,384], index: 3, kind: input, shape index: {}]   ;;  %s3357_s4 = inlined_call_operand.hbm [shape: bf16[128,384], index: 4, kind: input, shape index: {}]   ;;  %s3358_s5 = inlined_call_operand.vmem [shape: f32[1,384], index: 5, kind: input, shape index: {}]   ;;  %s3359_s6 = inlined_call_operand.hbm [shape: f32[1,384], index: 6, kind: input, shape index: {}]   ;;  %s3360_s7 = inlined_call_operand.hbm [shape: f32[8,8,128], index: 7, kind: output, shape index: {0}]   ;;  %s3361_s8 = inlined_call_operand.hbm [shape: f32[8,128], index: 8, kind: output, shape index: {1}]   ;;  %s3362_s9 = inlined_call_operand.hbm [shape: f32[8,128], index: 9, kind: output, shape index: {2}]  }
   0x1   :  { %16 = vsyncpa [#allocation10], 0 }
   0x2   :  { %17 = vsyncpa [#allocation13], 0 }
   0x3   :  { %18 = vsyncpa [#allocation16], 0 }
   0x4   :  { %19 = vsyncpa [#allocation8], 0  ;;  %s38_s11 = sshll.u32 %s3354_s1, 4  ;;  %s39_s11 = int_to_ptr.hbm [resolvable:$true] %s38_s11 }
   0x5   :  { %20 = vsyncpa [#allocation19], 0  ;;  %s2549_s12 = smov [#allocation9]   ;;  %s62_s16 = sshll.u32 %s3356_s3, 4  ;;  %s63_s16 = int_to_ptr.hbm [resolvable:$true] %s62_s16 }
   0x6   :  { %s40_s13 = sshll.u32 %s2549_s12, 4  ;;  %s2550_s17 = smov 192   ;;  %s41_s13 = int_to_ptr.vmem [resolvable:$true] %s40_s13 }
   0x7   :  { %s2551_s18 = smov 12   ;;  %s2552_s19 = smov [#allocation12]  }
   0x8   :  { %46 = dma.hbm_to_vmem [thread:$0]  %s39_s11, 3072, %s41_s13, [#allocation10], %s2550_s17, %s2550_s17, %s2551_s18  }
   0x9   :  { %s64_s20 = sshll.u32 %s2552_s19, 4  ;;  %s25_s22 = sshll.u32 %s3353_s0, 4  ;;  %s65_s20 = int_to_ptr.vmem [resolvable:$true] %s64_s20  ;;  %s26_s22 = int_to_ptr.hbm [resolvable:$true] %s25_s22 }
   0xa   :  { %70 = dma.hbm_to_vmem [thread:$0]  %s63_s16, 3072, %s65_s20, [#allocation13], %s2550_s17, %s2550_s17, %s2551_s18  }
   0xb   :  { %s2553_s3 = smov [#allocation6]   ;;  %s52_s26 = sshll.u32 %s3355_s2, 4  ;;  %s53_s26 = int_to_ptr.hbm [resolvable:$true] %s52_s26 }
   0xc   :  { %s27_s23 = sshll.u32 %s2553_s3, 4  ;;  %s2554_s27 = smov 384   ;;  %s28_s23 = int_to_ptr.vmem [resolvable:$true] %s27_s23 }
   0xd   :  { %s2555_s28 = smov 24   ;;  %s2556_s29 = smov [#allocation11]  }
   0xe   :  { %33 = dma.hbm_to_vmem [thread:$0]  %s26_s22, 3072, %s28_s23, [#allocation7], %s2554_s27, %s2554_s27, %s2555_s28  }
   0xf   :  { %s54_s30 = sshll.u32 %s2556_s29, 4  ;;  %s75_s11 = sshll.u32 %s3357_s4, 4  ;;  %s55_s30 = int_to_ptr.vmem [resolvable:$true] %s54_s30  ;;  %s76_s11 = int_to_ptr.hbm [resolvable:$true] %s75_s11 }
  0x10   :  { %57 = dma.hbm_to_vmem [thread:$0]  %s53_s26, 48, %s55_s30, [#allocation10]  }
  0x11   :  { %s91_s14 = sshll.u32 %s3359_s6, 4  ;;  %s2557_s15 = smov [#allocation14]   ;;  %s92_s14 = int_to_ptr.hbm [resolvable:$true] %s91_s14 }
  0x12   :  { %s77_s16 = sshll.u32 %s2557_s15, 4  ;;  %s2558_s2 = smov [#allocation15]   ;;  %s78_s16 = int_to_ptr.vmem [resolvable:$true] %s77_s16 }
  0x13   :  { %83 = dma.hbm_to_vmem [thread:$0]  %s76_s11, 3072, %s78_s16, [#allocation13], %s2550_s17, %s2550_s17, %s2551_s18  }
  0x14   :  { %s93_s19 = sshll.u32 %s2558_s2, 4  ;;  %s94_s19 = int_to_ptr.vmem [resolvable:$true] %s93_s19 }
  0x15   :  { %96 = dma.hbm_to_vmem [thread:$0]  %s92_s14, 48, %s94_s19, [#allocation16]  }
  0x16   :  { %2537 = dma.done.wait [#allocation7], 3072  }
  0x17   :  { %2538 = vsyncadd [#allocation7], 4294964224 }
  0x18   :  { %2539 = dma.done.wait [#allocation10], 3120  }
  0x19   :  { %2540 = vsyncadd [#allocation10], 4294964176 }
  0x1a   :  { %2541 = dma.done.wait [#allocation13], 6144  }
  0x1b   :  { %2542 = vsyncadd [#allocation13], 4294961152 }
  0x1c   :  { %2543 = dma.done.wait [#allocation16], 48  }
  0x1d   :  { %2544 = vsyncadd [#allocation16], 4294967248  ;;  %v1934_v0 = vld [vmem:[#allocation9 + $0xa8] sm:$0xf]  ;;  %v2158_v1 = vld [vmem:[#allocation9 + $0xb0] sm:$0xf0] }
  0x1e   :  { %v2157_v2 = vld [vmem:[#allocation9 + $0xac] sm:$0xf]  ;;  %v2642_v3 = vor.u32 %v2158_v1, %v1934_v0  ;;  %v1936_v4 = vld [vmem:[#allocation9 + $0xb4] sm:$0xf0]  ;;  %v1942_v5 = vld [vmem:[#allocation9 + $0xb0] sm:$0xf] }
  0x1f   :  { %v2159_v6 = vld [vmem:[#allocation9 + $0xb8] sm:$0xf0]  ;;  %v2644_v7 = vor.u32 %v2157_v2, %v1936_v4  ;;  %v1922_v9 = vld [vmem:[#allocation9 + $0x90] sm:$0xf]  ;;  %v2154_v11 = vld [vmem:[#allocation9 + $0x94] sm:$0xf] }
  0x20   :  { %v2646_v8 = vor.u32 %v2159_v6, %v1942_v5  ;;  %v2155_v10 = vld [vmem:[#allocation9 + $0x98] sm:$0xf0]  ;;  %375 = vmatpush.bf16.msra.mxu0 %v2642_v3  ;;  %v1924_v13 = vld [vmem:[#allocation9 + $0x9c] sm:$0xf0]  ;;  %v1930_v14 = vld [vmem:[#allocation9 + $0x98] sm:$0xf]  ;;  %437 = vmatpush.bf16.msra.mxu3 %v2642_v3 }
  0x21   :  { %v2649_v12 = vor.u32 %v2155_v10, %v1922_v9  ;;  %v2156_v15 = vld [vmem:[#allocation9 + $0xa0] sm:$0xf0]  ;;  %388 = vmatpush.bf16.msra.mxu1 %v2644_v7  ;;  %v2654_v16 = vor.u32 %v2154_v11, %v1924_v13  ;;  %v1910_v18 = vld [vmem:[#allocation9 + $0x78] sm:$0xf]  ;;  %v2151_v20 = vld [vmem:[#allocation9 + $0x7c] sm:$0xf] }
  0x22   :  { %401 = vmatpush.bf16.msra.mxu2 %v2646_v8  ;;  %v2656_v17 = vor.u32 %v2156_v15, %v1930_v14  ;;  %v2152_v19 = vld [vmem:[#allocation9 + $0x80] sm:$0xf0]  ;;  %v1912_v21 = vld [vmem:[#allocation9 + $0x84] sm:$0xf0]  ;;  %v1918_v22 = vld [vmem:[#allocation9 + $0x80] sm:$0xf] }
  0x23   :  { %v2153_v23 = vld [vmem:[#allocation9 + $0x88] sm:$0xf0]  ;;  %v2659_v24 = vor.u32 %v2152_v19, %v1910_v18  ;;  %v2664_v25 = vor.u32 %v2151_v20, %v1912_v21  ;;  %v1898_v27 = vld [vmem:[#allocation9 + $0x60] sm:$0xf]  ;;  %v2148_v29 = vld [vmem:[#allocation9 + $0x64] sm:$0xf] }
  0x24   :  { %376 = vmatpush.bf16.msra.mxu0 %v2649_v12  ;;  %438 = vmatpush.bf16.msra.mxu3 %v2649_v12  ;;  %v2666_v26 = vor.u32 %v2153_v23, %v1918_v22  ;;  %v2149_v28 = vld [vmem:[#allocation9 + $0x68] sm:$0xf0]  ;;  %v1900_v30 = vld [vmem:[#allocation9 + $0x6c] sm:$0xf0]  ;;  %v1906_v31 = vld [vmem:[#allocation9 + $0x68] sm:$0xf] }
  0x25   :  { %389 = vmatpush.bf16.msra.mxu1 %v2654_v16  ;;  %v2150_v32 = vld [vmem:[#allocation9 + $0x70] sm:$0xf0]  ;;  %v2669_v33 = vor.u32 %v2149_v28, %v1898_v27  ;;  %v2674_v34 = vor.u32 %v2148_v29, %v1900_v30  ;;  %v1886_v36 = vld [vmem:[#allocation9 + $0x48] sm:$0xf]  ;;  %v2145_v38 = vld [vmem:[#allocation9 + $0x4c] sm:$0xf] }
  0x26   :  { %402 = vmatpush.bf16.msra.mxu2 %v2656_v17  ;;  %v2676_v35 = vor.u32 %v2150_v32, %v1906_v31  ;;  %v2146_v37 = vld [vmem:[#allocation9 + $0x50] sm:$0xf0]  ;;  %v1888_v39 = vld [vmem:[#allocation9 + $0x54] sm:$0xf0]  ;;  %v1894_v40 = vld [vmem:[#allocation9 + $0x50] sm:$0xf] }
  0x27   :  { %v2147_v41 = vld [vmem:[#allocation9 + $0x58] sm:$0xf0]  ;;  %v2679_v42 = vor.u32 %v2146_v37, %v1886_v36  ;;  %v2684_v43 = vor.u32 %v2145_v38, %v1888_v39  ;;  %v1874_v45 = vld [vmem:[#allocation9 + $0x30] sm:$0xf]  ;;  %v2142_v47 = vld [vmem:[#allocation9 + $0x34] sm:$0xf] }
  0x28   :  { %377 = vmatpush.bf16.msra.mxu0 %v2659_v24  ;;  %439 = vmatpush.bf16.msra.mxu3 %v2659_v24  ;;  %v2686_v44 = vor.u32 %v2147_v41, %v1894_v40  ;;  %v2143_v46 = vld [vmem:[#allocation9 + $0x38] sm:$0xf0]  ;;  %v1876_v48 = vld [vmem:[#allocation9 + $0x3c] sm:$0xf0]  ;;  %v1882_v49 = vld [vmem:[#allocation9 + $0x38] sm:$0xf] }
  0x29   :  { %390 = vmatpush.bf16.msra.mxu1 %v2664_v25  ;;  %v2144_v50 = vld [vmem:[#allocation9 + $0x40] sm:$0xf0]  ;;  %v2689_v51 = vor.u32 %v2143_v46, %v1874_v45  ;;  %v2694_v52 = vor.u32 %v2142_v47, %v1876_v48  ;;  %v1862_v54 = vld [vmem:[#allocation9 + $0x18] sm:$0xf]  ;;  %v2139_v56 = vld [vmem:[#allocation9 + $0x1c] sm:$0xf] }
  0x2a   :  { %403 = vmatpush.bf16.msra.mxu2 %v2666_v26  ;;  %v2696_v53 = vor.u32 %v2144_v50, %v1882_v49  ;;  %v2140_v55 = vld [vmem:[#allocation9 + $0x20] sm:$0xf0]  ;;  %v1864_v57 = vld [vmem:[#allocation9 + $0x24] sm:$0xf0]  ;;  %v1870_v58 = vld [vmem:[#allocation9 + $0x20] sm:$0xf] }
  0x2b   :  { %v2141_v59 = vld [vmem:[#allocation9 + $0x28] sm:$0xf0]  ;;  %v2699_v60 = vor.u32 %v2140_v55, %v1862_v54  ;;  %v2704_v61 = vor.u32 %v2139_v56, %v1864_v57  ;;  %v1850_v63 = vld [vmem:[#allocation9] sm:$0xf]  ;;  %v2136_v1 = vld [vmem:[#allocation9 + $0x4] sm:$0xf] }
  0x2c   :  { %378 = vmatpush.bf16.msra.mxu0 %v2669_v33  ;;  %440 = vmatpush.bf16.msra.mxu3 %v2669_v33  ;;  %v2706_v62 = vor.u32 %v2141_v59, %v1870_v58  ;;  %v2137_v0 = vld [vmem:[#allocation9 + $0x8] sm:$0xf0]  ;;  %v1852_v2 = vld [vmem:[#allocation9 + $0xc] sm:$0xf0]  ;;  %v1858_v4 = vld [vmem:[#allocation9 + $0x8] sm:$0xf] }
  0x2d   :  { %391 = vmatpush.bf16.msra.mxu1 %v2674_v34  ;;  %v2138_v5 = vld [vmem:[#allocation9 + $0x10] sm:$0xf0]  ;;  %v2709_v6 = vor.u32 %v2137_v0, %v1850_v63  ;;  %v2714_v9 = vor.u32 %v2136_v1, %v1852_v2  ;;  %v2559_v11 = vmov 0.0|0.0   ;;  %v225_v13 = vld [vmem:[#allocation11] sm:$0x7]  ;;  %v244_v21 = vld [vmem:[#allocation6 + $0x8] sm:$0xff] }
  0x2e   :  { %404 = vmatpush.bf16.msra.mxu2 %v2676_v35  ;;  %v2716_v10 = vor.u32 %v2138_v5, %v1858_v4  ;;  %v2781_v14 = vperm.slane %v225_v13, 0  ;;  %v2783_v15 = vperm.slane %v225_v13, 1  ;;  %v243_v18 = vld [vmem:[#allocation6] sm:$0xff]  ;;  %v2787_v37 = vperm.slane %v225_v13, 2  ;;  %v245_v48 = vld [vmem:[#allocation6 + $0x10] sm:$0xff]  ;;  %v433_v5 = vld [vmem:[#allocation6 + $0x18] sm:$0xff] }
  0x2f   :  { %v434_v4 = vld [vmem:[#allocation6 + $0x20] sm:$0xff]  ;;  %s1815_s21 = sshll.u32 %s3361_s8, 4  ;;  %s2561_s8 = smov [#allocation17]   ;;  %s1816_s21 = int_to_ptr.hbm [resolvable:$true] %s1815_s21 }
  0x30   :  { %379 = vmatpush.bf16.msra.mxu0 %v2679_v42  ;;  %441 = vmatpush.bf16.msra.mxu3 %v2679_v42  ;;  %s1799_s1 = sshll.u32 %s2561_s8, 4  ;;  %s1801_s23 = sshll.u32 %s3360_s7, 4  ;;  %s1800_s1 = int_to_ptr.vmem [resolvable:$true] %s1799_s1  ;;  %s1802_s23 = int_to_ptr.hbm [resolvable:$true] %s1801_s23 }
  0x31   :  { %392 = vmatpush.bf16.msra.mxu1 %v2684_v43  ;;  %s2562_s24 = smov [#allocation20]   ;;  %s1826_s28 = sshll.u32 %s3362_s9, 4  ;;  %s1827_s28 = int_to_ptr.hbm [resolvable:$true] %s1826_s28 }
  0x32   :  { %405 = vmatpush.bf16.msra.mxu2 %v2686_v44  ;;  %s1824_s25 = sshll.u32 %s2562_s24, 4  ;;  %s2563_s29 = smov 128   ;;  %s1825_s25 = int_to_ptr.vmem [resolvable:$true] %s1824_s25 }
  0x33   :  { %s2564_s30 = smov 8  }
  0x34   :  { %380 = vmatpush.bf16.msra.mxu0 %v2689_v51  ;;  %442 = vmatpush.bf16.msra.mxu3 %v2689_v51 }
  0x35   :  { %393 = vmatpush.bf16.msra.mxu1 %v2694_v52 }
  0x36   :  { %406 = vmatpush.bf16.msra.mxu2 %v2696_v53 }
  0x38   :  { %381 = vmatpush.bf16.msra.mxu0 %v2699_v60  ;;  %443 = vmatpush.bf16.msra.mxu3 %v2699_v60 }
  0x39   :  { %394 = vmatpush.bf16.msra.mxu1 %v2704_v61 }
  0x3a   :  { %407 = vmatpush.bf16.msra.mxu2 %v2706_v62 }
  0x3c   :  { %382 = vmatpush.bf16.msra.mxu0 %v2709_v6  ;;  %444 = vmatpush.bf16.msra.mxu3 %v2709_v6 }
  0x3d   :  { %395 = vmatpush.bf16.msra.mxu1 %v2714_v9 }
  0x3e   :  { %408 = vmatpush.bf16.msra.mxu2 %v2716_v10 }
  0x3f   :  { %383 = vmatmul.bf16.vlgmr.msra.gmra.mxu0 %v2559_v11 }
  0x40   :  { %450 = vmatpush.bf16.msrb.mxu0 %v2644_v7  ;;  %396 = vmatmul.bf16.vlgmr.msra.gmra.mxu1 %v2559_v11 }
  0x41   :  { %463 = vmatpush.bf16.msrb.mxu1 %v2646_v8  ;;  %409 = vmatmul.bf16.vlgmr.msra.gmra.mxu2 %v2559_v11 }
  0x42   :  { %500 = vmatpush.bf16.msrb.mxu2 %v2642_v3  ;;  %513 = vmatpush.bf16.msrb.mxu3 %v2644_v7 }
  0x44   :  { %451 = vmatpush.bf16.msrb.mxu0 %v2654_v16 }
  0x45   :  { %464 = vmatpush.bf16.msrb.mxu1 %v2656_v17 }
  0x46   :  { %501 = vmatpush.bf16.msrb.mxu2 %v2649_v12  ;;  %514 = vmatpush.bf16.msrb.mxu3 %v2654_v16 }
  0x48   :  { %452 = vmatpush.bf16.msrb.mxu0 %v2664_v25 }
  0x49   :  { %465 = vmatpush.bf16.msrb.mxu1 %v2666_v26 }
  0x4a   :  { %502 = vmatpush.bf16.msrb.mxu2 %v2659_v24  ;;  %515 = vmatpush.bf16.msrb.mxu3 %v2664_v25 }
  0x4c   :  { %453 = vmatpush.bf16.msrb.mxu0 %v2674_v34 }
  0x4d   :  { %466 = vmatpush.bf16.msrb.mxu1 %v2676_v35 }
  0x4e   :  { %503 = vmatpush.bf16.msrb.mxu2 %v2669_v33  ;;  %516 = vmatpush.bf16.msrb.mxu3 %v2674_v34 }
  0x50   :  { %454 = vmatpush.bf16.msrb.mxu0 %v2684_v43 }
  0x51   :  { %467 = vmatpush.bf16.msrb.mxu1 %v2686_v44 }
  0x52   :  { %504 = vmatpush.bf16.msrb.mxu2 %v2679_v42  ;;  %517 = vmatpush.bf16.msrb.mxu3 %v2684_v43 }
  0x54   :  { %455 = vmatpush.bf16.msrb.mxu0 %v2694_v52 }
  0x55   :  { %468 = vmatpush.bf16.msrb.mxu1 %v2696_v53 }
  0x56   :  { %505 = vmatpush.bf16.msrb.mxu2 %v2689_v51  ;;  %518 = vmatpush.bf16.msrb.mxu3 %v2694_v52 }
  0x58   :  { %456 = vmatpush.bf16.msrb.mxu0 %v2704_v61 }
  0x59   :  { %469 = vmatpush.bf16.msrb.mxu1 %v2706_v62 }
  0x5a   :  { %506 = vmatpush.bf16.msrb.mxu2 %v2699_v60  ;;  %519 = vmatpush.bf16.msrb.mxu3 %v2704_v61 }
  0x5c   :  { %457 = vmatpush.bf16.msrb.mxu0 %v2714_v9 }
  0x5d   :  { %470 = vmatpush.bf16.msrb.mxu1 %v2716_v10 }
  0x5e   :  { %507 = vmatpush.bf16.msrb.mxu2 %v2709_v6  ;;  %520 = vmatpush.bf16.msrb.mxu3 %v2714_v9 }
  0x60   :  { %526 = vmatpush.bf16.msra.mxu0 %v2646_v8 }
  0x61   :  { %563 = vmatpush.bf16.msra.mxu1 %v2642_v3 }
  0x62   :  { %576 = vmatpush.bf16.msra.mxu2 %v2644_v7 }
  0x64   :  { %527 = vmatpush.bf16.msra.mxu0 %v2656_v17 }
  0x65   :  { %564 = vmatpush.bf16.msra.mxu1 %v2649_v12 }
  0x66   :  { %577 = vmatpush.bf16.msra.mxu2 %v2654_v16 }
  0x68   :  { %528 = vmatpush.bf16.msra.mxu0 %v2666_v26 }
  0x69   :  { %565 = vmatpush.bf16.msra.mxu1 %v2659_v24 }
  0x6a   :  { %578 = vmatpush.bf16.msra.mxu2 %v2664_v25 }
  0x6c   :  { %529 = vmatpush.bf16.msra.mxu0 %v2676_v35 }
  0x6d   :  { %566 = vmatpush.bf16.msra.mxu1 %v2669_v33 }
  0x6e   :  { %579 = vmatpush.bf16.msra.mxu2 %v2674_v34 }
  0x70   :  { %530 = vmatpush.bf16.msra.mxu0 %v2686_v44 }
  0x71   :  { %567 = vmatpush.bf16.msra.mxu1 %v2679_v42 }
  0x72   :  { %580 = vmatpush.bf16.msra.mxu2 %v2684_v43 }
  0x74   :  { %531 = vmatpush.bf16.msra.mxu0 %v2696_v53 }
  0x75   :  { %568 = vmatpush.bf16.msra.mxu1 %v2689_v51 }
  0x76   :  { %581 = vmatpush.bf16.msra.mxu2 %v2694_v52 }
  0x78   :  { %532 = vmatpush.bf16.msra.mxu0 %v2706_v62 }
  0x79   :  { %569 = vmatpush.bf16.msra.mxu1 %v2699_v60 }
  0x7a   :  { %582 = vmatpush.bf16.msra.mxu2 %v2704_v61 }
  0x7c   :  { %533 = vmatpush.bf16.msra.mxu0 %v2716_v10 }
  0x7d   :  { %570 = vmatpush.bf16.msra.mxu1 %v2709_v6 }
  0x7e   :  { %583 = vmatpush.bf16.msra.mxu2 %v2714_v9 }
  0xbc   :  { %v384_v19 = vpop.f32.mrf.mxu0 }
  0xbd   :  { %v385_v20 = vadd.f32 %v384_v19, %v2781_v14  ;;  %v397_v22 = vpop.f32.mrf.mxu1 }
  0xbe   :  { %v398_v23 = vadd.f32 %v397_v22, %v2783_v15 }
  0xbf   :  { %v414_v27 = vadd.f32 %v385_v20, %v243_v18 }
  0xc0   :  { %v419_v28 = vadd.f32 %v398_v23, %v244_v21 }
  0xc1   :  { %v415_v29 = vmul.f32 0.5, %v414_v27 }
  0xc2   :  { %v420_v30 = vmul.f32 0.5, %v419_v28 }
  0xc3   :  { %2225 = vtanh.f32 %v415_v29 }
  0xc4   :  { %v410_v31 = vpop.f32.mrf.mxu2  ;;  %2227 = vtanh.f32 %v420_v30  ;;  %v386_v32 = vpop.f32.mrf.mxu0 }
  0xc5   :  { %v399_v36 = vpop.f32.mrf.mxu1  ;;  %v411_v40 = vadd.f32 %v410_v31, %v2787_v37 }
  0xc9   :  { %v2226_v38 = vpop.eup %2225 }
  0xca   :  { %v2228_v39 = vpop.eup %2227  ;;  %v417_v41 = vadd.f32 1.0, %v2226_v38  ;;  %v435_v38 = vld [vmem:[#allocation6 + $0x28] sm:$0xff] }
  0xcb   :  { %v422_v47 = vadd.f32 1.0, %v2228_v39 }
  0xcc   :  { %v412_v45 = vpop.f32.mrf.mxu2  ;;  %v418_v46 = vmul.f32 0.5, %v417_v41 }
  0xcd   :  { %v423_v54 = vmul.f32 0.5, %v422_v47 }
  0xce   :  { %v424_v49 = vmul.f32 %v418_v46, %v411_v40 }
  0xcf   :  { %v427_v55 = vsub.f32 1.0, %v423_v54  ;;  %v429_v57 = vmul.f32 0.0, %v423_v54 }
  0xd0   :  { %v425_v50 = vadd.f32 %v424_v49, %v245_v48 }
  0xd2   :  { %2229 = vtanh.f32 %v425_v50 }
  0xd8   :  { %v2230_v56 = vpop.eup %2229 }
  0xd9   :  { %v428_v58 = vmul.f32 %v2230_v56, %v427_v55  ;;  %v496_v56 = vld [vmem:[#allocation6 + $0x30] sm:$0xff] }
  0xdb   :  { %v2790_v59 = vadd.f32 %v429_v57, %v428_v58  ;;  %v497_v58 = vld [vmem:[#allocation6 + $0x38] sm:$0xff] }
  0xdd   :  { %v436_v63 = vpack.c.bf16 %v2790_v59, %v2790_v59 }
  0xdf   :  { %445 = vmatmul.bf16.vlgmr.msra.gmra.mxu3 %v436_v63  ;;  %458 = vmatmul.bf16.vlgmr.msrb.gmra.mxu0 %v436_v63 }
  0xe0   :  { %471 = vmatmul.bf16.vlgmr.msrb.gmra.mxu1 %v436_v63  ;;  %589 = vmatpush.bf16.msra.mxu3 %v2646_v8 }
  0xe1   :  { %626 = vmatpush.bf16.msrb.mxu0 %v2642_v3  ;;  %639 = vmatpush.bf16.msrb.mxu1 %v2644_v7 }
  0xe4   :  { %590 = vmatpush.bf16.msra.mxu3 %v2656_v17 }
  0xe5   :  { %627 = vmatpush.bf16.msrb.mxu0 %v2649_v12  ;;  %640 = vmatpush.bf16.msrb.mxu1 %v2654_v16 }
  0xe8   :  { %591 = vmatpush.bf16.msra.mxu3 %v2666_v26 }
  0xe9   :  { %628 = vmatpush.bf16.msrb.mxu0 %v2659_v24  ;;  %641 = vmatpush.bf16.msrb.mxu1 %v2664_v25 }
  0xec   :  { %592 = vmatpush.bf16.msra.mxu3 %v2676_v35 }
  0xed   :  { %629 = vmatpush.bf16.msrb.mxu0 %v2669_v33  ;;  %642 = vmatpush.bf16.msrb.mxu1 %v2674_v34 }
  0xf0   :  { %593 = vmatpush.bf16.msra.mxu3 %v2686_v44 }
  0xf1   :  { %630 = vmatpush.bf16.msrb.mxu0 %v2679_v42  ;;  %643 = vmatpush.bf16.msrb.mxu1 %v2684_v43 }
  0xf4   :  { %594 = vmatpush.bf16.msra.mxu3 %v2696_v53 }
  0xf5   :  { %631 = vmatpush.bf16.msrb.mxu0 %v2689_v51  ;;  %644 = vmatpush.bf16.msrb.mxu1 %v2694_v52 }
  0xf8   :  { %595 = vmatpush.bf16.msra.mxu3 %v2706_v62 }
  0xf9   :  { %632 = vmatpush.bf16.msrb.mxu0 %v2699_v60  ;;  %645 = vmatpush.bf16.msrb.mxu1 %v2704_v61 }
  0xfc   :  { %596 = vmatpush.bf16.msra.mxu3 %v2716_v10 }
  0xfd   :  { %633 = vmatpush.bf16.msrb.mxu0 %v2709_v6  ;;  %646 = vmatpush.bf16.msrb.mxu1 %v2714_v9 }
 0x15c   :  { %v459_v0 = vpop.f32.mrf.mxu0 }
 0x15d   :  { %v472_v1 = vpop.f32.mrf.mxu1  ;;  %v460_v2 = vadd.f32 %v459_v0, %v2783_v15 }
 0x15e   :  { %v473_v32 = vadd.f32 %v472_v1, %v2787_v37 }
 0x15f   :  { %v481_v19 = vadd.f32 %v460_v2, %v434_v4 }
 0x161   :  { %v482_v27 = vmul.f32 0.5, %v481_v19 }
 0x162   :  { %v446_v13 = vpop.f32.mrf.mxu3 }
 0x163   :  { %v447_v18 = vadd.f32 %v446_v13, %v2781_v14 }
 0x164   :  { %v461_v20 = vpop.f32.mrf.mxu0 }
 0x165   :  { %v476_v21 = vadd.f32 %v447_v18, %v433_v5  ;;  %v474_v22 = vpop.f32.mrf.mxu1 }
 0x167   :  { %v477_v23 = vmul.f32 0.5, %v476_v21 }
 0x169   :  { %2231 = vtanh.f32 %v477_v23 }
 0x16a   :  { %v448_v28 = vpop.f32.mrf.mxu3  ;;  %2233 = vtanh.f32 %v482_v27 }
 0x16f   :  { %v2232_v29 = vpop.eup %2231 }
 0x170   :  { %v479_v30 = vadd.f32 1.0, %v2232_v29  ;;  %v2234_v31 = vpop.eup %2233  ;;  %v498_v29 = vld [vmem:[#allocation6 + $0x40] sm:$0xff] }
 0x171   :  { %v484_v40 = vadd.f32 1.0, %v2234_v31 }
 0x172   :  { %v480_v36 = vmul.f32 0.5, %v479_v30 }
 0x173   :  { %v485_v45 = vmul.f32 0.5, %v484_v40 }
 0x174   :  { %v486_v39 = vmul.f32 %v480_v36, %v473_v32 }
 0x175   :  { %v489_v46 = vsub.f32 1.0, %v485_v45  ;;  %v491_v48 = vmul.f32 %v485_v45, %v2790_v59 }
 0x176   :  { %v487_v41 = vadd.f32 %v486_v39, %v435_v38 }
 0x178   :  { %2235 = vtanh.f32 %v487_v41 }
 0x17e   :  { %v2236_v47 = vpop.eup %2235 }
 0x17f   :  { %v490_v49 = vmul.f32 %v2236_v47, %v489_v46  ;;  %v559_v47 = vld [vmem:[#allocation6 + $0x48] sm:$0xff] }
 0x181   :  { %v2822_v50 = vadd.f32 %v491_v48, %v490_v49 }
 0x183   :  { %v499_v54 = vpack.c.bf16 %v2822_v50, %v2822_v50 }
 0x185   :  { %508 = vmatmul.bf16.vlgmr.msrb.gmra.mxu2 %v499_v54  ;;  %521 = vmatmul.bf16.vlgmr.msrb.gmra.mxu3 %v499_v54 }
 0x186   :  { %534 = vmatmul.bf16.vlgmr.msra.gmra.mxu0 %v499_v54  ;;  %652 = vmatpush.bf16.msrb.mxu2 %v2646_v8 }
 0x187   :  { %689 = vmatpush.bf16.msrb.mxu3 %v2642_v3  ;;  %702 = vmatpush.bf16.msra.mxu0 %v2644_v7 }
 0x18a   :  { %653 = vmatpush.bf16.msrb.mxu2 %v2656_v17 }
 0x18b   :  { %690 = vmatpush.bf16.msrb.mxu3 %v2649_v12  ;;  %703 = vmatpush.bf16.msra.mxu0 %v2654_v16 }
 0x18e   :  { %654 = vmatpush.bf16.msrb.mxu2 %v2666_v26 }
 0x18f   :  { %691 = vmatpush.bf16.msrb.mxu3 %v2659_v24  ;;  %704 = vmatpush.bf16.msra.mxu0 %v2664_v25 }
 0x192   :  { %655 = vmatpush.bf16.msrb.mxu2 %v2676_v35 }
 0x193   :  { %692 = vmatpush.bf16.msrb.mxu3 %v2669_v33  ;;  %705 = vmatpush.bf16.msra.mxu0 %v2674_v34 }
 0x196   :  { %656 = vmatpush.bf16.msrb.mxu2 %v2686_v44 }
 0x197   :  { %693 = vmatpush.bf16.msrb.mxu3 %v2679_v42  ;;  %706 = vmatpush.bf16.msra.mxu0 %v2684_v43 }
 0x19a   :  { %657 = vmatpush.bf16.msrb.mxu2 %v2696_v53 }
 0x19b   :  { %694 = vmatpush.bf16.msrb.mxu3 %v2689_v51  ;;  %707 = vmatpush.bf16.msra.mxu0 %v2694_v52 }
 0x19e   :  { %658 = vmatpush.bf16.msrb.mxu2 %v2706_v62 }
 0x19f   :  { %695 = vmatpush.bf16.msrb.mxu3 %v2699_v60  ;;  %708 = vmatpush.bf16.msra.mxu0 %v2704_v61 }
 0x1a2   :  { %659 = vmatpush.bf16.msrb.mxu2 %v2716_v10 }
 0x1a3   :  { %696 = vmatpush.bf16.msrb.mxu3 %v2709_v6  ;;  %709 = vmatpush.bf16.msra.mxu0 %v2714_v9 }
 0x203   :  { %v535_v55 = vpop.f32.mrf.mxu0 }
 0x204   :  { %v536_v27 = vadd.f32 %v535_v55, %v2787_v37 }
 0x208   :  { %v509_v57 = vpop.f32.mrf.mxu2  ;;  %v522_v63 = vpop.f32.mrf.mxu3 }
 0x209   :  { %v510_v0 = vadd.f32 %v509_v57, %v2781_v14  ;;  %v523_v1 = vadd.f32 %v522_v63, %v2783_v15 }
 0x20b   :  { %v539_v2 = vadd.f32 %v510_v0, %v496_v56  ;;  %v544_v4 = vadd.f32 %v523_v1, %v497_v58  ;;  %v537_v5 = vpop.f32.mrf.mxu0  ;;  %v560_v56 = vld [vmem:[#allocation6 + $0x50] sm:$0xff] }
 0x20d   :  { %v540_v13 = vmul.f32 0.5, %v539_v2  ;;  %v545_v18 = vmul.f32 0.5, %v544_v4 }
 0x20f   :  { %2237 = vtanh.f32 %v540_v13 }
 0x210   :  { %v511_v19 = vpop.f32.mrf.mxu2  ;;  %v524_v20 = vpop.f32.mrf.mxu3  ;;  %2239 = vtanh.f32 %v545_v18 }
 0x215   :  { %v2238_v21 = vpop.eup %2237 }
 0x216   :  { %v542_v22 = vadd.f32 1.0, %v2238_v21  ;;  %v2240_v23 = vpop.eup %2239  ;;  %v561_v21 = vld [vmem:[#allocation6 + $0x58] sm:$0xff] }
 0x217   :  { %v547_v31 = vadd.f32 1.0, %v2240_v23 }
 0x218   :  { %v543_v28 = vmul.f32 0.5, %v542_v22 }
 0x219   :  { %v548_v36 = vmul.f32 0.5, %v547_v31 }
 0x21a   :  { %v549_v30 = vmul.f32 %v543_v28, %v536_v27 }
 0x21b   :  { %v552_v38 = vsub.f32 1.0, %v548_v36  ;;  %v554_v41 = vmul.f32 %v548_v36, %v2822_v50 }
 0x21c   :  { %v550_v32 = vadd.f32 %v549_v30, %v498_v29 }
 0x21e   :  { %2241 = vtanh.f32 %v550_v32 }
 0x224   :  { %v2242_v39 = vpop.eup %2241 }
 0x225   :  { %v553_v40 = vmul.f32 %v2242_v39, %v552_v38 }
 0x227   :  { %v2854_v45 = vadd.f32 %v554_v41, %v553_v40 }
 0x229   :  { %v562_v46 = vpack.c.bf16 %v2854_v45, %v2854_v45 }
 0x22b   :  { %571 = vmatmul.bf16.vlgmr.msra.gmra.mxu1 %v562_v46  ;;  %584 = vmatmul.bf16.vlgmr.msra.gmra.mxu2 %v562_v46 }
 0x22c   :  { %597 = vmatmul.bf16.vlgmr.msra.gmra.mxu3 %v562_v46  ;;  %715 = vmatpush.bf16.msra.mxu1 %v2646_v8 }
 0x22d   :  { %752 = vmatpush.bf16.msra.mxu2 %v2642_v3  ;;  %765 = vmatpush.bf16.msra.mxu3 %v2644_v7 }
 0x230   :  { %716 = vmatpush.bf16.msra.mxu1 %v2656_v17 }
 0x231   :  { %753 = vmatpush.bf16.msra.mxu2 %v2649_v12  ;;  %766 = vmatpush.bf16.msra.mxu3 %v2654_v16 }
 0x234   :  { %717 = vmatpush.bf16.msra.mxu1 %v2666_v26 }
 0x235   :  { %754 = vmatpush.bf16.msra.mxu2 %v2659_v24  ;;  %767 = vmatpush.bf16.msra.mxu3 %v2664_v25 }
 0x238   :  { %718 = vmatpush.bf16.msra.mxu1 %v2676_v35 }
 0x239   :  { %755 = vmatpush.bf16.msra.mxu2 %v2669_v33  ;;  %768 = vmatpush.bf16.msra.mxu3 %v2674_v34 }
 0x23c   :  { %719 = vmatpush.bf16.msra.mxu1 %v2686_v44 }
 0x23d   :  { %756 = vmatpush.bf16.msra.mxu2 %v2679_v42  ;;  %769 = vmatpush.bf16.msra.mxu3 %v2684_v43 }
 0x240   :  { %720 = vmatpush.bf16.msra.mxu1 %v2696_v53 }
 0x241   :  { %757 = vmatpush.bf16.msra.mxu2 %v2689_v51  ;;  %770 = vmatpush.bf16.msra.mxu3 %v2694_v52 }
 0x244   :  { %721 = vmatpush.bf16.msra.mxu1 %v2706_v62 }
 0x245   :  { %758 = vmatpush.bf16.msra.mxu2 %v2699_v60  ;;  %771 = vmatpush.bf16.msra.mxu3 %v2704_v61 }
 0x248   :  { %722 = vmatpush.bf16.msra.mxu1 %v2716_v10 }
 0x249   :  { %759 = vmatpush.bf16.msra.mxu2 %v2709_v6  ;;  %772 = vmatpush.bf16.msra.mxu3 %v2714_v9 }
 0x2a8   :  { %v572_v48 = vpop.f32.mrf.mxu1 }
 0x2a9   :  { %v573_v49 = vadd.f32 %v572_v48, %v2781_v14 }
 0x2ab   :  { %v602_v54 = vadd.f32 %v573_v49, %v559_v47  ;;  %v624_v47 = vld [vmem:[#allocation6 + $0x70] sm:$0xff] }
 0x2ad   :  { %v603_v55 = vmul.f32 0.5, %v602_v54 }
 0x2ae   :  { %v585_v57 = vpop.f32.mrf.mxu2 }
 0x2af   :  { %2243 = vtanh.f32 %v603_v55  ;;  %v586_v58 = vadd.f32 %v585_v57, %v2783_v15  ;;  %v598_v63 = vpop.f32.mrf.mxu3 }
 0x2b0   :  { %v574_v0 = vpop.f32.mrf.mxu1  ;;  %v599_v19 = vadd.f32 %v598_v63, %v2787_v37 }
 0x2b1   :  { %v607_v1 = vadd.f32 %v586_v58, %v560_v56 }
 0x2b3   :  { %v608_v2 = vmul.f32 0.5, %v607_v1 }
 0x2b5   :  { %v2244_v4 = vpop.eup %2243  ;;  %2245 = vtanh.f32 %v608_v2  ;;  %v2030_v2 = vld [vmem:[#allocation12 + $0xa8] sm:$0xf] }
 0x2b6   :  { %v605_v5 = vadd.f32 1.0, %v2244_v4  ;;  %v587_v13 = vpop.f32.mrf.mxu2  ;;  %v2182_v4 = vld [vmem:[#allocation12 + $0xb0] sm:$0xf0] }
 0x2b7   :  { %v600_v18 = vpop.f32.mrf.mxu3  ;;  %v2018_v13 = vld [vmem:[#allocation12 + $0x90] sm:$0xf] }
 0x2b8   :  { %v606_v20 = vmul.f32 0.5, %v605_v5  ;;  %v2031_v5 = vor.u32 %v2182_v4, %v2030_v2  ;;  %v2006_v18 = vld [vmem:[#allocation12 + $0x78] sm:$0xf] }
 0x2ba   :  { %v612_v22 = vmul.f32 %v606_v20, %v599_v19  ;;  %v2176_v19 = vld [vmem:[#allocation12 + $0x80] sm:$0xf0]  ;;  %v1994_v20 = vld [vmem:[#allocation12 + $0x60] sm:$0xf] }
 0x2bb   :  { %v2246_v23 = vpop.eup %2245 }
 0x2bc   :  { %v610_v27 = vadd.f32 1.0, %v2246_v23  ;;  %v613_v28 = vadd.f32 %v612_v22, %v561_v21  ;;  %v685_v22 = vld [vmem:[#allocation6 + $0x78] sm:$0xff] }
 0x2be   :  { %2247 = vtanh.f32 %v613_v28  ;;  %v611_v29 = vmul.f32 0.5, %v610_v27 }
 0x2c0   :  { %v615_v30 = vsub.f32 1.0, %v611_v29  ;;  %v617_v32 = vmul.f32 %v611_v29, %v2854_v45 }
 0x2c4   :  { %v2248_v31 = vpop.eup %2247 }
 0x2c5   :  { %v616_v36 = vmul.f32 %v2248_v31, %v615_v30  ;;  %v1982_v30 = vld [vmem:[#allocation12 + $0x48] sm:$0xf]  ;;  %v2170_v31 = vld [vmem:[#allocation12 + $0x50] sm:$0xf0] }
 0x2c7   :  { %v2886_v38 = vadd.f32 %v617_v32, %v616_v36 }
 0x2c9   :  { %v625_v39 = vpack.c.bf16 %v2886_v38, %v2886_v38  ;;  %v2945_v2 = vpack.c.bf16 %v2886_v38, %v2854_v45  ;;  %v2102_v45 = vld [vmem:[#allocation14 + $0x78] sm:$0xf] }
 0x2cb   :  { %634 = vmatmul.bf16.vlgmr.msrb.gmra.mxu0 %v625_v39  ;;  %647 = vmatmul.bf16.vlgmr.msrb.gmra.mxu1 %v625_v39 }
 0x2cc   :  { %660 = vmatmul.bf16.vlgmr.msrb.gmra.mxu2 %v625_v39  ;;  %778 = vmatpush.bf16.msrb.mxu0 %v2646_v8  ;;  %v1983_v39 = vor.u32 %v2170_v31, %v1982_v30  ;;  %v2180_v31 = vld [vmem:[#allocation12 + $0xa0] sm:$0xf0] }
 0x2cd   :  { %815 = vmatpush.bf16.msrb.mxu1 %v2642_v3  ;;  %828 = vmatpush.bf16.msrb.mxu2 %v2644_v7  ;;  %v622_v3 = vld [vmem:[#allocation6 + $0x60] sm:$0xff] }
 0x2d0   :  { %779 = vmatpush.bf16.msrb.mxu0 %v2656_v17 }
 0x2d1   :  { %816 = vmatpush.bf16.msrb.mxu1 %v2649_v12  ;;  %829 = vmatpush.bf16.msrb.mxu2 %v2654_v16  ;;  %v623_v12 = vld [vmem:[#allocation6 + $0x68] sm:$0xff] }
 0x2d4   :  { %780 = vmatpush.bf16.msrb.mxu0 %v2666_v26 }
 0x2d5   :  { %817 = vmatpush.bf16.msrb.mxu1 %v2659_v24  ;;  %830 = vmatpush.bf16.msrb.mxu2 %v2664_v25 }
 0x2d8   :  { %781 = vmatpush.bf16.msrb.mxu0 %v2676_v35 }
 0x2d9   :  { %818 = vmatpush.bf16.msrb.mxu1 %v2669_v33  ;;  %831 = vmatpush.bf16.msrb.mxu2 %v2674_v34 }
 0x2dc   :  { %782 = vmatpush.bf16.msrb.mxu0 %v2686_v44 }
 0x2dd   :  { %819 = vmatpush.bf16.msrb.mxu1 %v2679_v42  ;;  %832 = vmatpush.bf16.msrb.mxu2 %v2684_v43 }
 0x2e0   :  { %783 = vmatpush.bf16.msrb.mxu0 %v2696_v53 }
 0x2e1   :  { %820 = vmatpush.bf16.msrb.mxu1 %v2689_v51  ;;  %833 = vmatpush.bf16.msrb.mxu2 %v2694_v52 }
 0x2e4   :  { %784 = vmatpush.bf16.msrb.mxu0 %v2706_v62 }
 0x2e5   :  { %821 = vmatpush.bf16.msrb.mxu1 %v2699_v60  ;;  %834 = vmatpush.bf16.msrb.mxu2 %v2704_v61 }
 0x2e8   :  { %785 = vmatpush.bf16.msrb.mxu0 %v2716_v10 }
 0x2e9   :  { %822 = vmatpush.bf16.msrb.mxu1 %v2709_v6  ;;  %835 = vmatpush.bf16.msrb.mxu2 %v2714_v9 }
 0x348   :  { %v635_v7 = vpop.f32.mrf.mxu0  ;;  %v648_v16 = vpop.f32.mrf.mxu1 }
 0x349   :  { %v636_v24 = vadd.f32 %v635_v7, %v2781_v14  ;;  %v649_v25 = vadd.f32 %v648_v16, %v2783_v15  ;;  %v2167_v7 = vld [vmem:[#allocation12 + $0x38] sm:$0xf0] }
 0x34b   :  { %v665_v33 = vadd.f32 %v636_v24, %v622_v3  ;;  %v670_v34 = vadd.f32 %v649_v25, %v623_v12  ;;  %v1970_v3 = vld [vmem:[#allocation12 + $0x30] sm:$0xf]  ;;  %v1958_v25 = vld [vmem:[#allocation12 + $0x18] sm:$0xf] }
 0x34c   :  { %v1971_v16 = vor.u32 %v2167_v7, %v1970_v3  ;;  %v2175_v7 = vld [vmem:[#allocation12 + $0x7c] sm:$0xf] }
 0x34d   :  { %v666_v42 = vmul.f32 0.5, %v665_v33  ;;  %v671_v43 = vmul.f32 0.5, %v670_v34  ;;  %v2164_v33 = vld [vmem:[#allocation12 + $0x20] sm:$0xf0] }
 0x34f   :  { %2249 = vtanh.f32 %v666_v42  ;;  %v661_v51 = vpop.f32.mrf.mxu2  ;;  %v1959_v42 = vor.u32 %v2164_v33, %v1958_v25  ;;  %v2177_v33 = vld [vmem:[#allocation12 + $0x88] sm:$0xf0] }
 0x350   :  { %v637_v52 = vpop.f32.mrf.mxu0  ;;  %v650_v60 = vpop.f32.mrf.mxu1  ;;  %2251 = vtanh.f32 %v671_v43  ;;  %v662_v41 = vadd.f32 %v661_v51, %v2787_v37  ;;  %v1946_v43 = vld [vmem:[#allocation12] sm:$0xf]  ;;  %v2161_v51 = vld [vmem:[#allocation12 + $0x8] sm:$0xf0] }
 0x351   :  { %v1947_v60 = vor.u32 %v2161_v51, %v1946_v43  ;;  %v2188_v43 = vld [vmem:[#allocation14 + $0x20] sm:$0xf0] }
 0x355   :  { %v2250_v61 = vpop.eup %2249 }
 0x356   :  { %v668_v6 = vadd.f32 1.0, %v2250_v61  ;;  %v2252_v40 = vpop.eup %2251 }
 0x357   :  { %v663_v9 = vpop.f32.mrf.mxu2  ;;  %v673_v49 = vadd.f32 1.0, %v2252_v40 }
 0x358   :  { %v669_v46 = vmul.f32 0.5, %v668_v6 }
 0x359   :  { %v674_v55 = vmul.f32 0.5, %v673_v49 }
 0x35a   :  { %v675_v48 = vmul.f32 %v669_v46, %v662_v41  ;;  %v687_v41 = vld [vmem:[#allocation6 + $0x88] sm:$0xff] }
 0x35b   :  { %v678_v56 = vsub.f32 1.0, %v674_v55  ;;  %v680_v58 = vmul.f32 %v674_v55, %v2886_v38  ;;  %v2200_v38 = vld [vmem:[#allocation14 + $0x80] sm:$0xf0] }
 0x35c   :  { %v676_v54 = vadd.f32 %v675_v48, %v624_v47 }
 0x35e   :  { %2253 = vtanh.f32 %v676_v54 }
 0x364   :  { %v2254_v57 = vpop.eup %2253 }
 0x365   :  { %v679_v63 = vmul.f32 %v2254_v57, %v678_v56 }
 0x367   :  { %v2918_v0 = vadd.f32 %v680_v58, %v679_v63 }
 0x369   :  { %v688_v1 = vpack.c.bf16 %v2918_v0, %v2918_v0 }
 0x36b   :  { %697 = vmatmul.bf16.vlgmr.msrb.gmra.mxu3 %v688_v1  ;;  %710 = vmatmul.bf16.vlgmr.msra.gmra.mxu0 %v688_v1 }
 0x36c   :  { %723 = vmatmul.bf16.vlgmr.msra.gmra.mxu1 %v688_v1  ;;  %841 = vmatpush.bf16.msrb.mxu3 %v2646_v8  ;;  %v2179_v8 = vld [vmem:[#allocation12 + $0x98] sm:$0xf0]  ;;  %v2940_v1 = vpack.c.bf16 %v2822_v50, %v2790_v59  ;;  %v2114_v59 = vld [vmem:[#allocation14 + $0x90] sm:$0xf] }
 0x36d   :  { %1014 = vmatpush.bf16.msra.mxu0 %v2031_v5  ;;  %v2126_v5 = vld [vmem:[#allocation14 + $0xa8] sm:$0xf]  ;;  %v2203_v50 = vld [vmem:[#allocation14 + $0x98] sm:$0xf0] }
 0x370   :  { %842 = vmatpush.bf16.msrb.mxu3 %v2656_v17  ;;  %v2019_v17 = vor.u32 %v2179_v8, %v2018_v13  ;;  %v2206_v13 = vld [vmem:[#allocation14 + $0xb0] sm:$0xf0] }
 0x371   :  { %v2953_v8 = vor.u32 %v2206_v13, %v2126_v5  ;;  %v1984_v5 = vld [vmem:[#allocation12 + $0x54] sm:$0xf0]  ;;  %v1990_v13 = vld [vmem:[#allocation12 + $0x50] sm:$0xf] }
 0x372   :  { %1015 = vmatpush.bf16.msra.mxu0 %v2019_v17  ;;  %v2959_v17 = vor.u32 %v2200_v38, %v2102_v45 }
 0x374   :  { %843 = vmatpush.bf16.msrb.mxu3 %v2666_v26  ;;  %v2007_v26 = vor.u32 %v2176_v19, %v2006_v18  ;;  %v2956_v18 = vor.u32 %v2203_v50, %v2114_v59  ;;  %v2197_v19 = vld [vmem:[#allocation14 + $0x68] sm:$0xf0] }
 0x376   :  { %1016 = vmatpush.bf16.msra.mxu0 %v2007_v26 }
 0x378   :  { %844 = vmatpush.bf16.msrb.mxu3 %v2676_v35 }
 0x37c   :  { %845 = vmatpush.bf16.msrb.mxu3 %v2686_v44  ;;  %v2173_v44 = vld [vmem:[#allocation12 + $0x68] sm:$0xf0] }
 0x380   :  { %846 = vmatpush.bf16.msrb.mxu3 %v2696_v53  ;;  %v1995_v53 = vor.u32 %v2173_v44, %v1994_v20  ;;  %v2032_v20 = vld [vmem:[#allocation12 + $0xb4] sm:$0xf0]  ;;  %v2038_v44 = vld [vmem:[#allocation12 + $0xb0] sm:$0xf] }
 0x382   :  { %1017 = vmatpush.bf16.msra.mxu0 %v1995_v53  ;;  %v2183_v53 = vld [vmem:[#allocation12 + $0xb8] sm:$0xf0] }
 0x384   :  { %847 = vmatpush.bf16.msrb.mxu3 %v2706_v62 }
 0x386   :  { %1018 = vmatpush.bf16.msra.mxu0 %v1983_v39  ;;  %v2191_v39 = vld [vmem:[#allocation14 + $0x38] sm:$0xf0] }
 0x388   :  { %848 = vmatpush.bf16.msrb.mxu3 %v2716_v10  ;;  %v686_v10 = vld [vmem:[#allocation6 + $0x80] sm:$0xff] }
 0x38a   :  { %1019 = vmatpush.bf16.msra.mxu0 %v1971_v16  ;;  %v2014_v16 = vld [vmem:[#allocation12 + $0x80] sm:$0xf] }
 0x38e   :  { %1020 = vmatpush.bf16.msra.mxu0 %v1959_v42  ;;  %v2054_v42 = vld [vmem:[#allocation14 + $0x18] sm:$0xf] }
 0x38f   :  { %v2973_v51 = vor.u32 %v2188_v43, %v2054_v42  ;;  %v2162_v42 = vld [vmem:[#allocation12 + $0x10] sm:$0xf0] }
 0x392   :  { %1021 = vmatpush.bf16.msra.mxu0 %v1947_v60  ;;  %v1996_v60 = vld [vmem:[#allocation12 + $0x6c] sm:$0xf0] }
 0x3e8   :  { %v711_v35 = vpop.f32.mrf.mxu0 }
 0x3e9   :  { %v724_v21 = vpop.f32.mrf.mxu1  ;;  %v712_v62 = vadd.f32 %v711_v35, %v2783_v15  ;;  %v2181_v35 = vld [vmem:[#allocation12 + $0xac] sm:$0xf] }
 0x3ea   :  { %v725_v9 = vadd.f32 %v724_v21, %v2787_v37  ;;  %v2035_v21 = vor.u32 %v2181_v35, %v2032_v20  ;;  %v2166_v20 = vld [vmem:[#allocation12 + $0x34] sm:$0xf] }
 0x3eb   :  { %v733_v28 = vadd.f32 %v712_v62, %v686_v10  ;;  %v2039_v62 = vor.u32 %v2183_v53, %v2038_v44  ;;  %v2078_v10 = vld [vmem:[#allocation14 + $0x48] sm:$0xf]  ;;  %v1972_v44 = vld [vmem:[#allocation12 + $0x3c] sm:$0xf0] }
 0x3ec   :  { %1043 = vmatpush.bf16.msra.mxu1 %v2035_v21  ;;  %v1975_v53 = vor.u32 %v2166_v20, %v1972_v44  ;;  %v2193_v20 = vld [vmem:[#allocation14 + $0x4c] sm:$0xf]  ;;  %v2080_v44 = vld [vmem:[#allocation14 + $0x54] sm:$0xf0] }
 0x3ed   :  { %v734_v24 = vmul.f32 0.5, %v733_v28  ;;  %v2020_v28 = vld [vmem:[#allocation12 + $0x9c] sm:$0xf0] }
 0x3ee   :  { %v698_v23 = vpop.f32.mrf.mxu3 }
 0x3ef   :  { %v699_v27 = vadd.f32 %v698_v23, %v2781_v14 }
 0x3f0   :  { %v713_v29 = vpop.f32.mrf.mxu0 }
 0x3f1   :  { %v728_v32 = vadd.f32 %v699_v27, %v685_v22  ;;  %v726_v36 = vpop.f32.mrf.mxu1  ;;  %v2194_v22 = vld [vmem:[#allocation14 + $0x50] sm:$0xf0]  ;;  %v2026_v29 = vld [vmem:[#allocation12 + $0x98] sm:$0xf] }
 0x3f2   :  { %v2965_v23 = vor.u32 %v2194_v22, %v2078_v10  ;;  %v2178_v27 = vld [vmem:[#allocation12 + $0x94] sm:$0xf]  ;;  %v2066_v36 = vld [vmem:[#allocation14 + $0x30] sm:$0xf]  ;;  %v2168_v10 = vld [vmem:[#allocation12 + $0x40] sm:$0xf0] }
 0x3f3   :  { %v729_v12 = vmul.f32 0.5, %v728_v32  ;;  %v2023_v30 = vor.u32 %v2178_v27, %v2020_v28  ;;  %v2027_v32 = vor.u32 %v2180_v31, %v2026_v29  ;;  %v2968_v3 = vor.u32 %v2191_v39, %v2066_v36  ;;  %v2163_v29 = vld [vmem:[#allocation12 + $0x1c] sm:$0xf]  ;;  %v1966_v31 = vld [vmem:[#allocation12 + $0x20] sm:$0xf] }
 0x3f4   :  { %v2165_v36 = vld [vmem:[#allocation12 + $0x28] sm:$0xf0] }
 0x3f5   :  { %2255 = vtanh.f32 %v729_v12  ;;  %1044 = vmatpush.bf16.msra.mxu1 %v2023_v30  ;;  %v2008_v12 = vld [vmem:[#allocation12 + $0x84] sm:$0xf0]  ;;  %v1967_v39 = vor.u32 %v2165_v36, %v1966_v31  ;;  %v2187_v31 = vld [vmem:[#allocation14 + $0x1c] sm:$0xf] }
 0x3f6   :  { %v700_v34 = vpop.f32.mrf.mxu3  ;;  %2257 = vtanh.f32 %v734_v24  ;;  %v2011_v25 = vor.u32 %v2175_v7, %v2008_v12  ;;  %v1960_v30 = vld [vmem:[#allocation12 + $0x24] sm:$0xf0]  ;;  %v2160_v12 = vld [vmem:[#allocation12 + $0x4] sm:$0xf] }
 0x3f7   :  { %v2015_v34 = vor.u32 %v2177_v33, %v2014_v16  ;;  %v1948_v16 = vld [vmem:[#allocation12 + $0xc] sm:$0xf0] }
 0x3f9   :  { %1045 = vmatpush.bf16.msra.mxu1 %v2011_v25  ;;  %v1954_v25 = vld [vmem:[#allocation12 + $0x8] sm:$0xf] }
 0x3fa   :  { %v1955_v43 = vor.u32 %v2162_v42, %v1954_v25  ;;  %v2086_v42 = vld [vmem:[#allocation14 + $0x50] sm:$0xf] }
 0x3fb   :  { %v2256_v52 = vpop.eup %2255 }
 0x3fc   :  { %v731_v61 = vadd.f32 1.0, %v2256_v52  ;;  %v2258_v6 = vpop.eup %2257  ;;  %v2172_v52 = vld [vmem:[#allocation12 + $0x64] sm:$0xf] }
 0x3fd   :  { %v736_v47 = vadd.f32 1.0, %v2258_v6  ;;  %v1999_v6 = vor.u32 %v2172_v52, %v1996_v60 }
 0x3fe   :  { %v732_v40 = vmul.f32 0.5, %v731_v61  ;;  %v2002_v61 = vld [vmem:[#allocation12 + $0x68] sm:$0xf] }
 0x3ff   :  { %v737_v49 = vmul.f32 0.5, %v736_v47  ;;  %1046 = vmatpush.bf16.msra.mxu1 %v1999_v6  ;;  %v750_v6 = vld [vmem:[#allocation6 + $0xa0] sm:$0xff] }
 0x400   :  { %v738_v46 = vmul.f32 %v732_v40, %v725_v9  ;;  %v2174_v9 = vld [vmem:[#allocation12 + $0x70] sm:$0xf0]  ;;  %v748_v40 = vld [vmem:[#allocation6 + $0x90] sm:$0xff] }
 0x401   :  { %v741_v54 = vsub.f32 1.0, %v737_v49  ;;  %v743_v56 = vmul.f32 %v737_v49, %v2918_v0 }
 0x402   :  { %v739_v48 = vadd.f32 %v738_v46, %v687_v41  ;;  %v749_v46 = vld [vmem:[#allocation6 + $0x98] sm:$0xff] }
 0x404   :  { %2259 = vtanh.f32 %v739_v48  ;;  %v2003_v48 = vor.u32 %v2174_v9, %v2002_v61 }
 0x40a   :  { %v2260_v55 = vpop.eup %2259 }
 0x40b   :  { %v742_v57 = vmul.f32 %v2260_v55, %v741_v54  ;;  %v2042_v55 = vld [vmem:[#allocation14] sm:$0xf] }
 0x40d   :  { %v2934_v58 = vadd.f32 %v743_v56, %v742_v57  ;;  %v2185_v56 = vld [vmem:[#allocation14 + $0x8] sm:$0xf0] }
 0x40e   :  { %v2978_v57 = vor.u32 %v2185_v56, %v2042_v55  ;;  %v2205_v55 = vld [vmem:[#allocation14 + $0xac] sm:$0xf]  ;;  %v2128_v56 = vld [vmem:[#allocation14 + $0xb4] sm:$0xf0] }
 0x40f   :  { %v751_v63 = vpack.c.bf16 %v2934_v58, %v2934_v58  ;;  %v2950_v4 = vpack.c.bf16 %v2934_v58, %v2918_v0  ;;  %v2090_v0 = vld [vmem:[#allocation14 + $0x60] sm:$0xf] }
 0x410   :  { %v2962_v26 = vor.u32 %v2197_v19, %v2090_v0  ;;  %v2171_v0 = vld [vmem:[#allocation12 + $0x58] sm:$0xf0] }
 0x411   :  { %760 = vmatmul.bf16.vlgmr.msra.gmra.mxu2 %v751_v63  ;;  %773 = vmatmul.bf16.vlgmr.msra.gmra.mxu3 %v751_v63  ;;  %v1991_v19 = vor.u32 %v2171_v0, %v1990_v13  ;;  %v2202_v13 = vld [vmem:[#allocation14 + $0x94] sm:$0xf]  ;;  %v2196_v0 = vld [vmem:[#allocation14 + $0x64] sm:$0xf] }
 0x412   :  { %786 = vmatmul.bf16.vlgmr.msrb.gmra.mxu0 %v751_v63  ;;  %1289 = vmatpush.bf16.msra.mxu3 %v2953_v8  ;;  %v2169_v63 = vld [vmem:[#allocation12 + $0x4c] sm:$0xf] }
 0x413   :  { %1072 = vmatpush.bf16.msra.mxu2 %v2039_v62  ;;  %v1987_v38 = vor.u32 %v2169_v63, %v1984_v5  ;;  %v1978_v62 = vld [vmem:[#allocation12 + $0x38] sm:$0xf]  ;;  %v2988_v5 = vor.u32 %v2205_v55, %v2128_v56  ;;  %v812_v55 = vld [vmem:[#allocation6 + $0xb0] sm:$0xff] }
 0x414   :  { %v1979_v22 = vor.u32 %v2168_v10, %v1978_v62  ;;  %v2068_v62 = vld [vmem:[#allocation14 + $0x3c] sm:$0xf0]  ;;  %v2134_v10 = vld [vmem:[#allocation14 + $0xb0] sm:$0xf] }
 0x415   :  { %1047 = vmatpush.bf16.msra.mxu1 %v1987_v38 }
 0x416   :  { %1290 = vmatpush.bf16.msra.mxu3 %v2956_v18 }
 0x417   :  { %1073 = vmatpush.bf16.msra.mxu2 %v2027_v32  ;;  %v1963_v32 = vor.u32 %v2163_v29, %v1960_v30  ;;  %v2204_v29 = vld [vmem:[#allocation14 + $0xa0] sm:$0xf0] }
 0x419   :  { %1048 = vmatpush.bf16.msra.mxu1 %v1975_v53  ;;  %v2190_v53 = vld [vmem:[#allocation14 + $0x34] sm:$0xf] }
 0x41a   :  { %1291 = vmatpush.bf16.msra.mxu3 %v2959_v17  ;;  %v3017_v30 = vor.u32 %v2190_v53, %v2068_v62 }
 0x41b   :  { %1074 = vmatpush.bf16.msra.mxu2 %v2015_v34  ;;  %v1951_v34 = vor.u32 %v2160_v12, %v1948_v16  ;;  %v2201_v16 = vld [vmem:[#allocation14 + $0x88] sm:$0xf0] }
 0x41d   :  { %1049 = vmatpush.bf16.msra.mxu1 %v1963_v32  ;;  %v2056_v32 = vld [vmem:[#allocation14 + $0x24] sm:$0xf0] }
 0x41e   :  { %1292 = vmatpush.bf16.msra.mxu3 %v2962_v26  ;;  %v3025_v36 = vor.u32 %v2187_v31, %v2056_v32 }
 0x41f   :  { %1075 = vmatpush.bf16.msra.mxu2 %v2003_v48 }
 0x421   :  { %1050 = vmatpush.bf16.msra.mxu1 %v1951_v34  ;;  %v2198_v34 = vld [vmem:[#allocation14 + $0x70] sm:$0xf0] }
 0x422   :  { %1022 = vmatmul.bf16.vlgmr.msra.gmra.mxu0 %v2940_v1  ;;  %1293 = vmatpush.bf16.msra.mxu3 %v2965_v23 }
 0x423   :  { %1076 = vmatpush.bf16.msra.mxu2 %v1991_v19  ;;  %v2092_v19 = vld [vmem:[#allocation14 + $0x6c] sm:$0xf0] }
 0x426   :  { %1294 = vmatpush.bf16.msra.mxu3 %v2968_v3 }
 0x427   :  { %1077 = vmatpush.bf16.msra.mxu2 %v1979_v22  ;;  %v2207_v22 = vld [vmem:[#allocation14 + $0xb8] sm:$0xf0] }
 0x42a   :  { %1295 = vmatpush.bf16.msra.mxu3 %v2973_v51 }
 0x42b   :  { %1078 = vmatpush.bf16.msra.mxu2 %v1967_v39  ;;  %v2184_v39 = vld [vmem:[#allocation14 + $0x4] sm:$0xf] }
 0x42e   :  { %1296 = vmatpush.bf16.msra.mxu3 %v2978_v57 }
 0x42f   :  { %1079 = vmatpush.bf16.msra.mxu2 %v1955_v43  ;;  %v2195_v43 = vld [vmem:[#allocation14 + $0x58] sm:$0xf0] }
 0x432   :  { %1027 = vmatmul.bf16.gmra.mxu0 %v2945_v2 }
 0x442   :  { %1032 = vmatmul.bf16.gmra.mxu0 %v2950_v4 }
 0x48f   :  { %v2970_v24 = vpop.f32.mrf.mxu0 }
 0x490   :  { %v788_v60 = vadd.f32 %v2970_v24, %v2787_v37 }
 0x494   :  { %v761_v41 = vpop.f32.mrf.mxu2  ;;  %v774_v47 = vpop.f32.mrf.mxu3 }
 0x495   :  { %v762_v49 = vadd.f32 %v761_v41, %v2781_v14  ;;  %v775_v54 = vadd.f32 %v774_v47, %v2783_v15 }
 0x497   :  { %v791_v59 = vadd.f32 %v762_v49, %v748_v40  ;;  %v796_v50 = vadd.f32 %v775_v54, %v749_v46  ;;  %v789_v45 = vpop.f32.mrf.mxu0 }
 0x498   :  { %v2104_v45 = vld [vmem:[#allocation14 + $0x84] sm:$0xf0] }
 0x499   :  { %v792_v35 = vmul.f32 0.5, %v791_v59  ;;  %v797_v21 = vmul.f32 0.5, %v796_v50  ;;  %v2116_v59 = vld [vmem:[#allocation14 + $0x9c] sm:$0xf0] }
 0x49a   :  { %v2992_v50 = vor.u32 %v2202_v13, %v2116_v59 }
 0x49b   :  { %2261 = vtanh.f32 %v792_v35  ;;  %v3002_v35 = vor.u32 %v2196_v0, %v2092_v19 }
 0x49c   :  { %v763_v27 = vpop.f32.mrf.mxu2  ;;  %v776_v28 = vpop.f32.mrf.mxu3  ;;  %2263 = vtanh.f32 %v797_v21  ;;  %v3007_v21 = vor.u32 %v2193_v20, %v2080_v44  ;;  %v2050_v20 = vld [vmem:[#allocation14 + $0x8] sm:$0xf]  ;;  %v2186_v44 = vld [vmem:[#allocation14 + $0x10] sm:$0xf0] }
 0x49d   :  { %v2122_v27 = vld [vmem:[#allocation14 + $0x98] sm:$0xf]  ;;  %v3013_v28 = vor.u32 %v2207_v22, %v2134_v10  ;;  %v3081_v62 = vor.u32 %v2186_v44, %v2050_v20 }
 0x49e   :  { %v813_v22 = vld [vmem:[#allocation6 + $0xb8] sm:$0xff] }
 0x49f   :  { %1315 = vmatpush.bf16.msrb.mxu0 %v3013_v28 }
 0x4a1   :  { %v2262_v7 = vpop.eup %2261 }
 0x4a2   :  { %v794_v33 = vadd.f32 1.0, %v2262_v7  ;;  %v2264_v52 = vpop.eup %2263  ;;  %v2044_v7 = vld [vmem:[#allocation14 + $0xc] sm:$0xf0] }
 0x4a3   :  { %v799_v40 = vadd.f32 1.0, %v2264_v52  ;;  %v3031_v12 = vor.u32 %v2184_v39, %v2044_v7  ;;  %v3062_v52 = vor.u32 %v2195_v43, %v2086_v42 }
 0x4a4   :  { %v795_v61 = vmul.f32 0.5, %v794_v33  ;;  %v2098_v33 = vld [vmem:[#allocation14 + $0x68] sm:$0xf] }
 0x4a5   :  { %v800_v46 = vmul.f32 0.5, %v799_v40 }
 0x4a6   :  { %v801_v9 = vmul.f32 %v795_v61, %v788_v60  ;;  %v2074_v60 = vld [vmem:[#allocation14 + $0x38] sm:$0xf]  ;;  %v2192_v61 = vld [vmem:[#allocation14 + $0x40] sm:$0xf0] }
 0x4a7   :  { %v804_v47 = vsub.f32 1.0, %v800_v46  ;;  %v806_v54 = vmul.f32 %v800_v46, %v2934_v58  ;;  %v2199_v58 = vld [vmem:[#allocation14 + $0x7c] sm:$0xf] }
 0x4a8   :  { %v802_v41 = vadd.f32 %v801_v9, %v750_v6  ;;  %v2997_v38 = vor.u32 %v2199_v58, %v2104_v45  ;;  %v3067_v6 = vor.u32 %v2192_v61, %v2074_v60  ;;  %v811_v9 = vld [vmem:[#allocation6 + $0xa8] sm:$0xff]  ;;  %v1023_v61 = vpop.f32.mrf.mxu0 }
 0x4aa   :  { %2265 = vtanh.f32 %v802_v41 }
 0x4b0   :  { %v2266_v48 = vpop.eup %2265 }
 0x4b1   :  { %v805_v49 = vmul.f32 %v2266_v48, %v804_v47  ;;  %v2062_v47 = vld [vmem:[#allocation14 + $0x20] sm:$0xf]  ;;  %v2189_v48 = vld [vmem:[#allocation14 + $0x28] sm:$0xf0] }
 0x4b3   :  { %v2984_v63 = vadd.f32 %v806_v54, %v805_v49  ;;  %v3075_v54 = vor.u32 %v2189_v48, %v2062_v47  ;;  %v233_v47 = vld [vmem:[%s3358_s5] sm:$0x7]  ;;  %s2560_s5 = smov [#allocation18]  }
 0x4b4   :  { %s1813_s17 = sshll.u32 %s2560_s5, 4  ;;  %s1814_s17 = int_to_ptr.vmem [resolvable:$true] %s1813_s17 }
 0x4b5   :  { %v814_v24 = vpack.c.bf16 %v2984_v63, %v2984_v63 }
 0x4b7   :  { %823 = vmatmul.bf16.vlgmr.msrb.gmra.mxu1 %v814_v24  ;;  %836 = vmatmul.bf16.vlgmr.msrb.gmra.mxu2 %v814_v24 }
 0x4b8   :  { %849 = vmatmul.bf16.vlgmr.msrb.gmra.mxu3 %v814_v24  ;;  %1351 = vmatpush.bf16.msrb.mxu1 %v2953_v8 }
 0x4b9   :  { %1302 = vmatpush.bf16.msrb.mxu3 %v2988_v5  ;;  %1364 = vmatpush.bf16.msrb.mxu2 %v2988_v5 }
 0x4bc   :  { %1352 = vmatpush.bf16.msrb.mxu1 %v2956_v18 }
 0x4bd   :  { %1303 = vmatpush.bf16.msrb.mxu3 %v2992_v50  ;;  %1365 = vmatpush.bf16.msrb.mxu2 %v2992_v50 }
 0x4c0   :  { %1353 = vmatpush.bf16.msrb.mxu1 %v2959_v17 }
 0x4c1   :  { %1304 = vmatpush.bf16.msrb.mxu3 %v2997_v38  ;;  %1366 = vmatpush.bf16.msrb.mxu2 %v2997_v38 }
 0x4c4   :  { %1354 = vmatpush.bf16.msrb.mxu1 %v2962_v26 }
 0x4c5   :  { %1305 = vmatpush.bf16.msrb.mxu3 %v3002_v35  ;;  %1367 = vmatpush.bf16.msrb.mxu2 %v3002_v35 }
 0x4c7   :  { %1051 = vmatmul.bf16.vlgmr.msra.gmra.mxu1 %v2940_v1  ;;  %1080 = vmatmul.bf16.vlgmr.msra.gmra.mxu2 %v2940_v1  ;;  %v3021_v1 = vor.u32 %v2204_v29, %v2122_v27 }
 0x4c8   :  { %1297 = vmatmul.bf16.vlgmr.msra.gmra.mxu3 %v2559_v11  ;;  %1355 = vmatpush.bf16.msrb.mxu1 %v2965_v23 }
 0x4c9   :  { %1306 = vmatpush.bf16.msrb.mxu3 %v3007_v21  ;;  %1368 = vmatpush.bf16.msrb.mxu2 %v3007_v21 }
 0x4ca   :  { %1316 = vmatpush.bf16.msrb.mxu0 %v3021_v1 }
 0x4cc   :  { %1356 = vmatpush.bf16.msrb.mxu1 %v2968_v3 }
 0x4cd   :  { %1307 = vmatpush.bf16.msrb.mxu3 %v3017_v30  ;;  %1369 = vmatpush.bf16.msrb.mxu2 %v3017_v30 }
 0x4d0   :  { %1357 = vmatpush.bf16.msrb.mxu1 %v2973_v51 }
 0x4d1   :  { %1308 = vmatpush.bf16.msrb.mxu3 %v3025_v36  ;;  %1370 = vmatpush.bf16.msrb.mxu2 %v3025_v36 }
 0x4d4   :  { %1358 = vmatpush.bf16.msrb.mxu1 %v2978_v57 }
 0x4d5   :  { %1309 = vmatpush.bf16.msrb.mxu3 %v3031_v12  ;;  %1371 = vmatpush.bf16.msrb.mxu2 %v3031_v12 }
 0x4d7   :  { %1056 = vmatmul.bf16.gmra.mxu1 %v2945_v2  ;;  %1085 = vmatmul.bf16.gmra.mxu2 %v2945_v2  ;;  %v2110_v2 = vld [vmem:[#allocation14 + $0x80] sm:$0xf] }
 0x4d8   :  { %1427 = vmatpush.bf16.msra.mxu1 %v2988_v5  ;;  %1310 = vmatmul.bf16.vlgmr.msrb.gmra.mxu3 %v2559_v11  ;;  %v3054_v25 = vor.u32 %v2201_v16, %v2110_v2 }
 0x4d9   :  { %1377 = vmatpush.bf16.msra.mxu3 %v3013_v28  ;;  %1440 = vmatpush.bf16.msra.mxu2 %v3013_v28 }
 0x4da   :  { %1317 = vmatpush.bf16.msrb.mxu0 %v3054_v25 }
 0x4dc   :  { %1428 = vmatpush.bf16.msra.mxu1 %v2992_v50 }
 0x4dd   :  { %1378 = vmatpush.bf16.msra.mxu3 %v3021_v1  ;;  %1441 = vmatpush.bf16.msra.mxu2 %v3021_v1 }
 0x4e0   :  { %1429 = vmatpush.bf16.msra.mxu1 %v2997_v38 }
 0x4e1   :  { %1379 = vmatpush.bf16.msra.mxu3 %v3054_v25  ;;  %1442 = vmatpush.bf16.msra.mxu2 %v3054_v25 }
 0x4e4   :  { %1430 = vmatpush.bf16.msra.mxu1 %v3002_v35 }
 0x4e7   :  { %1061 = vmatmul.bf16.gmra.mxu1 %v2950_v4  ;;  %1090 = vmatmul.bf16.gmra.mxu2 %v2950_v4  ;;  %v3059_v4 = vor.u32 %v2198_v34, %v2098_v33 }
 0x4e8   :  { %1431 = vmatpush.bf16.msra.mxu1 %v3007_v21 }
 0x4e9   :  { %1318 = vmatpush.bf16.msrb.mxu0 %v3059_v4  ;;  %1380 = vmatpush.bf16.msra.mxu3 %v3059_v4 }
 0x4ea   :  { %1443 = vmatpush.bf16.msra.mxu2 %v3059_v4 }
 0x4ec   :  { %1432 = vmatpush.bf16.msra.mxu1 %v3017_v30 }
 0x4ed   :  { %1319 = vmatpush.bf16.msrb.mxu0 %v3062_v52  ;;  %1381 = vmatpush.bf16.msra.mxu3 %v3062_v52 }
 0x4ee   :  { %1444 = vmatpush.bf16.msra.mxu2 %v3062_v52 }
 0x4f0   :  { %1433 = vmatpush.bf16.msra.mxu1 %v3025_v36 }
 0x4f1   :  { %1320 = vmatpush.bf16.msrb.mxu0 %v3067_v6  ;;  %1382 = vmatpush.bf16.msra.mxu3 %v3067_v6 }
 0x4f2   :  { %1445 = vmatpush.bf16.msra.mxu2 %v3067_v6 }
 0x4f4   :  { %1434 = vmatpush.bf16.msra.mxu1 %v3031_v12 }
 0x4f5   :  { %1321 = vmatpush.bf16.msrb.mxu0 %v3075_v54  ;;  %1383 = vmatpush.bf16.msra.mxu3 %v3075_v54 }
 0x4f6   :  { %1446 = vmatpush.bf16.msra.mxu2 %v3075_v54 }
 0x4f9   :  { %1322 = vmatpush.bf16.msrb.mxu0 %v3081_v62  ;;  %1384 = vmatpush.bf16.msra.mxu3 %v3081_v62 }
 0x4fa   :  { %1447 = vmatpush.bf16.msra.mxu2 %v3081_v62 }
 0x4fd   :  { %1414 = vmatpush.bf16.msra.mxu0 %v2953_v8  ;;  %1477 = vmatpush.bf16.msrb.mxu3 %v2953_v8 }
 0x501   :  { %1415 = vmatpush.bf16.msra.mxu0 %v2956_v18  ;;  %1478 = vmatpush.bf16.msrb.mxu3 %v2956_v18 }
 0x505   :  { %1416 = vmatpush.bf16.msra.mxu0 %v2959_v17  ;;  %1479 = vmatpush.bf16.msrb.mxu3 %v2959_v17 }
 0x509   :  { %1417 = vmatpush.bf16.msra.mxu0 %v2962_v26  ;;  %1480 = vmatpush.bf16.msrb.mxu3 %v2962_v26 }
 0x50d   :  { %1418 = vmatpush.bf16.msra.mxu0 %v2965_v23  ;;  %1481 = vmatpush.bf16.msrb.mxu3 %v2965_v23 }
 0x511   :  { %1419 = vmatpush.bf16.msra.mxu0 %v2968_v3  ;;  %1482 = vmatpush.bf16.msrb.mxu3 %v2968_v3 }
 0x515   :  { %1420 = vmatpush.bf16.msra.mxu0 %v2973_v51  ;;  %1483 = vmatpush.bf16.msrb.mxu3 %v2973_v51 }
 0x519   :  { %1421 = vmatpush.bf16.msra.mxu0 %v2978_v57  ;;  %1484 = vmatpush.bf16.msrb.mxu3 %v2978_v57 }
 0x534   :  { %v824_v40 = vpop.f32.mrf.mxu1 }
 0x535   :  { %v825_v41 = vadd.f32 %v824_v40, %v2781_v14 }
 0x537   :  { %v854_v46 = vadd.f32 %v825_v41, %v811_v9  ;;  %v3114_v9 = vpop.f32.mrf.mxu0 }
 0x539   :  { %v855_v49 = vmul.f32 0.5, %v854_v46  ;;  %v234_v46 = vld [vmem:[#allocation15] sm:$0x7] }
 0x53a   :  { %v837_v56 = vpop.f32.mrf.mxu2  ;;  %v3125_v48 = vperm.slane %v234_v46, 0 }
 0x53b   :  { %2267 = vtanh.f32 %v855_v49  ;;  %v838_v24 = vadd.f32 %v837_v56, %v2783_v15  ;;  %v850_v13 = vpop.f32.mrf.mxu3  ;;  %v3127_v49 = vperm.slane %v233_v47, 0 }
 0x53c   :  { %v826_v14 = vpop.f32.mrf.mxu1  ;;  %v851_v15 = vadd.f32 %v850_v13, %v2787_v37  ;;  %v3133_v13 = vperm.slane %v234_v46, 1 }
 0x53d   :  { %v859_v59 = vadd.f32 %v838_v24, %v812_v55  ;;  %v1108_v24 = vadd.f32 %v3127_v49, %v1023_v61 }
 0x53f   :  { %v860_v58 = vmul.f32 0.5, %v859_v59  ;;  %v3135_v59 = vperm.slane %v233_v47, 1 }
 0x541   :  { %v2268_v45 = vpop.eup %2267  ;;  %2269 = vtanh.f32 %v860_v58 }
 0x542   :  { %v857_v0 = vadd.f32 1.0, %v2268_v45  ;;  %v839_v19 = vpop.f32.mrf.mxu2 }
 0x543   :  { %v852_v53 = vpop.f32.mrf.mxu3 }
 0x544   :  { %v858_v10 = vmul.f32 0.5, %v857_v0  ;;  %v1052_v58 = vpop.f32.mrf.mxu1 }
 0x545   :  { %v1109_v20 = vadd.f32 %v3135_v59, %v1052_v58 }
 0x546   :  { %v864_v27 = vmul.f32 %v858_v10, %v851_v15 }
 0x547   :  { %v2270_v29 = vpop.eup %2269 }
 0x548   :  { %v862_v31 = vadd.f32 1.0, %v2270_v29  ;;  %v865_v32 = vadd.f32 %v864_v27, %v813_v22  ;;  %v3143_v22 = vperm.slane %v234_v46, 2  ;;  %v3145_v29 = vperm.slane %v233_v47, 2 }
 0x54a   :  { %2271 = vtanh.f32 %v865_v32  ;;  %v863_v37 = vmul.f32 0.5, %v862_v31  ;;  %v1081_v31 = vpop.f32.mrf.mxu2 }
 0x54b   :  { %v1298_v39 = vpop.f32.mrf.mxu3 }
 0x54c   :  { %v867_v7 = vsub.f32 1.0, %v863_v37  ;;  %v869_v16 = vmul.f32 %v863_v37, %v2984_v63  ;;  %v1299_v56 = vadd.f32 %v1298_v39, %v3125_v48 }
 0x54e   :  { %v1328_v14 = vadd.f32 %v1299_v56, %v1108_v24  ;;  %v1054_v24 = vpop.f32.mrf.mxu1 }
 0x550   :  { %v2272_v2 = vpop.eup %2271  ;;  %v1329_v0 = vmul.f32 0.5, %v1328_v14 }
 0x551   :  { %v868_v33 = vmul.f32 %v2272_v2, %v867_v7  ;;  %v1110_v2 = vadd.f32 %v3145_v29, %v1081_v31 }
 0x552   :  { %2273 = vtanh.f32 %v1329_v0  ;;  %v1083_v14 = vpop.f32.mrf.mxu2 }
 0x553   :  { %v1300_v34 = vpop.f32.mrf.mxu3  ;;  %v870_v42 = vadd.f32 %v869_v16, %v868_v33 }
 0x555   :  { %v885_v43 = vpack.c.bf16 %v870_v42, %v2984_v63  ;;  %1792 = vst [vmem:[#allocation18] sm:$0xff] %v870_v42 }
 0x556   :  { %v3178_v58 = vpop.f32.mrf.mxu1  ;;  %1818 = dma.vmem_to_hbm [thread:$0]  %s1814_s17, 128, %s1816_s21, [#allocation19]  }
 0x557   :  { %1037 = vmatmul.bf16.gmra.mxu0 %v885_v43  ;;  %1066 = vmatmul.bf16.gmra.mxu1 %v885_v43 }
 0x558   :  { %1095 = vmatmul.bf16.gmra.mxu2 %v885_v43  ;;  %v2274_v10 = vpop.eup %2273 }
 0x559   :  { %v1331_v27 = vadd.f32 1.0, %v2274_v10 }
 0x55b   :  { %v1311_v60 = vpop.f32.mrf.mxu3  ;;  %v1332_v7 = vmul.f32 0.5, %v1331_v27 }
 0x55c   :  { %v1312_v45 = vadd.f32 %v1311_v60, %v3133_v13 }
 0x55e   :  { %v1333_v44 = vadd.f32 %v1312_v45, %v1109_v20  ;;  %v3180_v45 = vpop.f32.mrf.mxu2  ;;  %v3182_v0 = vpop.f32.mrf.mxu1 }
 0x560   :  { %v1334_v53 = vmul.f32 0.5, %v1333_v44 }
 0x562   :  { %2275 = vtanh.f32 %v1334_v53 }
 0x563   :  { %v1313_v63 = vpop.f32.mrf.mxu3 }
 0x566   :  { %v3184_v20 = vpop.f32.mrf.mxu2  ;;  %v3186_v44 = vpop.f32.mrf.mxu1 }
 0x567   :  { %1323 = vmatmul.bf16.vlgmr.msrb.gmra.mxu0 %v2559_v11  ;;  %v3116_v11 = vpop.f32.mrf.mxu0 }
 0x568   :  { %1490 = vmatpush.bf16.msrb.mxu0 %v2988_v5  ;;  %v2276_v37 = vpop.eup %2275 }
 0x569   :  { %v1336_v33 = vadd.f32 1.0, %v2276_v37 }
 0x56b   :  { %v1337_v42 = vmul.f32 0.5, %v1336_v33 }
 0x56c   :  { %1491 = vmatpush.bf16.msrb.mxu0 %v2992_v50 }
 0x56d   :  { %v1341_v60 = vsub.f32 1.0, %v1337_v42  ;;  %v1343_v61 = vmul.f32 0.0, %v1337_v42 }
 0x56e   :  { %v3188_v53 = vpop.f32.mrf.mxu2  ;;  %v3190_v10 = vpop.f32.mrf.mxu1 }
 0x56f   :  { %v3118_v40 = vpop.f32.mrf.mxu0 }
 0x570   :  { %1492 = vmatpush.bf16.msrb.mxu0 %v2997_v38 }
 0x574   :  { %1493 = vmatpush.bf16.msrb.mxu0 %v3002_v35 }
 0x576   :  { %v3192_v27 = vpop.f32.mrf.mxu2 }
 0x577   :  { %v3120_v41 = vpop.f32.mrf.mxu0 }
 0x578   :  { %1494 = vmatpush.bf16.msrb.mxu0 %v3007_v21 }
 0x57c   :  { %1495 = vmatpush.bf16.msrb.mxu0 %v3017_v30 }
 0x57f   :  { %v3129_v55 = vpop.f32.mrf.mxu0 }
 0x580   :  { %1496 = vmatpush.bf16.msrb.mxu0 %v3025_v36 }
 0x584   :  { %1497 = vmatpush.bf16.msrb.mxu0 %v3031_v12 }
 0x5d4   :  { %v3138_v19 = vpop.f32.mrf.mxu0  ;;  %v3194_v31 = vpop.f32.mrf.mxu1 }
 0x5d5   :  { %3364 = vst [vmem:[#allocation28_spill] sm:$0xff] %v3194_v31 }
 0x5dc   :  { %v3141_v15 = vpop.f32.mrf.mxu0  ;;  %v3198_v37 = vpop.f32.mrf.mxu1 }
 0x5dd   :  { %3363 = vst [vmem:[#allocation27_spill] sm:$0xff] %v3141_v15 }
 0x5de   :  { %3366 = vst [vmem:[#allocation30_spill] sm:$0xff] %v3198_v37 }
 0x5e4   :  { %v1324_v32 = vpop.f32.mrf.mxu0 }
 0x5e5   :  { %v1325_v39 = vadd.f32 %v1324_v32, %v3143_v22  ;;  %v3196_v32 = vpop.f32.mrf.mxu2 }
 0x5e6   :  { %3365 = vst [vmem:[#allocation29_spill] sm:$0xff] %v3196_v32 }
 0x5e7   :  { %v1338_v16 = vmul.f32 %v1332_v7, %v1325_v39 }
 0x5e9   :  { %v1339_v34 = vadd.f32 %v1338_v16, %v1110_v2  ;;  %v1111_v2 = vadd.f32 %v3127_v49, %v3114_v9 }
 0x5eb   :  { %2277 = vtanh.f32 %v1339_v34 }
 0x5ec   :  { %v1326_v43 = vpop.f32.mrf.mxu0 }
 0x5ed   :  { %v3200_v39 = vpop.f32.mrf.mxu2  ;;  %v1112_v43 = vadd.f32 %v3135_v59, %v1054_v24 }
 0x5ee   :  { %3367 = vst [vmem:[#allocation31_spill] sm:$0xff] %v3200_v39 }
 0x5f1   :  { %v2278_v63 = vpop.eup %2277 }
 0x5f2   :  { %v1342_v46 = vmul.f32 %v2278_v63, %v1341_v60 }
 0x5f4   :  { %v3149_v47 = vadd.f32 %v1343_v61, %v1342_v46 }
 0x5f6   :  { %1345 = vst [vmem:[#allocation17] sm:$0xff] %v3149_v47  ;;  %v1350_v56 = vpack.c.bf16 %v3149_v47, %v3149_v47 }
 0x5f8   :  { %1359 = vmatmul.bf16.vlgmr.msrb.gmra.mxu1 %v1350_v56  ;;  %1372 = vmatmul.bf16.vlgmr.msrb.gmra.mxu2 %v1350_v56 }
 0x5f9   :  { %1385 = vmatmul.bf16.vlgmr.msra.gmra.mxu3 %v1350_v56  ;;  %1503 = vmatpush.bf16.msrb.mxu1 %v3013_v28 }
 0x5fa   :  { %1540 = vmatpush.bf16.msrb.mxu2 %v2953_v8  ;;  %1553 = vmatpush.bf16.msra.mxu3 %v2988_v5 }
 0x5fd   :  { %1504 = vmatpush.bf16.msrb.mxu1 %v3021_v1 }
 0x5fe   :  { %1541 = vmatpush.bf16.msrb.mxu2 %v2956_v18  ;;  %1554 = vmatpush.bf16.msra.mxu3 %v2992_v50 }
 0x601   :  { %1505 = vmatpush.bf16.msrb.mxu1 %v3054_v25 }
 0x602   :  { %1542 = vmatpush.bf16.msrb.mxu2 %v2959_v17  ;;  %1555 = vmatpush.bf16.msra.mxu3 %v2997_v38 }
 0x605   :  { %1506 = vmatpush.bf16.msrb.mxu1 %v3059_v4 }
 0x606   :  { %1543 = vmatpush.bf16.msrb.mxu2 %v2962_v26  ;;  %1556 = vmatpush.bf16.msra.mxu3 %v3002_v35 }
 0x609   :  { %1507 = vmatpush.bf16.msrb.mxu1 %v3062_v52 }
 0x60a   :  { %1544 = vmatpush.bf16.msrb.mxu2 %v2965_v23  ;;  %1557 = vmatpush.bf16.msra.mxu3 %v3007_v21 }
 0x60d   :  { %1508 = vmatpush.bf16.msrb.mxu1 %v3067_v6 }
 0x60e   :  { %1545 = vmatpush.bf16.msrb.mxu2 %v2968_v3  ;;  %1558 = vmatpush.bf16.msra.mxu3 %v3017_v30 }
 0x611   :  { %1509 = vmatpush.bf16.msrb.mxu1 %v3075_v54 }
 0x612   :  { %1546 = vmatpush.bf16.msrb.mxu2 %v2973_v51  ;;  %1559 = vmatpush.bf16.msra.mxu3 %v3025_v36 }
 0x615   :  { %1510 = vmatpush.bf16.msrb.mxu1 %v3081_v62 }
 0x616   :  { %1547 = vmatpush.bf16.msrb.mxu2 %v2978_v57  ;;  %1560 = vmatpush.bf16.msra.mxu3 %v3031_v12 }
 0x675   :  { %v1360_v7 = vpop.f32.mrf.mxu1 }
 0x676   :  { %v1361_v16 = vadd.f32 %v1360_v7, %v3125_v48 }
 0x678   :  { %v1390_v33 = vadd.f32 %v1361_v16, %v1111_v2  ;;  %v1113_v2 = vadd.f32 %v3145_v29, %v1083_v14 }
 0x67a   :  { %v1391_v34 = vmul.f32 0.5, %v1390_v33 }
 0x67b   :  { %v1373_v42 = vpop.f32.mrf.mxu2 }
 0x67c   :  { %2279 = vtanh.f32 %v1391_v34  ;;  %v1374_v60 = vadd.f32 %v1373_v42, %v3133_v13  ;;  %v1386_v63 = vpop.f32.mrf.mxu3 }
 0x67d   :  { %v1362_v61 = vpop.f32.mrf.mxu1  ;;  %v1387_v9 = vadd.f32 %v1386_v63, %v3143_v22 }
 0x67e   :  { %v1395_v46 = vadd.f32 %v1374_v60, %v1112_v43 }
 0x680   :  { %v1396_v56 = vmul.f32 0.5, %v1395_v46 }
 0x682   :  { %v2280_v15 = vpop.eup %2279  ;;  %2281 = vtanh.f32 %v1396_v56 }
 0x683   :  { %v1393_v39 = vadd.f32 1.0, %v2280_v15  ;;  %v1375_v37 = vpop.f32.mrf.mxu2 }
 0x684   :  { %v1388_v32 = vpop.f32.mrf.mxu3 }
 0x685   :  { %v1394_v7 = vmul.f32 0.5, %v1393_v39  ;;  %v1115_v32 = vadd.f32 %v3135_v59, %v3178_v58 }
 0x687   :  { %v1400_v16 = vmul.f32 %v1394_v7, %v1387_v9 }
 0x688   :  { %v2282_v33 = vpop.eup %2281 }
 0x689   :  { %v1398_v24 = vadd.f32 1.0, %v2282_v33  ;;  %v1401_v34 = vadd.f32 %v1400_v16, %v1113_v2 }
 0x68b   :  { %2283 = vtanh.f32 %v1401_v34  ;;  %v1399_v42 = vmul.f32 0.5, %v1398_v24 }
 0x68d   :  { %v1403_v31 = vsub.f32 1.0, %v1399_v42  ;;  %v1405_v43 = vmul.f32 %v1399_v42, %v3149_v47 }
 0x691   :  { %v2284_v61 = vpop.eup %2283 }
 0x692   :  { %v1404_v60 = vmul.f32 %v2284_v61, %v1403_v31  ;;  %v1114_v31 = vadd.f32 %v3127_v49, %v3116_v11 }
 0x694   :  { %v1406_v46 = vadd.f32 %v1405_v43, %v1404_v60  ;;  %v1116_v43 = vadd.f32 %v3145_v29, %v3180_v45 }
 0x696   :  { %1408 = vst [vmem:[#allocation17 + $0x8] sm:$0xff] %v1406_v46  ;;  %v1413_v15 = vpack.c.bf16 %v1406_v46, %v1406_v46 }
 0x698   :  { %1422 = vmatmul.bf16.vlgmr.msra.gmra.mxu0 %v1413_v15  ;;  %1435 = vmatmul.bf16.vlgmr.msra.gmra.mxu1 %v1413_v15 }
 0x699   :  { %1448 = vmatmul.bf16.vlgmr.msra.gmra.mxu2 %v1413_v15  ;;  %1566 = vmatpush.bf16.msra.mxu0 %v3013_v28 }
 0x69a   :  { %1603 = vmatpush.bf16.msra.mxu1 %v2953_v8  ;;  %1616 = vmatpush.bf16.msra.mxu2 %v2988_v5 }
 0x69d   :  { %1567 = vmatpush.bf16.msra.mxu0 %v3021_v1 }
 0x69e   :  { %1604 = vmatpush.bf16.msra.mxu1 %v2956_v18  ;;  %1617 = vmatpush.bf16.msra.mxu2 %v2992_v50 }
 0x6a1   :  { %1568 = vmatpush.bf16.msra.mxu0 %v3054_v25 }
 0x6a2   :  { %1605 = vmatpush.bf16.msra.mxu1 %v2959_v17  ;;  %1618 = vmatpush.bf16.msra.mxu2 %v2997_v38 }
 0x6a5   :  { %1569 = vmatpush.bf16.msra.mxu0 %v3059_v4 }
 0x6a6   :  { %1606 = vmatpush.bf16.msra.mxu1 %v2962_v26  ;;  %1619 = vmatpush.bf16.msra.mxu2 %v3002_v35 }
 0x6a9   :  { %1570 = vmatpush.bf16.msra.mxu0 %v3062_v52 }
 0x6aa   :  { %1607 = vmatpush.bf16.msra.mxu1 %v2965_v23  ;;  %1620 = vmatpush.bf16.msra.mxu2 %v3007_v21 }
 0x6ad   :  { %1571 = vmatpush.bf16.msra.mxu0 %v3067_v6 }
 0x6ae   :  { %1608 = vmatpush.bf16.msra.mxu1 %v2968_v3  ;;  %1621 = vmatpush.bf16.msra.mxu2 %v3017_v30 }
 0x6b1   :  { %1572 = vmatpush.bf16.msra.mxu0 %v3075_v54 }
 0x6b2   :  { %1609 = vmatpush.bf16.msra.mxu1 %v2973_v51  ;;  %1622 = vmatpush.bf16.msra.mxu2 %v3025_v36 }
 0x6b5   :  { %1573 = vmatpush.bf16.msra.mxu0 %v3081_v62 }
 0x6b6   :  { %1610 = vmatpush.bf16.msra.mxu1 %v2978_v57  ;;  %1623 = vmatpush.bf16.msra.mxu2 %v3031_v12 }
 0x715   :  { %v1423_v47 = vpop.f32.mrf.mxu0  ;;  %v1436_v14 = vpop.f32.mrf.mxu1 }
 0x716   :  { %v1424_v37 = vadd.f32 %v1423_v47, %v3125_v48  ;;  %v1437_v39 = vadd.f32 %v1436_v14, %v3133_v13 }
 0x718   :  { %v1453_v63 = vadd.f32 %v1424_v37, %v1114_v31  ;;  %v1458_v56 = vadd.f32 %v1437_v39, %v1115_v32 }
 0x71a   :  { %v1454_v9 = vmul.f32 0.5, %v1453_v63  ;;  %v1459_v7 = vmul.f32 0.5, %v1458_v56 }
 0x71c   :  { %2285 = vtanh.f32 %v1454_v9  ;;  %v1449_v2 = vpop.f32.mrf.mxu2 }
 0x71d   :  { %v1425_v16 = vpop.f32.mrf.mxu0  ;;  %v1438_v33 = vpop.f32.mrf.mxu1  ;;  %2287 = vtanh.f32 %v1459_v7  ;;  %v1450_v61 = vadd.f32 %v1449_v2, %v3143_v22  ;;  %v1118_v7 = vadd.f32 %v3135_v59, %v3182_v0 }
 0x71e   :  { %v1117_v16 = vadd.f32 %v3127_v49, %v3118_v40  ;;  %v1119_v40 = vadd.f32 %v3145_v29, %v3184_v20 }
 0x722   :  { %v2286_v24 = vpop.eup %2285 }
 0x723   :  { %v1456_v34 = vadd.f32 1.0, %v2286_v24  ;;  %v2288_v11 = vpop.eup %2287 }
 0x724   :  { %v1451_v42 = vpop.f32.mrf.mxu2  ;;  %v1461_v15 = vadd.f32 1.0, %v2288_v11 }
 0x725   :  { %v1457_v58 = vmul.f32 0.5, %v1456_v34 }
 0x726   :  { %v1462_v14 = vmul.f32 0.5, %v1461_v15 }
 0x727   :  { %v1463_v60 = vmul.f32 %v1457_v58, %v1450_v61 }
 0x728   :  { %v1466_v31 = vsub.f32 1.0, %v1462_v14  ;;  %v1468_v37 = vmul.f32 %v1462_v14, %v1406_v46 }
 0x729   :  { %v1464_v47 = vadd.f32 %v1463_v60, %v1116_v43 }
 0x72b   :  { %2289 = vtanh.f32 %v1464_v47 }
 0x731   :  { %v2290_v32 = vpop.eup %2289 }
 0x732   :  { %v1467_v39 = vmul.f32 %v2290_v32, %v1466_v31 }
 0x734   :  { %v1469_v63 = vadd.f32 %v1468_v37, %v1467_v39 }
 0x736   :  { %1471 = vst [vmem:[#allocation17 + $0x10] sm:$0xff] %v1469_v63  ;;  %v1476_v56 = vpack.c.bf16 %v1469_v63, %v1469_v63 }
 0x738   :  { %1485 = vmatmul.bf16.vlgmr.msrb.gmra.mxu3 %v1476_v56  ;;  %1498 = vmatmul.bf16.vlgmr.msrb.gmra.mxu0 %v1476_v56 }
 0x739   :  { %1511 = vmatmul.bf16.vlgmr.msrb.gmra.mxu1 %v1476_v56  ;;  %1629 = vmatpush.bf16.msrb.mxu3 %v3013_v28 }
 0x73a   :  { %1666 = vmatpush.bf16.msrb.mxu0 %v2953_v8  ;;  %1679 = vmatpush.bf16.msrb.mxu1 %v2988_v5 }
 0x73d   :  { %1630 = vmatpush.bf16.msrb.mxu3 %v3021_v1 }
 0x73e   :  { %1667 = vmatpush.bf16.msrb.mxu0 %v2956_v18  ;;  %1680 = vmatpush.bf16.msrb.mxu1 %v2992_v50 }
 0x741   :  { %1631 = vmatpush.bf16.msrb.mxu3 %v3054_v25 }
 0x742   :  { %1668 = vmatpush.bf16.msrb.mxu0 %v2959_v17  ;;  %1681 = vmatpush.bf16.msrb.mxu1 %v2997_v38 }
 0x745   :  { %1632 = vmatpush.bf16.msrb.mxu3 %v3059_v4 }
 0x746   :  { %1669 = vmatpush.bf16.msrb.mxu0 %v2962_v26  ;;  %1682 = vmatpush.bf16.msrb.mxu1 %v3002_v35 }
 0x749   :  { %1633 = vmatpush.bf16.msrb.mxu3 %v3062_v52 }
 0x74a   :  { %1670 = vmatpush.bf16.msrb.mxu0 %v2965_v23  ;;  %1683 = vmatpush.bf16.msrb.mxu1 %v3007_v21 }
 0x74d   :  { %1634 = vmatpush.bf16.msrb.mxu3 %v3067_v6 }
 0x74e   :  { %1671 = vmatpush.bf16.msrb.mxu0 %v2968_v3  ;;  %1684 = vmatpush.bf16.msrb.mxu1 %v3017_v30 }
 0x751   :  { %1635 = vmatpush.bf16.msrb.mxu3 %v3075_v54 }
 0x752   :  { %1672 = vmatpush.bf16.msrb.mxu0 %v2973_v51  ;;  %1685 = vmatpush.bf16.msrb.mxu1 %v3025_v36 }
 0x755   :  { %1636 = vmatpush.bf16.msrb.mxu3 %v3081_v62 }
 0x756   :  { %1673 = vmatpush.bf16.msrb.mxu0 %v2978_v57  ;;  %1686 = vmatpush.bf16.msrb.mxu1 %v3031_v12 }
 0x7b5   :  { %v1499_v45 = vpop.f32.mrf.mxu0 }
 0x7b6   :  { %v1512_v46 = vpop.f32.mrf.mxu1  ;;  %v1500_v9 = vadd.f32 %v1499_v45, %v3133_v13 }
 0x7b7   :  { %v1513_v0 = vadd.f32 %v1512_v46, %v3143_v22 }
 0x7b8   :  { %v1521_v24 = vadd.f32 %v1500_v9, %v1118_v7 }
 0x7ba   :  { %v1522_v58 = vmul.f32 0.5, %v1521_v24 }
 0x7bb   :  { %v1486_v2 = vpop.f32.mrf.mxu3 }
 0x7bc   :  { %v1487_v33 = vadd.f32 %v1486_v2, %v3125_v48 }
 0x7bd   :  { %v1501_v34 = vpop.f32.mrf.mxu0 }
 0x7be   :  { %v1516_v42 = vadd.f32 %v1487_v33, %v1117_v16  ;;  %v1514_v11 = vpop.f32.mrf.mxu1 }
 0x7c0   :  { %v1517_v61 = vmul.f32 0.5, %v1516_v42 }
 0x7c2   :  { %2291 = vtanh.f32 %v1517_v61 }
 0x7c3   :  { %v1488_v43 = vpop.f32.mrf.mxu3  ;;  %2293 = vtanh.f32 %v1522_v58 }
 0x7c8   :  { %v2292_v60 = vpop.eup %2291 }
 0x7c9   :  { %v1519_v15 = vadd.f32 1.0, %v2292_v60  ;;  %v2294_v47 = vpop.eup %2293 }
 0x7ca   :  { %v1524_v32 = vadd.f32 1.0, %v2294_v47 }
 0x7cb   :  { %v1520_v14 = vmul.f32 0.5, %v1519_v15  ;;  %v1123_v15 = vadd.f32 %v3127_v49, %v3129_v55 }
 0x7cc   :  { %v1525_v39 = vmul.f32 0.5, %v1524_v32 }
 0x7cd   :  { %v1526_v31 = vmul.f32 %v1520_v14, %v1513_v0 }
 0x7ce   :  { %v1529_v56 = vsub.f32 1.0, %v1525_v39  ;;  %v1531_v9 = vmul.f32 %v1525_v39, %v1469_v63  ;;  %v1125_v39 = vadd.f32 %v3145_v29, %v3192_v27  ;;  %v1126_v27 = vadd.f32 %v3127_v49, %v3138_v19 }
 0x7cf   :  { %v1527_v37 = vadd.f32 %v1526_v31, %v1119_v40 }
 0x7d1   :  { %2295 = vtanh.f32 %v1527_v37 }
 0x7d7   :  { %v2296_v45 = vpop.eup %2295 }
 0x7d8   :  { %v1530_v7 = vmul.f32 %v2296_v45, %v1529_v56 }
 0x7da   :  { %v1532_v2 = vadd.f32 %v1531_v9, %v1530_v7 }
 0x7dc   :  { %1534 = vst [vmem:[#allocation17 + $0x18] sm:$0xff] %v1532_v2  ;;  %v1539_v16 = vpack.c.bf16 %v1532_v2, %v1532_v2 }
 0x7de   :  { %1548 = vmatmul.bf16.vlgmr.msrb.gmra.mxu2 %v1539_v16  ;;  %1561 = vmatmul.bf16.vlgmr.msra.gmra.mxu3 %v1539_v16 }
 0x7df   :  { %1574 = vmatmul.bf16.vlgmr.msra.gmra.mxu0 %v1539_v16  ;;  %1692 = vmatpush.bf16.msrb.mxu2 %v3013_v28 }
 0x7e0   :  { %1729 = vmatpush.bf16.msra.mxu3 %v2953_v8  ;;  %1742 = vmatpush.bf16.msra.mxu0 %v2988_v5 }
 0x7e3   :  { %1693 = vmatpush.bf16.msrb.mxu2 %v3021_v1 }
 0x7e4   :  { %1730 = vmatpush.bf16.msra.mxu3 %v2956_v18  ;;  %1743 = vmatpush.bf16.msra.mxu0 %v2992_v50 }
 0x7e7   :  { %1694 = vmatpush.bf16.msrb.mxu2 %v3054_v25 }
 0x7e8   :  { %1731 = vmatpush.bf16.msra.mxu3 %v2959_v17  ;;  %1744 = vmatpush.bf16.msra.mxu0 %v2997_v38 }
 0x7eb   :  { %1695 = vmatpush.bf16.msrb.mxu2 %v3059_v4 }
 0x7ec   :  { %1732 = vmatpush.bf16.msra.mxu3 %v2962_v26  ;;  %1745 = vmatpush.bf16.msra.mxu0 %v3002_v35  ;;  %v1120_v26 = vadd.f32 %v3127_v49, %v3120_v41 }
 0x7ef   :  { %1696 = vmatpush.bf16.msrb.mxu2 %v3062_v52 }
 0x7f0   :  { %1733 = vmatpush.bf16.msra.mxu3 %v2965_v23  ;;  %1746 = vmatpush.bf16.msra.mxu0 %v3007_v21  ;;  %v1121_v23 = vadd.f32 %v3135_v59, %v3186_v44  ;;  %v1122_v44 = vadd.f32 %v3145_v29, %v3188_v53 }
 0x7f3   :  { %1697 = vmatpush.bf16.msrb.mxu2 %v3067_v6 }
 0x7f4   :  { %1734 = vmatpush.bf16.msra.mxu3 %v2968_v3  ;;  %1747 = vmatpush.bf16.msra.mxu0 %v3017_v30 }
 0x7f7   :  { %1698 = vmatpush.bf16.msrb.mxu2 %v3075_v54 }
 0x7f8   :  { %1735 = vmatpush.bf16.msra.mxu3 %v2973_v51  ;;  %1748 = vmatpush.bf16.msra.mxu0 %v3025_v36 }
 0x7fb   :  { %1699 = vmatpush.bf16.msrb.mxu2 %v3081_v62 }
 0x7fc   :  { %1736 = vmatpush.bf16.msra.mxu3 %v2978_v57  ;;  %1749 = vmatpush.bf16.msra.mxu0 %v3031_v12 }
 0x85c   :  { %v1575_v8 = vpop.f32.mrf.mxu0 }
 0x85d   :  { %v1576_v41 = vadd.f32 %v1575_v8, %v3143_v22 }
 0x861   :  { %v1549_v18 = vpop.f32.mrf.mxu2  ;;  %v1562_v17 = vpop.f32.mrf.mxu3 }
 0x862   :  { %v1550_v3 = vadd.f32 %v1549_v18, %v3125_v48  ;;  %v1563_v51 = vadd.f32 %v1562_v17, %v3133_v13 }
 0x864   :  { %v1579_v5 = vadd.f32 %v1550_v3, %v1120_v26  ;;  %v1584_v50 = vadd.f32 %v1563_v51, %v1121_v23  ;;  %v1577_v38 = vpop.f32.mrf.mxu0  ;;  %v3368_v51 = vld [vmem:[#allocation28_spill] sm:$0xff] }
 0x866   :  { %v1580_v35 = vmul.f32 0.5, %v1579_v5  ;;  %v1585_v57 = vmul.f32 0.5, %v1584_v50  ;;  %v1127_v5 = vadd.f32 %v3135_v59, %v3368_v51 }
 0x868   :  { %2297 = vtanh.f32 %v1580_v35 }
 0x869   :  { %v1551_v21 = vpop.f32.mrf.mxu2  ;;  %v1564_v30 = vpop.f32.mrf.mxu3  ;;  %2299 = vtanh.f32 %v1585_v57 }
 0x86e   :  { %v2298_v36 = vpop.eup %2297 }
 0x86f   :  { %v1582_v12 = vadd.f32 1.0, %v2298_v36  ;;  %v2300_v20 = vpop.eup %2299 }
 0x870   :  { %v1587_v33 = vadd.f32 1.0, %v2300_v20 }
 0x871   :  { %v1583_v63 = vmul.f32 0.5, %v1582_v12 }
 0x872   :  { %v1588_v34 = vmul.f32 0.5, %v1587_v33 }
 0x873   :  { %v1589_v46 = vmul.f32 %v1583_v63, %v1576_v41 }
 0x874   :  { %v1592_v42 = vsub.f32 1.0, %v1588_v34  ;;  %v1594_v58 = vmul.f32 %v1588_v34, %v1532_v2 }
 0x875   :  { %v1590_v24 = vadd.f32 %v1589_v46, %v1122_v44 }
 0x877   :  { %2301 = vtanh.f32 %v1590_v24  ;;  %v3369_v24 = vld [vmem:[#allocation29_spill] sm:$0xff] }
 0x878   :  { %v1128_v34 = vadd.f32 %v3145_v29, %v3369_v24 }
 0x87d   :  { %v2302_v11 = vpop.eup %2301 }
 0x87e   :  { %v1593_v61 = vmul.f32 %v2302_v11, %v1592_v42 }
 0x880   :  { %v1595_v43 = vadd.f32 %v1594_v58, %v1593_v61 }
 0x882   :  { %1597 = vst [vmem:[#allocation17 + $0x20] sm:$0xff] %v1595_v43  ;;  %v1602_v60 = vpack.c.bf16 %v1595_v43, %v1595_v43 }
 0x884   :  { %1611 = vmatmul.bf16.vlgmr.msra.gmra.mxu1 %v1602_v60  ;;  %1624 = vmatmul.bf16.vlgmr.msra.gmra.mxu2 %v1602_v60 }
 0x885   :  { %1637 = vmatmul.bf16.vlgmr.msrb.gmra.mxu3 %v1602_v60  ;;  %1755 = vmatpush.bf16.msra.mxu1 %v3013_v28 }
 0x889   :  { %1756 = vmatpush.bf16.msra.mxu1 %v3021_v1 }
 0x88d   :  { %1757 = vmatpush.bf16.msra.mxu1 %v3054_v25  ;;  %v1124_v25 = vadd.f32 %v3135_v59, %v3190_v10 }
 0x891   :  { %1758 = vmatpush.bf16.msra.mxu1 %v3059_v4 }
 0x895   :  { %1759 = vmatpush.bf16.msra.mxu1 %v3062_v52 }
 0x899   :  { %1760 = vmatpush.bf16.msra.mxu1 %v3067_v6 }
 0x89d   :  { %1761 = vmatpush.bf16.msra.mxu1 %v3075_v54 }
 0x8a1   :  { %1762 = vmatpush.bf16.msra.mxu1 %v3081_v62 }
 0x901   :  { %v1612_v53 = vpop.f32.mrf.mxu1 }
 0x902   :  { %v1613_v28 = vadd.f32 %v1612_v53, %v3125_v48 }
 0x904   :  { %v1642_v47 = vadd.f32 %v1613_v28, %v1123_v15 }
 0x906   :  { %v1643_v1 = vmul.f32 0.5, %v1642_v47 }
 0x907   :  { %v1625_v0 = vpop.f32.mrf.mxu2 }
 0x908   :  { %2303 = vtanh.f32 %v1643_v1  ;;  %v1626_v4 = vadd.f32 %v1625_v0, %v3133_v13  ;;  %v1638_v52 = vpop.f32.mrf.mxu3 }
 0x909   :  { %v1614_v6 = vpop.f32.mrf.mxu1  ;;  %v1639_v32 = vadd.f32 %v1638_v52, %v3143_v22 }
 0x90a   :  { %v1647_v54 = vadd.f32 %v1626_v4, %v1124_v25  ;;  %v3370_v4 = vld [vmem:[#allocation30_spill] sm:$0xff] }
 0x90b   :  { %v1130_v52 = vadd.f32 %v3135_v59, %v3370_v4 }
 0x90c   :  { %v1648_v14 = vmul.f32 0.5, %v1647_v54  ;;  %v3371_v54 = vld [vmem:[#allocation27_spill] sm:$0xff] }
 0x90e   :  { %v2304_v62 = vpop.eup %2303  ;;  %2305 = vtanh.f32 %v1648_v14  ;;  %v1129_v14 = vadd.f32 %v3127_v49, %v3371_v54 }
 0x90f   :  { %v1645_v40 = vadd.f32 1.0, %v2304_v62  ;;  %v1627_v31 = vpop.f32.mrf.mxu2 }
 0x910   :  { %v1640_v55 = vpop.f32.mrf.mxu3 }
 0x911   :  { %v1646_v37 = vmul.f32 0.5, %v1645_v40 }
 0x913   :  { %v1652_v56 = vmul.f32 %v1646_v37, %v1639_v32 }
 0x914   :  { %v2306_v10 = vpop.eup %2305 }
 0x915   :  { %v1650_v45 = vadd.f32 1.0, %v2306_v10  ;;  %v1653_v9 = vadd.f32 %v1652_v56, %v1125_v39 }
 0x917   :  { %2307 = vtanh.f32 %v1653_v9  ;;  %v1651_v7 = vmul.f32 0.5, %v1650_v45 }
 0x919   :  { %v1655_v2 = vsub.f32 1.0, %v1651_v7  ;;  %v1657_v8 = vmul.f32 %v1651_v7, %v1595_v43  ;;  %v3372_v7 = vld [vmem:[#allocation31_spill] sm:$0xff] }
 0x91a   :  { %v1131_v49 = vadd.f32 %v3145_v29, %v3372_v7 }
 0x91d   :  { %v2308_v16 = vpop.eup %2307 }
 0x91e   :  { %v1656_v18 = vmul.f32 %v2308_v16, %v1655_v2 }
 0x920   :  { %v1658_v17 = vadd.f32 %v1657_v8, %v1656_v18 }
 0x922   :  { %1660 = vst [vmem:[#allocation17 + $0x28] sm:$0xff] %v1658_v17  ;;  %v1665_v26 = vpack.c.bf16 %v1658_v17, %v1658_v17 }
 0x924   :  { %1674 = vmatmul.bf16.vlgmr.msrb.gmra.mxu0 %v1665_v26  ;;  %1687 = vmatmul.bf16.vlgmr.msrb.gmra.mxu1 %v1665_v26 }
 0x925   :  { %1700 = vmatmul.bf16.vlgmr.msrb.gmra.mxu2 %v1665_v26 }
 0x9a1   :  { %v1675_v23 = vpop.f32.mrf.mxu0  ;;  %v1688_v3 = vpop.f32.mrf.mxu1 }
 0x9a2   :  { %v1676_v50 = vadd.f32 %v1675_v23, %v3125_v48  ;;  %v1689_v38 = vadd.f32 %v1688_v3, %v3133_v13 }
 0x9a4   :  { %v1705_v35 = vadd.f32 %v1676_v50, %v1126_v27  ;;  %v1710_v57 = vadd.f32 %v1689_v38, %v1127_v5 }
 0x9a6   :  { %v1706_v21 = vmul.f32 0.5, %v1705_v35  ;;  %v1711_v30 = vmul.f32 0.5, %v1710_v57 }
 0x9a8   :  { %2309 = vtanh.f32 %v1706_v21  ;;  %v1701_v36 = vpop.f32.mrf.mxu2 }
 0x9a9   :  { %v1677_v12 = vpop.f32.mrf.mxu0  ;;  %v1690_v20 = vpop.f32.mrf.mxu1  ;;  %2311 = vtanh.f32 %v1711_v30  ;;  %v1702_v46 = vadd.f32 %v1701_v36, %v3143_v22 }
 0x9ae   :  { %v2310_v41 = vpop.eup %2309 }
 0x9af   :  { %v1708_v63 = vadd.f32 1.0, %v2310_v41  ;;  %v2312_v19 = vpop.eup %2311 }
 0x9b0   :  { %v1703_v44 = vpop.f32.mrf.mxu2  ;;  %v1713_v11 = vadd.f32 1.0, %v2312_v19 }
 0x9b1   :  { %v1709_v33 = vmul.f32 0.5, %v1708_v63 }
 0x9b2   :  { %v1714_v58 = vmul.f32 0.5, %v1713_v11 }
 0x9b3   :  { %v1715_v42 = vmul.f32 %v1709_v33, %v1702_v46 }
 0x9b4   :  { %v1718_v43 = vsub.f32 1.0, %v1714_v58  ;;  %v1720_v53 = vmul.f32 %v1714_v58, %v1658_v17 }
 0x9b5   :  { %v1716_v61 = vadd.f32 %v1715_v42, %v1128_v34 }
 0x9b7   :  { %2313 = vtanh.f32 %v1716_v61 }
 0x9bd   :  { %v2314_v60 = vpop.eup %2313 }
 0x9be   :  { %v1719_v15 = vmul.f32 %v2314_v60, %v1718_v43 }
 0x9c0   :  { %v1721_v28 = vadd.f32 %v1720_v53, %v1719_v15 }
 0x9c2   :  { %1723 = vst [vmem:[#allocation17 + $0x30] sm:$0xff] %v1721_v28  ;;  %v1728_v47 = vpack.c.bf16 %v1721_v28, %v1721_v28 }
 0x9c4   :  { %1737 = vmatmul.bf16.vlgmr.msra.gmra.mxu3 %v1728_v47  ;;  %1750 = vmatmul.bf16.vlgmr.msra.gmra.mxu0 %v1728_v47 }
 0x9c5   :  { %1763 = vmatmul.bf16.vlgmr.msra.gmra.mxu1 %v1728_v47 }
 0xa41   :  { %v1751_v1 = vpop.f32.mrf.mxu0 }
 0xa42   :  { %v1764_v0 = vpop.f32.mrf.mxu1  ;;  %v1752_v25 = vadd.f32 %v1751_v1, %v3133_v13 }
 0xa43   :  { %v1765_v59 = vadd.f32 %v1764_v0, %v3143_v22 }
 0xa44   :  { %v1773_v40 = vadd.f32 %v1752_v25, %v1130_v52 }
 0xa46   :  { %v1774_v39 = vmul.f32 0.5, %v1773_v40 }
 0xa47   :  { %v1738_v6 = vpop.f32.mrf.mxu3 }
 0xa48   :  { %v1739_v62 = vadd.f32 %v1738_v6, %v3125_v48 }
 0xa49   :  { %v1753_v31 = vpop.f32.mrf.mxu0 }
 0xa4a   :  { %v1768_v55 = vadd.f32 %v1739_v62, %v1129_v14  ;;  %v1766_v32 = vpop.f32.mrf.mxu1 }
 0xa4c   :  { %v1769_v37 = vmul.f32 0.5, %v1768_v55 }
 0xa4e   :  { %2315 = vtanh.f32 %v1769_v37 }
 0xa4f   :  { %v1740_v56 = vpop.f32.mrf.mxu3  ;;  %2317 = vtanh.f32 %v1774_v39 }
 0xa54   :  { %v2316_v10 = vpop.eup %2315 }
 0xa55   :  { %v1771_v13 = vadd.f32 1.0, %v2316_v10  ;;  %v2318_v45 = vpop.eup %2317 }
 0xa56   :  { %v1776_v48 = vadd.f32 1.0, %v2318_v45 }
 0xa57   :  { %v1772_v9 = vmul.f32 0.5, %v1771_v13 }
 0xa58   :  { %v1777_v8 = vmul.f32 0.5, %v1776_v48 }
 0xa59   :  { %v1778_v2 = vmul.f32 %v1772_v9, %v1765_v59 }
 0xa5a   :  { %v1781_v18 = vsub.f32 1.0, %v1777_v8  ;;  %v1783_v26 = vmul.f32 %v1777_v8, %v1721_v28 }
 0xa5b   :  { %v1779_v16 = vadd.f32 %v1778_v2, %v1131_v49 }
 0xa5d   :  { %2319 = vtanh.f32 %v1779_v16 }
 0xa63   :  { %v2320_v17 = vpop.eup %2319 }
 0xa64   :  { %v1782_v23 = vmul.f32 %v2320_v17, %v1781_v18 }
 0xa66   :  { %v1784_v22 = vadd.f32 %v1783_v26, %v1782_v23 }
 0xa68   :  { %1786 = vst [vmem:[#allocation17 + $0x38] sm:$0xff] %v1784_v22 }
 0xa69   :  { %1794 = vst [vmem:[#allocation20] sm:$0xff] %v1784_v22  ;;  %1807 = dma.vmem_to_hbm [thread:$0]  %s1800_s1, 1024, %s1802_s23, [#allocation8], %s2563_s29, %s2563_s29, %s2564_s30  }
 0xa6a   :  { %1829 = dma.vmem_to_hbm [thread:$0]  %s1825_s25, 128, %s1827_s28, [#allocation19]  }
 0xa6b   :  { %2545 = dma.done.wait [#allocation8], 1024  }
 0xa6c   :  { %2546 = vsyncadd [#allocation8], 4294966272 }
 0xa6d   :  { %2547 = dma.done.wait [#allocation19], 256  }
 0xa6e   :  { %2548 = vsyncadd [#allocation19], 4294967040 }
 0xa6f   :  { %1842 = vsyncpa [#allocation7], 1 }
 0xa70   :  { %1843 = vsyncpa [#allocation10], 1 }
 0xa71   :  { %1844 = vsyncpa [#allocation13], 1 }
 0xa72   :  { %1845 = vsyncpa [#allocation16], 1 }
 0xa73   :  { %1846 = vsyncpa [#allocation8], 1 }
 0xa74   :  { %1847 = vsyncpa [#allocation19], 1 }

</bundles_post_ra>
